<compile_context>
chip_gen: v7x
topology: tpu7x:2x2x1
jax: 0.10.0
libtpu: 0.0.40
codegen_flags: <defaults>
</compile_context>

<pallas_src>
import jax
import jax.numpy as jnp
from jax.experimental import pallas as pl
from jax.experimental.pallas import tpu as pltpu


def _round_up(x, m):
    return ((x + m - 1) // m) * m


# ----------------------------------------------------------------------------
# Pallas kernel: tiled GEMM + bias + ReLU   (O = relu(X @ W + b))
# ----------------------------------------------------------------------------
def _gemm_bias_relu_kernel(x_ref, w_ref, b_ref, o_ref, acc_ref):
    k = pl.program_id(2)

    @pl.when(k == 0)
    def _():
        acc_ref[...] = jnp.zeros_like(acc_ref)

    acc_ref[...] += jnp.dot(
        x_ref[...], w_ref[...], preferred_element_type=jnp.float32
    )

    @pl.when(k == pl.num_programs(2) - 1)
    def _():
        # bias + ReLU only once, on the final K step; cast to the layer's
        # activation dtype so the store is narrow when bf16 is requested.
        o_ref[...] = jnp.maximum(acc_ref[...] + b_ref[...], 0.0).astype(
            o_ref.dtype
        )


def gemm_bias_relu(patches, wmat, bias, *, tm=256, tk=512,
                   out_dtype=jnp.float32):
    """relu(patches @ wmat + bias).

    patches: (M, K) bf16,  wmat: (K, Cout) bf16,  bias: (Cout,) f32.
    Returns (M, Cout) out_dtype.  Pads M to a sublane multiple and K / Cout to
    128-lane multiples (zero padding is numerically a no-op here), then slices
    the padded result back.
    """
    M, K = patches.shape
    Cout = wmat.shape[1]

    # Padded / tiled problem sizes.
    Np = _round_up(Cout, 128)
    tn = Np                      # Cout <= 384 for this net: one lane-dense tile
    Kp = _round_up(K, 128)
    tk = Kp if Kp <= tk else tk
    Kp = _round_up(Kp, tk)
    Mp = _round_up(M, 8)
    tm = min(tm, Mp)
    Mp = _round_up(Mp, tm)

    x = jnp.pad(patches, ((0, Mp - M), (0, Kp - K)))
    w = jnp.pad(wmat, ((0, Kp - K), (0, Np - Cout)))
    b = jnp.pad(bias.astype(jnp.float32).reshape(1, Cout),
                ((0, 0), (0, Np - Cout)))

    grid = (Mp // tm, Np // tn, Kp // tk)
    out = pl.pallas_call(
        _gemm_bias_relu_kernel,
        out_shape=jax.ShapeDtypeStruct((Mp, Np), out_dtype),
        grid_spec=pltpu.PrefetchScalarGridSpec(
            num_scalar_prefetch=0,
            grid=grid,
            in_specs=[
                pl.BlockSpec((tm, tk), lambda i, j, k: (i, k)),
                pl.BlockSpec((tk, tn), lambda i, j, k: (k, j)),
                pl.BlockSpec((1, tn), lambda i, j, k: (0, j)),
            ],
            out_specs=pl.BlockSpec((tm, tn), lambda i, j, k: (i, j)),
            scratch_shapes=[pltpu.VMEM((tm, tn), jnp.float32)],
        ),
        compiler_params=pltpu.CompilerParams(
            dimension_semantics=("parallel", "parallel", "arbitrary"),
        ),
    )(x, w, b)
    return out[:M, :Cout]


# ----------------------------------------------------------------------------
# Layer wrappers (glue: im2col, pooling, reshapes)
# ----------------------------------------------------------------------------
def conv2d_relu(x_nhwc, w, b, stride, padding, *, out_dtype=jnp.float32):
    """x_nhwc: (N,H,W,Cin).  w: (Cout,Cin,KH,KW) [PyTorch layout].  b: (Cout,)."""
    N, H, W, Cin = x_nhwc.shape
    Cout, _, KH, KW = w.shape

    # Cast once to bf16, then pad -- im2col intermediates stay half-width.
    xb = x_nhwc.astype(jnp.bfloat16)
    xp = jnp.pad(xb, ((0, 0), (padding, padding), (padding, padding), (0, 0)))
    Hp, Wp = H + 2 * padding, W + 2 * padding
    Ho = (Hp - KH) // stride + 1
    Wo = (Wp - KW) // stride + 1

    # im2col, feature order (kh, kw, cin).
    cols = []
    for kh in range(KH):
        for kw in range(KW):
            cols.append(
                xp[:, kh:kh + stride * (Ho - 1) + 1:stride,
                      kw:kw + stride * (Wo - 1) + 1:stride, :]
            )
    patches = (jnp.concatenate(cols, axis=-1)
               .reshape(N * Ho * Wo, KH * KW * Cin))

    # weights (Cout,Cin,KH,KW) -> (KH,KW,Cin,Cout) -> (K,Cout), matching
    # the (kh, kw, cin) patch feature order.
    wmat = (jnp.transpose(w, (2, 3, 1, 0))
            .reshape(KH * KW * Cin, Cout)
            .astype(jnp.bfloat16))

    out = gemm_bias_relu(patches, wmat, b, out_dtype=out_dtype)  # (M, Cout)
    return out.reshape(N, Ho, Wo, Cout)


def maxpool_3x3_s2(x_nhwc):
    """MaxPool2d(kernel=3, stride=2, padding=0) on NHWC input.

    8 chained jnp.maximum over shifted strided views -- no 9x stacked tensor,
    no extra kernel launch; XLA fuses this mem-bound op.
    """
    N, H, W, C = x_nhwc.shape
    Ho = (H - 3) // 2 + 1
    Wo = (W - 3) // 2 + 1
    out = None
    for kh in range(3):
        for kw in range(3):
            tap = x_nhwc[:, kh:kh + 2 * (Ho - 1) + 1:2,
                            kw:kw + 2 * (Wo - 1) + 1:2, :]
            out = tap if out is None else jnp.maximum(out, tap)
    return out


# ----------------------------------------------------------------------------
# Model: parameter init + forward (conv1..conv5, ReLU, 3 pools).  fc1-3 and
# dropout are declared in the PyTorch __init__ but unused by forward().
# ----------------------------------------------------------------------------
def init_params(key):
    shapes = [
        (96, 3, 11, 11),
        (256, 96, 5, 5),
        (384, 256, 3, 3),
        (384, 384, 3, 3),
        (256, 384, 3, 3),
    ]
    params = []
    for i, s in enumerate(shapes):
        kw_, kb_ = jax.random.split(jax.random.fold_in(key, i))
        w = 0.02 * jax.random.normal(kw_, s, dtype=jnp.float32)
        b = 0.01 * jax.random.normal(kb_, (s[0],), dtype=jnp.float32)
        params.append((w, b))
    return params


def caffenet_pool5_forward(x_nchw, params):
    x = jnp.transpose(x_nchw, (0, 2, 3, 1))            # NCHW -> NHWC
    (w1, b1), (w2, b2), (w3, b3), (w4, b4), (w5, b5) = params

    bf16 = jnp.bfloat16
    x = conv2d_relu(x, w1, b1, stride=4, padding=0, out_dtype=bf16)  # conv1+ReLU
    x = maxpool_3x3_s2(x)                                            # pool
    x = conv2d_relu(x, w2, b2, stride=1, padding=2, out_dtype=bf16)  # conv2+ReLU
    x = maxpool_3x3_s2(x)                                            # pool
    x = conv2d_relu(x, w3, b3, stride=1, padding=1, out_dtype=bf16)  # conv3+ReLU
    x = conv2d_relu(x, w4, b4, stride=1, padding=1, out_dtype=bf16)  # conv4+ReLU
    x = conv2d_relu(x, w5, b5, stride=1, padding=1,
                    out_dtype=jnp.float32)                           # conv5+ReLU
    x = maxpool_3x3_s2(x)                                            # pool

    return jnp.transpose(x, (0, 3, 1, 2))              # back to NCHW (f32)


# ----------------------------------------------------------------------------
if __name__ == "__main__":
    key = jax.random.PRNGKey(0)
    k_in, k_p = jax.random.split(key)

    # Small input consistent with the module: 3 input channels (fixed by conv1),
    # spatial 67 -> conv1 s4 -> 15 -> pool -> 7 -> pool -> 3 -> pool -> 1.
    N, C, H = 2, 3, 67
    x = jax.random.normal(k_in, (N, C, H, H), dtype=jnp.float32)
    params = init_params(k_p)

    fwd = jax.jit(caffenet_pool5_forward)
    out = fwd(x, params)
    jax.block_until_ready(out)

    assert out.shape == (N, 256, 1, 1), out.shape
    assert out.dtype == jnp.float32, out.dtype
    assert bool(jnp.all(jnp.isfinite(out)))
    print("KERNEL_OK")
</pallas_src>

<mosaic_0001>
module attributes {stable_mosaic.version = 11 : i64} {
  func.func @_gemm_bias_relu_kernel(%arg0: i32, %arg1: i32, %arg2: i32, %arg3: memref<256x384xbf16, #tpu.memory_space<vmem>>, %arg4: memref<384x128xbf16, #tpu.memory_space<vmem>>, %arg5: memref<1x128xf32, #tpu.memory_space<vmem>>, %arg6: memref<256x128xbf16, #tpu.memory_space<vmem>>, %arg7: memref<256x128xf32, #tpu.memory_space<vmem>>) attributes {dimension_semantics = [#tpu.dimension_semantics<parallel>, #tpu.dimension_semantics<parallel>, #tpu.dimension_semantics<arbitrary>], iteration_bounds = array<i64: 2, 1, 1>, scalar_prefetch = 0 : i64, scratch_operands = 1 : i64, tpu.core_type = #tpu.core_type<tc>, window_params = [{transform_indices = @transform_0, window_bounds = array<i64: 256, 384>}, {transform_indices = @transform_1, window_bounds = array<i64: 384, 128>}, {transform_indices = @transform_2, window_bounds = array<i64: 1, 128>}, {transform_indices = @transform_3, window_bounds = array<i64: 256, 128>}]} {
    %c0_i32 = arith.constant 0 : i32
    %0 = arith.cmpi eq, %arg2, %c0_i32 : i32
    %1 = arith.extui %0 : i1 to i32
    %c0_i32_0 = arith.constant 0 : i32
    %2 = arith.cmpi ne, %1, %c0_i32_0 : i32
    scf.if %2 {
      %cst_10 = arith.constant 0.000000e+00 : f32
      %12 = vector.broadcast %cst_10 : f32 to vector<256x128xf32>
      %c0_11 = arith.constant 0 : index
      %c0_12 = arith.constant 0 : index
      %13 = vector.load %arg7[%c0_11, %c0_12] : memref<256x128xf32, #tpu.memory_space<vmem>>, vector<256x128xf32>
      tpu.vector_store %arg7[%c0_11, %c0_12], %12 {strides = array<i32>} : memref<256x128xf32, #tpu.memory_space<vmem>>, vector<256x128xf32>,
    } else {
    }
    %c0 = arith.constant 0 : index
    %c0_1 = arith.constant 0 : index
    %3 = vector.load %arg7[%c0, %c0_1] : memref<256x128xf32, #tpu.memory_space<vmem>>, vector<256x128xf32>
    %c0_2 = arith.constant 0 : index
    %c0_3 = arith.constant 0 : index
    %4 = vector.load %arg3[%c0_2, %c0_3] : memref<256x384xbf16, #tpu.memory_space<vmem>>, vector<256x384xbf16>
    %c0_4 = arith.constant 0 : index
    %c0_5 = arith.constant 0 : index
    %5 = vector.load %arg4[%c0_4, %c0_5] : memref<384x128xbf16, #tpu.memory_space<vmem>>, vector<384x128xbf16>
    %cst = arith.constant dense<0.000000e+00> : vector<256x128xf32>
    %6 = tpu.matmul %4, %5, %cst {dimension_numbers = #tpu.dot_dimension_numbers<[1], [0], [0], [1], [0, 0, 1, 1], [], []>} : vector<256x384xbf16>, vector<384x128xbf16>, vector<256x128xf32> -> vector<256x128xf32>
    %7 = arith.addf %3, %6 : vector<256x128xf32>
    %c0_6 = arith.constant 0 : index
    %c0_7 = arith.constant 0 : index
    %8 = vector.load %arg7[%c0_6, %c0_7] : memref<256x128xf32, #tpu.memory_space<vmem>>, vector<256x128xf32>
    tpu.vector_store %arg7[%c0_6, %c0_7], %7 {strides = array<i32>} : memref<256x128xf32, #tpu.memory_space<vmem>>, vector<256x128xf32>,
    %c0_i32_8 = arith.constant 0 : i32
    %9 = arith.cmpi eq, %arg2, %c0_i32_8 : i32
    %10 = arith.extui %9 : i1 to i32
    %c0_i32_9 = arith.constant 0 : i32
    %11 = arith.cmpi ne, %10, %c0_i32_9 : i32
    scf.if %11 {
      %c0_10 = arith.constant 0 : index
      %c0_11 = arith.constant 0 : index
      %12 = vector.load %arg7[%c0_10, %c0_11] : memref<256x128xf32, #tpu.memory_space<vmem>>, vector<256x128xf32>
      %c0_12 = arith.constant 0 : index
      %c0_13 = arith.constant 0 : index
      %13 = vector.load %arg5[%c0_12, %c0_13] : memref<1x128xf32, #tpu.memory_space<vmem>>, vector<1x128xf32>
      %14 = vector.broadcast %13 : vector<1x128xf32> to vector<256x128xf32>
      %15 = arith.addf %12, %14 : vector<256x128xf32>
      %cst_14 = arith.constant 0.000000e+00 : f32
      %16 = vector.broadcast %cst_14 : f32 to vector<256x128xf32>
      %17 = arith.maximumf %15, %16 : vector<256x128xf32>
      %18 = arith.truncf %17 : vector<256x128xf32> to vector<256x128xbf16>
      %c0_15 = arith.constant 0 : index
      %c0_16 = arith.constant 0 : index
      %19 = vector.load %arg6[%c0_15, %c0_16] : memref<256x128xbf16, #tpu.memory_space<vmem>>, vector<256x128xbf16>
      tpu.vector_store %arg6[%c0_15, %c0_16], %18 {strides = array<i32>} : memref<256x128xbf16, #tpu.memory_space<vmem>>, vector<256x128xbf16>,
    } else {
    }
    return
  }
  func.func @transform_0(%arg0: i32, %arg1: i32, %arg2: i32) -> (i32, i32) {
    %c0_i32 = arith.constant 0 : i32
    return %arg0, %arg2 : i32, i32
  }
  func.func @transform_1(%arg0: i32, %arg1: i32, %arg2: i32) -> (i32, i32) {
    %c0_i32 = arith.constant 0 : i32
    return %arg2, %arg1 : i32, i32
  }
  func.func @transform_2(%arg0: i32, %arg1: i32, %arg2: i32) -> (i32, i32) {
    %c0_i32 = arith.constant 0 : i32
    %c0_i32_0 = arith.constant 0 : i32
    return %c0_i32, %arg1 : i32, i32
  }
  func.func @transform_3(%arg0: i32, %arg1: i32, %arg2: i32) -> (i32, i32) {
    %c0_i32 = arith.constant 0 : i32
    return %arg0, %arg1 : i32, i32
  }
}

module attributes {stable_mosaic.version = 11 : i64} {
  func.func @_gemm_bias_relu_kernel(%arg0: i32, %arg1: i32, %arg2: i32, %arg3: memref<104x512xbf16, #tpu.memory_space<vmem>>, %arg4: memref<512x256xbf16, #tpu.memory_space<vmem>>, %arg5: memref<1x256xf32, #tpu.memory_space<vmem>>, %arg6: memref<104x256xbf16, #tpu.memory_space<vmem>>, %arg7: memref<104x256xf32, #tpu.memory_space<vmem>>) attributes {dimension_semantics = [#tpu.dimension_semantics<parallel>, #tpu.dimension_semantics<parallel>, #tpu.dimension_semantics<arbitrary>], iteration_bounds = array<i64: 1, 1, 5>, scalar_prefetch = 0 : i64, scratch_operands = 1 : i64, tpu.core_type = #tpu.core_type<tc>, window_params = [{transform_indices = @transform_0, window_bounds = array<i64: 104, 512>}, {transform_indices = @transform_1, window_bounds = array<i64: 512, 256>}, {transform_indices = @transform_2, window_bounds = array<i64: 1, 256>}, {transform_indices = @transform_3, window_bounds = array<i64: 104, 256>}]} {
    %c0_i32 = arith.constant 0 : i32
    %0 = arith.cmpi eq, %arg2, %c0_i32 : i32
    %1 = arith.extui %0 : i1 to i32
    %c0_i32_0 = arith.constant 0 : i32
    %2 = arith.cmpi ne, %1, %c0_i32_0 : i32
    scf.if %2 {
      %cst_9 = arith.constant 0.000000e+00 : f32
      %12 = vector.broadcast %cst_9 : f32 to vector<104x256xf32>
      %c0_10 = arith.constant 0 : index
      %c0_11 = arith.constant 0 : index
      %13 = vector.load %arg7[%c0_10, %c0_11] : memref<104x256xf32, #tpu.memory_space<vmem>>, vector<104x256xf32>
      tpu.vector_store %arg7[%c0_10, %c0_11], %12 {strides = array<i32>} : memref<104x256xf32, #tpu.memory_space<vmem>>, vector<104x256xf32>,
    } else {
    }
    %c0 = arith.constant 0 : index
    %c0_1 = arith.constant 0 : index
    %3 = vector.load %arg7[%c0, %c0_1] : memref<104x256xf32, #tpu.memory_space<vmem>>, vector<104x256xf32>
    %c0_2 = arith.constant 0 : index
    %c0_3 = arith.constant 0 : index
    %4 = vector.load %arg3[%c0_2, %c0_3] : memref<104x512xbf16, #tpu.memory_space<vmem>>, vector<104x512xbf16>
    %c0_4 = arith.constant 0 : index
    %c0_5 = arith.constant 0 : index
    %5 = vector.load %arg4[%c0_4, %c0_5] : memref<512x256xbf16, #tpu.memory_space<vmem>>, vector<512x256xbf16>
    %cst = arith.constant dense<0.000000e+00> : vector<104x256xf32>
    %6 = tpu.matmul %4, %5, %cst {dimension_numbers = #tpu.dot_dimension_numbers<[1], [0], [0], [1], [0, 0, 1, 1], [], []>} : vector<104x512xbf16>, vector<512x256xbf16>, vector<104x256xf32> -> vector<104x256xf32>
    %7 = arith.addf %3, %6 : vector<104x256xf32>
    %c0_6 = arith.constant 0 : index
    %c0_7 = arith.constant 0 : index
    %8 = vector.load %arg7[%c0_6, %c0_7] : memref<104x256xf32, #tpu.memory_space<vmem>>, vector<104x256xf32>
    tpu.vector_store %arg7[%c0_6, %c0_7], %7 {strides = array<i32>} : memref<104x256xf32, #tpu.memory_space<vmem>>, vector<104x256xf32>,
    %c4_i32 = arith.constant 4 : i32
    %9 = arith.cmpi eq, %arg2, %c4_i32 : i32
    %10 = arith.extui %9 : i1 to i32
    %c0_i32_8 = arith.constant 0 : i32
    %11 = arith.cmpi ne, %10, %c0_i32_8 : i32
    scf.if %11 {
      %c0_9 = arith.constant 0 : index
      %c0_10 = arith.constant 0 : index
      %12 = vector.load %arg7[%c0_9, %c0_10] : memref<104x256xf32, #tpu.memory_space<vmem>>, vector<104x256xf32>
      %c0_11 = arith.constant 0 : index
      %c0_12 = arith.constant 0 : index
      %13 = vector.load %arg5[%c0_11, %c0_12] : memref<1x256xf32, #tpu.memory_space<vmem>>, vector<1x256xf32>
      %14 = vector.broadcast %13 : vector<1x256xf32> to vector<104x256xf32>
      %15 = arith.addf %12, %14 : vector<104x256xf32>
      %cst_13 = arith.constant 0.000000e+00 : f32
      %16 = vector.broadcast %cst_13 : f32 to vector<104x256xf32>
      %17 = arith.maximumf %15, %16 : vector<104x256xf32>
      %18 = arith.truncf %17 : vector<104x256xf32> to vector<104x256xbf16>
      %c0_14 = arith.constant 0 : index
      %c0_15 = arith.constant 0 : index
      %19 = vector.load %arg6[%c0_14, %c0_15] : memref<104x256xbf16, #tpu.memory_space<vmem>>, vector<104x256xbf16>
      tpu.vector_store %arg6[%c0_14, %c0_15], %18 {strides = array<i32>} : memref<104x256xbf16, #tpu.memory_space<vmem>>, vector<104x256xbf16>,
    } else {
    }
    return
  }
  func.func @transform_0(%arg0: i32, %arg1: i32, %arg2: i32) -> (i32, i32) {
    %c0_i32 = arith.constant 0 : i32
    return %arg0, %arg2 : i32, i32
  }
  func.func @transform_1(%arg0: i32, %arg1: i32, %arg2: i32) -> (i32, i32) {
    %c0_i32 = arith.constant 0 : i32
    return %arg2, %arg1 : i32, i32
  }
  func.func @transform_2(%arg0: i32, %arg1: i32, %arg2: i32) -> (i32, i32) {
    %c0_i32 = arith.constant 0 : i32
    %c0_i32_0 = arith.constant 0 : i32
    return %c0_i32, %arg1 : i32, i32
  }
  func.func @transform_3(%arg0: i32, %arg1: i32, %arg2: i32) -> (i32, i32) {
    %c0_i32 = arith.constant 0 : i32
    return %arg0, %arg1 : i32, i32
  }
}

module attributes {stable_mosaic.version = 11 : i64} {
  func.func @_gemm_bias_relu_kernel(%arg0: i32, %arg1: i32, %arg2: i32, %arg3: memref<24x512xbf16, #tpu.memory_space<vmem>>, %arg4: memref<512x384xbf16, #tpu.memory_space<vmem>>, %arg5: memref<1x384xf32, #tpu.memory_space<vmem>>, %arg6: memref<24x384xbf16, #tpu.memory_space<vmem>>, %arg7: memref<24x384xf32, #tpu.memory_space<vmem>>) attributes {dimension_semantics = [#tpu.dimension_semantics<parallel>, #tpu.dimension_semantics<parallel>, #tpu.dimension_semantics<arbitrary>], iteration_bounds = array<i64: 1, 1, 5>, scalar_prefetch = 0 : i64, scratch_operands = 1 : i64, tpu.core_type = #tpu.core_type<tc>, window_params = [{transform_indices = @transform_0, window_bounds = array<i64: 24, 512>}, {transform_indices = @transform_1, window_bounds = array<i64: 512, 384>}, {transform_indices = @transform_2, window_bounds = array<i64: 1, 384>}, {transform_indices = @transform_3, window_bounds = array<i64: 24, 384>}]} {
    %c0_i32 = arith.constant 0 : i32
    %0 = arith.cmpi eq, %arg2, %c0_i32 : i32
    %1 = arith.extui %0 : i1 to i32
    %c0_i32_0 = arith.constant 0 : i32
    %2 = arith.cmpi ne, %1, %c0_i32_0 : i32
    scf.if %2 {
      %cst_9 = arith.constant 0.000000e+00 : f32
      %12 = vector.broadcast %cst_9 : f32 to vector<24x384xf32>
      %c0_10 = arith.constant 0 : index
      %c0_11 = arith.constant 0 : index
      %13 = vector.load %arg7[%c0_10, %c0_11] : memref<24x384xf32, #tpu.memory_space<vmem>>, vector<24x384xf32>
      tpu.vector_store %arg7[%c0_10, %c0_11], %12 {strides = array<i32>} : memref<24x384xf32, #tpu.memory_space<vmem>>, vector<24x384xf32>,
    } else {
    }
    %c0 = arith.constant 0 : index
    %c0_1 = arith.constant 0 : index
    %3 = vector.load %arg7[%c0, %c0_1] : memref<24x384xf32, #tpu.memory_space<vmem>>, vector<24x384xf32>
    %c0_2 = arith.constant 0 : index
    %c0_3 = arith.constant 0 : index
    %4 = vector.load %arg3[%c0_2, %c0_3] : memref<24x512xbf16, #tpu.memory_space<vmem>>, vector<24x512xbf16>
    %c0_4 = arith.constant 0 : index
    %c0_5 = arith.constant 0 : index
    %5 = vector.load %arg4[%c0_4, %c0_5] : memref<512x384xbf16, #tpu.memory_space<vmem>>, vector<512x384xbf16>
    %cst = arith.constant dense<0.000000e+00> : vector<24x384xf32>
    %6 = tpu.matmul %4, %5, %cst {dimension_numbers = #tpu.dot_dimension_numbers<[1], [0], [0], [1], [0, 0, 1, 1], [], []>} : vector<24x512xbf16>, vector<512x384xbf16>, vector<24x384xf32> -> vector<24x384xf32>
    %7 = arith.addf %3, %6 : vector<24x384xf32>
    %c0_6 = arith.constant 0 : index
    %c0_7 = arith.constant 0 : index
    %8 = vector.load %arg7[%c0_6, %c0_7] : memref<24x384xf32, #tpu.memory_space<vmem>>, vector<24x384xf32>
    tpu.vector_store %arg7[%c0_6, %c0_7], %7 {strides = array<i32>} : memref<24x384xf32, #tpu.memory_space<vmem>>, vector<24x384xf32>,
    %c4_i32 = arith.constant 4 : i32
    %9 = arith.cmpi eq, %arg2, %c4_i32 : i32
    %10 = arith.extui %9 : i1 to i32
    %c0_i32_8 = arith.constant 0 : i32
    %11 = arith.cmpi ne, %10, %c0_i32_8 : i32
    scf.if %11 {
      %c0_9 = arith.constant 0 : index
      %c0_10 = arith.constant 0 : index
      %12 = vector.load %arg7[%c0_9, %c0_10] : memref<24x384xf32, #tpu.memory_space<vmem>>, vector<24x384xf32>
      %c0_11 = arith.constant 0 : index
      %c0_12 = arith.constant 0 : index
      %13 = vector.load %arg5[%c0_11, %c0_12] : memref<1x384xf32, #tpu.memory_space<vmem>>, vector<1x384xf32>
      %14 = vector.broadcast %13 : vector<1x384xf32> to vector<24x384xf32>
      %15 = arith.addf %12, %14 : vector<24x384xf32>
      %cst_13 = arith.constant 0.000000e+00 : f32
      %16 = vector.broadcast %cst_13 : f32 to vector<24x384xf32>
      %17 = arith.maximumf %15, %16 : vector<24x384xf32>
      %18 = arith.truncf %17 : vector<24x384xf32> to vector<24x384xbf16>
      %c0_14 = arith.constant 0 : index
      %c0_15 = arith.constant 0 : index
      %19 = vector.load %arg6[%c0_14, %c0_15] : memref<24x384xbf16, #tpu.memory_space<vmem>>, vector<24x384xbf16>
      tpu.vector_store %arg6[%c0_14, %c0_15], %18 {strides = array<i32>} : memref<24x384xbf16, #tpu.memory_space<vmem>>, vector<24x384xbf16>,
    } else {
    }
    return
  }
  func.func @transform_0(%arg0: i32, %arg1: i32, %arg2: i32) -> (i32, i32) {
    %c0_i32 = arith.constant 0 : i32
    return %arg0, %arg2 : i32, i32
  }
  func.func @transform_1(%arg0: i32, %arg1: i32, %arg2: i32) -> (i32, i32) {
    %c0_i32 = arith.constant 0 : i32
    return %arg2, %arg1 : i32, i32
  }
  func.func @transform_2(%arg0: i32, %arg1: i32, %arg2: i32) -> (i32, i32) {
    %c0_i32 = arith.constant 0 : i32
    %c0_i32_0 = arith.constant 0 : i32
    return %c0_i32, %arg1 : i32, i32
  }
  func.func @transform_3(%arg0: i32, %arg1: i32, %arg2: i32) -> (i32, i32) {
    %c0_i32 = arith.constant 0 : i32
    return %arg0, %arg1 : i32, i32
  }
}

module attributes {stable_mosaic.version = 11 : i64} {
  func.func @_gemm_bias_relu_kernel(%arg0: i32, %arg1: i32, %arg2: i32, %arg3: memref<24x512xbf16, #tpu.memory_space<vmem>>, %arg4: memref<512x384xbf16, #tpu.memory_space<vmem>>, %arg5: memref<1x384xf32, #tpu.memory_space<vmem>>, %arg6: memref<24x384xbf16, #tpu.memory_space<vmem>>, %arg7: memref<24x384xf32, #tpu.memory_space<vmem>>) attributes {dimension_semantics = [#tpu.dimension_semantics<parallel>, #tpu.dimension_semantics<parallel>, #tpu.dimension_semantics<arbitrary>], iteration_bounds = array<i64: 1, 1, 7>, scalar_prefetch = 0 : i64, scratch_operands = 1 : i64, tpu.core_type = #tpu.core_type<tc>, window_params = [{transform_indices = @transform_0, window_bounds = array<i64: 24, 512>}, {transform_indices = @transform_1, window_bounds = array<i64: 512, 384>}, {transform_indices = @transform_2, window_bounds = array<i64: 1, 384>}, {transform_indices = @transform_3, window_bounds = array<i64: 24, 384>}]} {
    %c0_i32 = arith.constant 0 : i32
    %0 = arith.cmpi eq, %arg2, %c0_i32 : i32
    %1 = arith.extui %0 : i1 to i32
    %c0_i32_0 = arith.constant 0 : i32
    %2 = arith.cmpi ne, %1, %c0_i32_0 : i32
    scf.if %2 {
      %cst_9 = arith.constant 0.000000e+00 : f32
      %12 = vector.broadcast %cst_9 : f32 to vector<24x384xf32>
      %c0_10 = arith.constant 0 : index
      %c0_11 = arith.constant 0 : index
      %13 = vector.load %arg7[%c0_10, %c0_11] : memref<24x384xf32, #tpu.memory_space<vmem>>, vector<24x384xf32>
      tpu.vector_store %arg7[%c0_10, %c0_11], %12 {strides = array<i32>} : memref<24x384xf32, #tpu.memory_space<vmem>>, vector<24x384xf32>,
    } else {
    }
    %c0 = arith.constant 0 : index
    %c0_1 = arith.constant 0 : index
    %3 = vector.load %arg7[%c0, %c0_1] : memref<24x384xf32, #tpu.memory_space<vmem>>, vector<24x384xf32>
    %c0_2 = arith.constant 0 : index
    %c0_3 = arith.constant 0 : index
    %4 = vector.load %arg3[%c0_2, %c0_3] : memref<24x512xbf16, #tpu.memory_space<vmem>>, vector<24x512xbf16>
    %c0_4 = arith.constant 0 : index
    %c0_5 = arith.constant 0 : index
    %5 = vector.load %arg4[%c0_4, %c0_5] : memref<512x384xbf16, #tpu.memory_space<vmem>>, vector<512x384xbf16>
    %cst = arith.constant dense<0.000000e+00> : vector<24x384xf32>
    %6 = tpu.matmul %4, %5, %cst {dimension_numbers = #tpu.dot_dimension_numbers<[1], [0], [0], [1], [0, 0, 1, 1], [], []>} : vector<24x512xbf16>, vector<512x384xbf16>, vector<24x384xf32> -> vector<24x384xf32>
    %7 = arith.addf %3, %6 : vector<24x384xf32>
    %c0_6 = arith.constant 0 : index
    %c0_7 = arith.constant 0 : index
    %8 = vector.load %arg7[%c0_6, %c0_7] : memref<24x384xf32, #tpu.memory_space<vmem>>, vector<24x384xf32>
    tpu.vector_store %arg7[%c0_6, %c0_7], %7 {strides = array<i32>} : memref<24x384xf32, #tpu.memory_space<vmem>>, vector<24x384xf32>,
    %c6_i32 = arith.constant 6 : i32
    %9 = arith.cmpi eq, %arg2, %c6_i32 : i32
    %10 = arith.extui %9 : i1 to i32
    %c0_i32_8 = arith.constant 0 : i32
    %11 = arith.cmpi ne, %10, %c0_i32_8 : i32
    scf.if %11 {
      %c0_9 = arith.constant 0 : index
      %c0_10 = arith.constant 0 : index
      %12 = vector.load %arg7[%c0_9, %c0_10] : memref<24x384xf32, #tpu.memory_space<vmem>>, vector<24x384xf32>
      %c0_11 = arith.constant 0 : index
      %c0_12 = arith.constant 0 : index
      %13 = vector.load %arg5[%c0_11, %c0_12] : memref<1x384xf32, #tpu.memory_space<vmem>>, vector<1x384xf32>
      %14 = vector.broadcast %13 : vector<1x384xf32> to vector<24x384xf32>
      %15 = arith.addf %12, %14 : vector<24x384xf32>
      %cst_13 = arith.constant 0.000000e+00 : f32
      %16 = vector.broadcast %cst_13 : f32 to vector<24x384xf32>
      %17 = arith.maximumf %15, %16 : vector<24x384xf32>
      %18 = arith.truncf %17 : vector<24x384xf32> to vector<24x384xbf16>
      %c0_14 = arith.constant 0 : index
      %c0_15 = arith.constant 0 : index
      %19 = vector.load %arg6[%c0_14, %c0_15] : memref<24x384xbf16, #tpu.memory_space<vmem>>, vector<24x384xbf16>
      tpu.vector_store %arg6[%c0_14, %c0_15], %18 {strides = array<i32>} : memref<24x384xbf16, #tpu.memory_space<vmem>>, vector<24x384xbf16>,
    } else {
    }
    return
  }
  func.func @transform_0(%arg0: i32, %arg1: i32, %arg2: i32) -> (i32, i32) {
    %c0_i32 = arith.constant 0 : i32
    return %arg0, %arg2 : i32, i32
  }
  func.func @transform_1(%arg0: i32, %arg1: i32, %arg2: i32) -> (i32, i32) {
    %c0_i32 = arith.constant 0 : i32
    return %arg2, %arg1 : i32, i32
  }
  func.func @transform_2(%arg0: i32, %arg1: i32, %arg2: i32) -> (i32, i32) {
    %c0_i32 = arith.constant 0 : i32
    %c0_i32_0 = arith.constant 0 : i32
    return %c0_i32, %arg1 : i32, i32
  }
  func.func @transform_3(%arg0: i32, %arg1: i32, %arg2: i32) -> (i32, i32) {
    %c0_i32 = arith.constant 0 : i32
    return %arg0, %arg1 : i32, i32
  }
}

module attributes {stable_mosaic.version = 11 : i64} {
  func.func @_gemm_bias_relu_kernel(%arg0: i32, %arg1: i32, %arg2: i32, %arg3: memref<24x512xbf16, #tpu.memory_space<vmem>>, %arg4: memref<512x256xbf16, #tpu.memory_space<vmem>>, %arg5: memref<1x256xf32, #tpu.memory_space<vmem>>, %arg6: memref<24x256xf32, #tpu.memory_space<vmem>>, %arg7: memref<24x256xf32, #tpu.memory_space<vmem>>) attributes {dimension_semantics = [#tpu.dimension_semantics<parallel>, #tpu.dimension_semantics<parallel>, #tpu.dimension_semantics<arbitrary>], iteration_bounds = array<i64: 1, 1, 7>, scalar_prefetch = 0 : i64, scratch_operands = 1 : i64, tpu.core_type = #tpu.core_type<tc>, window_params = [{transform_indices = @transform_0, window_bounds = array<i64: 24, 512>}, {transform_indices = @transform_1, window_bounds = array<i64: 512, 256>}, {transform_indices = @transform_2, window_bounds = array<i64: 1, 256>}, {transform_indices = @transform_3, window_bounds = array<i64: 24, 256>}]} {
    %c0_i32 = arith.constant 0 : i32
    %0 = arith.cmpi eq, %arg2, %c0_i32 : i32
    %1 = arith.extui %0 : i1 to i32
    %c0_i32_0 = arith.constant 0 : i32
    %2 = arith.cmpi ne, %1, %c0_i32_0 : i32
    scf.if %2 {
      %cst_9 = arith.constant 0.000000e+00 : f32
      %12 = vector.broadcast %cst_9 : f32 to vector<24x256xf32>
      %c0_10 = arith.constant 0 : index
      %c0_11 = arith.constant 0 : index
      %13 = vector.load %arg7[%c0_10, %c0_11] : memref<24x256xf32, #tpu.memory_space<vmem>>, vector<24x256xf32>
      tpu.vector_store %arg7[%c0_10, %c0_11], %12 {strides = array<i32>} : memref<24x256xf32, #tpu.memory_space<vmem>>, vector<24x256xf32>,
    } else {
    }
    %c0 = arith.constant 0 : index
    %c0_1 = arith.constant 0 : index
    %3 = vector.load %arg7[%c0, %c0_1] : memref<24x256xf32, #tpu.memory_space<vmem>>, vector<24x256xf32>
    %c0_2 = arith.constant 0 : index
    %c0_3 = arith.constant 0 : index
    %4 = vector.load %arg3[%c0_2, %c0_3] : memref<24x512xbf16, #tpu.memory_space<vmem>>, vector<24x512xbf16>
    %c0_4 = arith.constant 0 : index
    %c0_5 = arith.constant 0 : index
    %5 = vector.load %arg4[%c0_4, %c0_5] : memref<512x256xbf16, #tpu.memory_space<vmem>>, vector<512x256xbf16>
    %cst = arith.constant dense<0.000000e+00> : vector<24x256xf32>
    %6 = tpu.matmul %4, %5, %cst {dimension_numbers = #tpu.dot_dimension_numbers<[1], [0], [0], [1], [0, 0, 1, 1], [], []>} : vector<24x512xbf16>, vector<512x256xbf16>, vector<24x256xf32> -> vector<24x256xf32>
    %7 = arith.addf %3, %6 : vector<24x256xf32>
    %c0_6 = arith.constant 0 : index
    %c0_7 = arith.constant 0 : index
    %8 = vector.load %arg7[%c0_6, %c0_7] : memref<24x256xf32, #tpu.memory_space<vmem>>, vector<24x256xf32>
    tpu.vector_store %arg7[%c0_6, %c0_7], %7 {strides = array<i32>} : memref<24x256xf32, #tpu.memory_space<vmem>>, vector<24x256xf32>,
    %c6_i32 = arith.constant 6 : i32
    %9 = arith.cmpi eq, %arg2, %c6_i32 : i32
    %10 = arith.extui %9 : i1 to i32
    %c0_i32_8 = arith.constant 0 : i32
    %11 = arith.cmpi ne, %10, %c0_i32_8 : i32
    scf.if %11 {
      %c0_9 = arith.constant 0 : index
      %c0_10 = arith.constant 0 : index
      %12 = vector.load %arg7[%c0_9, %c0_10] : memref<24x256xf32, #tpu.memory_space<vmem>>, vector<24x256xf32>
      %c0_11 = arith.constant 0 : index
      %c0_12 = arith.constant 0 : index
      %13 = vector.load %arg5[%c0_11, %c0_12] : memref<1x256xf32, #tpu.memory_space<vmem>>, vector<1x256xf32>
      %14 = vector.broadcast %13 : vector<1x256xf32> to vector<24x256xf32>
      %15 = arith.addf %12, %14 : vector<24x256xf32>
      %cst_13 = arith.constant 0.000000e+00 : f32
      %16 = vector.broadcast %cst_13 : f32 to vector<24x256xf32>
      %17 = arith.maximumf %15, %16 : vector<24x256xf32>
      %c0_14 = arith.constant 0 : index
      %c0_15 = arith.constant 0 : index
      %18 = vector.load %arg6[%c0_14, %c0_15] : memref<24x256xf32, #tpu.memory_space<vmem>>, vector<24x256xf32>
      tpu.vector_store %arg6[%c0_14, %c0_15], %17 {strides = array<i32>} : memref<24x256xf32, #tpu.memory_space<vmem>>, vector<24x256xf32>,
    } else {
    }
    return
  }
  func.func @transform_0(%arg0: i32, %arg1: i32, %arg2: i32) -> (i32, i32) {
    %c0_i32 = arith.constant 0 : i32
    return %arg0, %arg2 : i32, i32
  }
  func.func @transform_1(%arg0: i32, %arg1: i32, %arg2: i32) -> (i32, i32) {
    %c0_i32 = arith.constant 0 : i32
    return %arg2, %arg1 : i32, i32
  }
  func.func @transform_2(%arg0: i32, %arg1: i32, %arg2: i32) -> (i32, i32) {
    %c0_i32 = arith.constant 0 : i32
    %c0_i32_0 = arith.constant 0 : i32
    return %c0_i32, %arg1 : i32, i32
  }
  func.func @transform_3(%arg0: i32, %arg1: i32, %arg2: i32) -> (i32, i32) {
    %c0_i32 = arith.constant 0 : i32
    return %arg0, %arg1 : i32, i32
  }
}

</mosaic_0001>

<bundles_post_ra>
// kernel: caffenet_pool5_forward.5
= control target key start
LH: loop header
LB: loop body
LE: loop exit
PB: predicated region body
PF: predicated region fallthrough
CT: control target
= control target key end

     0   :  { %s2216_s12 = smov 0   ;;  %s2218_s13 = smov 0   ;;  %s2460_s0 = inlined_call_operand.vmem [shape: bf16[512,384], index: 0, kind: input, shape index: {}]   ;;  %s2461_s1 = inlined_call_operand.vmem [shape: bf16[384,128], index: 1, kind: input, shape index: {}]   ;;  %s2462_s2 = inlined_call_operand.vmem [shape: f32[1,128], index: 2, kind: input, shape index: {}]   ;;  %s2463_s3 = inlined_call_operand.vmem [shape: bf16[512,128], index: 3, kind: output, shape index: {}]  }
   0x1   :  { %s2220_s14 = smov 0  }
   0x2 LB: > { %s32_s15 = sadd.s32 1, %s2190_s13  ;;  %p1620_p0 = scmp.ge.s32.totalorder %s2194_s14, 1  ;;  %s2194_s14 = sphi %s2220_s14, %s13_s14   ;;  %s2190_s13 = sphi %s2218_s13, %s2465_s13   ;;  %s2186_s12 = sphi %s2216_s12, %s2464_s12  }
   0x3   : > { %p34_p1 = scmp.ge.s32.totalorder %s32_s15, 2  ;;  %p191_p2 = scmp.lt.s32.totalorder %s2194_s14, 3 }
   0x5   : > { %s2467_s15 = smov (%p34_p1, %s32_s15), 0  ;;  %p192_p3 = pnand %p1620_p0, %p191_p2 }
   0x6   : > { %v2084_v0 = vld [vmem:[%s2461_s1 + $0x40] sm:$0xff] (!%p192_p3)   ;;  %s1621_s18 = sshll.u32 (!%p192_p3), %s2186_s12, 5  ;;  %v2086_v2 = vld [vmem:[%s2461_s1 + $0x48] sm:$0xff] (!%p192_p3)   ;;  %v2088_v4 = vld [vmem:[%s2461_s1 + $0x50] sm:$0xff] (!%p192_p3)  }
   0x7   : > { %195 = sbr.rel (%p192_p3) target bundleno = 353 (0x161), region = 32  ;;  %v2085_v1 = vld [vmem:[%s2461_s1] sm:$0xff] (!%p192_p3)   ;;  %1859 = vmatprep.subr.bf16.mxu0 (!%p192_p3), %v2084_v0  ;;  %2043 = vmatprep.subr.bf16.mxu1 (!%p192_p3), %v2084_v0  ;;  %p236_p4 = scmp.lt.s32.totalorder (!%p192_p3), %s1621_s18, 63  ;;  %v2087_v3 = vld [vmem:[%s2461_s1 + $0x8] sm:$0xff] (!%p192_p3)   ;;  %v2089_v5 = vld [vmem:[%s2461_s1 + $0x10] sm:$0xff] (!%p192_p3)  }
   0x8   : > { %1860 = vmatpush3.bf16.msra.mxu0 (!%p192_p3), %v2085_v1  ;;  %2051 = vmatpush3.bf16.msra.mxu1 (!%p192_p3), %v2085_v1  ;;  %v2090_v6 = vld [vmem:[%s2461_s1 + $0x58] sm:$0xff] (!%p192_p3)   ;;  %v2092_v8 = vld [vmem:[%s2461_s1 + $0x60] sm:$0xff] (!%p192_p3)   ;;  %v2094_v10 = vld [vmem:[%s2461_s1 + $0x68] sm:$0xff] (!%p192_p3)  }
   0x9   : > { %1861 = vmatprep.subr.bf16.mxu0 (!%p192_p3), %v2086_v2  ;;  %2044 = vmatprep.subr.bf16.mxu1 (!%p192_p3), %v2086_v2  ;;  %v2091_v7 = vld [vmem:[%s2461_s1 + $0x18] sm:$0xff] (!%p192_p3)   ;;  %v2093_v9 = vld [vmem:[%s2461_s1 + $0x20] sm:$0xff] (!%p192_p3)   ;;  %v2095_v13 = vld [vmem:[%s2461_s1 + $0x28] sm:$0xff] (!%p192_p3)  }
   0xa   : > { %v2096_v14 = vld [vmem:[%s2461_s1 + $0x70] sm:$0xff] (!%p192_p3)   ;;  %v2098_v16 = vld [vmem:[%s2461_s1 + $0x78] sm:$0xff] (!%p192_p3)   ;;  %v2106_v18 = vld [vmem:[%s2461_s1 + $0x80] sm:$0xff] (!%p192_p3)  }
   0xb   : > { %v2097_v15 = vld [vmem:[%s2461_s1 + $0x30] sm:$0xff] (!%p192_p3)   ;;  %v2099_v17 = vld [vmem:[%s2461_s1 + $0x38] sm:$0xff] (!%p192_p3)   ;;  %v2107_v22 = vld [vmem:[%s2461_s1 + $0x88] sm:$0xff] (!%p192_p3)  }
   0xc   : > { %1862 = vmatpush3.bf16.msra.mxu0 (!%p192_p3), %v2087_v3  ;;  %2052 = vmatpush3.bf16.msra.mxu1 (!%p192_p3), %v2087_v3  ;;  %v2114_v25 = vld [vmem:[%s2461_s1 + $0x90] sm:$0xff] (!%p192_p3)   ;;  %v2115_v27 = vld [vmem:[%s2461_s1 + $0x98] sm:$0xff] (!%p192_p3)   ;;  %v2122_v30 = vld [vmem:[%s2461_s1 + $0xa0] sm:$0xff] (!%p192_p3)  }
   0xd   : > { %1863 = vmatprep.subr.bf16.mxu0 (!%p192_p3), %v2088_v4  ;;  %2045 = vmatprep.subr.bf16.mxu1 (!%p192_p3), %v2088_v4  ;;  %v2123_v33 = vld [vmem:[%s2461_s1 + $0xa8] sm:$0xff] (!%p192_p3)   ;;  %v2130_v36 = vld [vmem:[%s2461_s1 + $0xb0] sm:$0xff] (!%p192_p3)   ;;  %v2131_v40 = vld [vmem:[%s2461_s1 + $0xb8] sm:$0xff] (!%p192_p3)  }
   0xe   : > { %s2469_s18 = smov (!%p236_p4, %s1621_s18), 63 }
   0xf   : > { %s2059_s4 = smul.u32 12, %s2469_s18  ;;  %s1624_s25 = sshll.u32 %s2469_s18, 2 }
  0x10   : > { %1864 = vmatpush3.bf16.msra.mxu0 %v2089_v5  ;;  %2053 = vmatpush3.bf16.msra.mxu1 %v2089_v5  ;;  %s2391_s28 = scalar_lea.vmem %s2463_s3, %s1624_s25 }
  0x11   : > { %1865 = vmatprep.subr.bf16.mxu0 %v2090_v6  ;;  %2046 = vmatprep.subr.bf16.mxu1 %v2090_v6  ;;  %s2267_s11 = scalar_lea.vmem %s2460_s0, %s2059_s4 }
  0x12   : > { %v2102_v11 = vld [vmem:[%s2267_s11 + $0x4] ss:$12 sps:$4 sm:$0xff]   ;;  %v2100_v19 = vld [vmem:[%s2267_s11] ss:$12 sps:$4 sm:$0xff]   ;;  %v2108_v21 = vld [vmem:[%s2267_s11 + $0x1c] ss:$12 sps:$4 sm:$0xff]  }
  0x13   : > { %v2105_v12 = vld [vmem:[%s2267_s11 + $0x124] ss:$12 sps:$4 sm:$0xff]   ;;  %880 = vmatprep.mubr.bf16.mxu0 %v2102_v11  ;;  %v2103_v20 = vld [vmem:[%s2267_s11 + $0x120] ss:$12 sps:$4 sm:$0xff]   ;;  %v2110_v23 = vld [vmem:[%s2267_s11 + $0x13c] ss:$12 sps:$4 sm:$0xff]  }
  0x14   : > { %1866 = vmatpush3.bf16.msra.mxu0 %v2091_v7  ;;  %2054 = vmatpush3.bf16.msra.mxu1 %v2091_v7  ;;  %v2112_v24 = vld [vmem:[%s2267_s11 + $0x18] ss:$12 sps:$4 sm:$0xff]   ;;  %v2116_v28 = vld [vmem:[%s2267_s11 + $0x34] ss:$12 sps:$4 sm:$0xff]   ;;  %v2120_v31 = vld [vmem:[%s2267_s11 + $0x30] ss:$12 sps:$4 sm:$0xff]  }
  0x15   : > { %1867 = vmatprep.subr.bf16.mxu0 %v2092_v8  ;;  %2047 = vmatprep.subr.bf16.mxu1 %v2092_v8  ;;  %v2113_v26 = vld [vmem:[%s2267_s11 + $0x138] ss:$12 sps:$4 sm:$0xff]   ;;  %v2118_v29 = vld [vmem:[%s2267_s11 + $0x154] ss:$12 sps:$4 sm:$0xff]   ;;  %v2121_v32 = vld [vmem:[%s2267_s11 + $0x150] ss:$12 sps:$4 sm:$0xff]  }
  0x16   : > { %976 = vmatprep.mubr.bf16.mxu1 %v2105_v12  ;;  %v2124_v34 = vld [vmem:[%s2267_s11 + $0x4c] ss:$12 sps:$4 sm:$0xff]   ;;  %v2128_v37 = vld [vmem:[%s2267_s11 + $0x48] ss:$12 sps:$4 sm:$0xff]   ;;  %v2132_v39 = vld [vmem:[%s2267_s11 + $0x64] ss:$12 sps:$4 sm:$0xff]  }
  0x17   : > { %v2126_v35 = vld [vmem:[%s2267_s11 + $0x16c] ss:$12 sps:$4 sm:$0xff]   ;;  %v2129_v38 = vld [vmem:[%s2267_s11 + $0x168] ss:$12 sps:$4 sm:$0xff]   ;;  %v2141_v47 = vld [vmem:[%s2267_s11 + $0x50] ss:$12 sps:$4 sm:$0xff]  }
  0x18   : > { %1868 = vmatpush3.bf16.msra.mxu0 %v2093_v9  ;;  %2055 = vmatpush3.bf16.msra.mxu1 %v2093_v9  ;;  %v2134_v41 = vld [vmem:[%s2267_s11 + $0x8] ss:$12 sps:$4 sm:$0xff]   ;;  %v2135_v42 = vld [vmem:[%s2267_s11 + $0x60] ss:$12 sps:$4 sm:$0xff]   ;;  %v2139_v45 = vld [vmem:[%s2267_s11 + $0x38] ss:$12 sps:$4 sm:$0xff]  }
  0x19   : > { %1869 = vmatprep.subr.bf16.mxu0 %v2094_v10  ;;  %2048 = vmatprep.subr.bf16.mxu1 %v2094_v10  ;;  %v2136_v43 = vld [vmem:[%s2267_s11 + $0x20] ss:$12 sps:$4 sm:$0xff]   ;;  %v2137_v44 = vld [vmem:[%s2267_s11 + $0x7c] ss:$12 sps:$4 sm:$0xff]   ;;  %v2140_v46 = vld [vmem:[%s2267_s11 + $0x78] ss:$12 sps:$4 sm:$0xff]  }
  0x1a   : > { %v2142_v48 = vld [vmem:[%s2267_s11 + $0x94] ss:$12 sps:$4 sm:$0xff]   ;;  %v2145_v50 = vld [vmem:[%s2267_s11 + $0x90] ss:$12 sps:$4 sm:$0xff]   ;;  %v2147_v52 = vld [vmem:[%s2267_s11 + $0xac] ss:$12 sps:$4 sm:$0xff]  }
  0x1b   : > { %v2144_v49 = vld [vmem:[%s2267_s11 + $0x68] ss:$12 sps:$4 sm:$0xff]   ;;  %v2146_v51 = vld [vmem:[%s2267_s11 + $0x80] ss:$12 sps:$4 sm:$0xff]   ;;  %v2149_v53 = vld [vmem:[%s2267_s11 + $0x98] ss:$12 sps:$4 sm:$0xff]  }
  0x1c   : > { %1870 = vmatpush3.bf16.msra.mxu0 %v2095_v13  ;;  %2056 = vmatpush3.bf16.msra.mxu1 %v2095_v13  ;;  %v2150_v54 = vld [vmem:[%s2267_s11 + $0xa8] ss:$12 sps:$4 sm:$0xff]   ;;  %v2151_v55 = vld [vmem:[%s2267_s11 + $0xb0] ss:$12 sps:$4 sm:$0xff]   ;;  %v2155_v58 = vld [vmem:[%s2267_s11 + $0xc0] ss:$12 sps:$4 sm:$0xff]  }
  0x1d   : > { %1871 = vmatprep.subr.bf16.mxu0 %v2096_v14  ;;  %2049 = vmatprep.subr.bf16.mxu1 %v2096_v14  ;;  %v2152_v56 = vld [vmem:[%s2267_s11 + $0xc4] ss:$12 sps:$4 sm:$0xff]   ;;  %v2154_v57 = vld [vmem:[%s2267_s11 + $0xc8] ss:$12 sps:$4 sm:$0xff]   ;;  %v2156_v59 = vld [vmem:[%s2267_s11 + $0xe0] ss:$12 sps:$4 sm:$0xff]  }
  0x1e   : > { %v2157_v60 = vld [vmem:[%s2267_s11 + $0xdc] ss:$12 sps:$4 sm:$0xff]   ;;  %v2159_v61 = vld [vmem:[%s2267_s11 + $0xf8] ss:$12 sps:$4 sm:$0xff]   ;;  %v2162_v0 = vld [vmem:[%s2267_s11 + $0xf4] ss:$12 sps:$4 sm:$0xff]  }
  0x1f   : > { %v2160_v62 = vld [vmem:[%s2267_s11 + $0xd8] ss:$12 sps:$4 sm:$0xff]   ;;  %v2161_v63 = vld [vmem:[%s2267_s11 + $0x110] ss:$12 sps:$4 sm:$0xff]   ;;  %v2164_v1 = vld [vmem:[%s2267_s11 + $0x128] ss:$12 sps:$4 sm:$0xff]  }
  0x20   : > { %1872 = vmatpush3.bf16.msra.mxu0 %v2097_v15  ;;  %2057 = vmatpush3.bf16.msra.mxu1 %v2097_v15  ;;  %v2165_v2 = vld [vmem:[%s2267_s11 + $0xf0] ss:$12 sps:$4 sm:$0xff]   ;;  %v2166_v3 = vld [vmem:[%s2267_s11 + $0x140] ss:$12 sps:$4 sm:$0xff]   ;;  %v2169_v5 = vld [vmem:[%s2267_s11 + $0x158] ss:$12 sps:$4 sm:$0xff]  }
  0x21   : > { %1873 = vmatprep.subr.bf16.mxu0 %v2098_v16  ;;  %2050 = vmatprep.subr.bf16.mxu1 %v2098_v16  ;;  %v2167_v4 = vld [vmem:[%s2267_s11 + $0x10c] ss:$12 sps:$4 sm:$0xff]   ;;  %v2170_v6 = vld [vmem:[%s2267_s11 + $0x108] ss:$12 sps:$4 sm:$0xff]   ;;  %v2171_v7 = vld [vmem:[%s2267_s11 + $0x170] ss:$12 sps:$4 sm:$0xff]  }
  0x24   : > { %1874 = vmatpush3.bf16.msra.mxu0 %v2099_v17  ;;  %2058 = vmatpush3.bf16.msra.mxu1 %v2099_v17 }
  0x25   : > { %1995 = vmatprep.subr.bf16.mxu1 %v2106_v18 }
  0x27   : > { %881 = vmatmul.mubr.bf16.vlgmr.msra.gmra.mrb[0].mxu0 %v2100_v19  ;;  %977 = vmatmul.mubr.bf16.vlgmr.msra.gmra.mrb[0].mxu1 %v2103_v20 }
  0x28   : > { %1996 = vmatpush3.bf16.msra.mxu1 %v2106_v18  ;;  %888 = vmatprep.mubr.bf16.mxu0 %v2108_v21 }
  0x29   : > { %1997 = vmatprep.subr.bf16.mxu1 %v2107_v22  ;;  %984 = vmatprep.mubr.bf16.mxu1 %v2110_v23 }
  0x2c   : > { %1998 = vmatpush3.bf16.msra.mxu1 %v2107_v22 }
  0x2d   : > { %1999 = vmatprep.subr.bf16.mxu1 %v2114_v25 }
  0x2f   : > { %889 = vmatmul.mubr.bf16.gmra.mrb[4].mxu0 %v2112_v24  ;;  %985 = vmatmul.mubr.bf16.gmra.mrb[4].mxu1 %v2113_v26 }
  0x30   : > { %2000 = vmatpush3.bf16.msra.mxu1 %v2114_v25  ;;  %896 = vmatprep.mubr.bf16.mxu0 %v2116_v28 }
  0x31   : > { %2001 = vmatprep.subr.bf16.mxu1 %v2115_v27  ;;  %992 = vmatprep.mubr.bf16.mxu1 %v2118_v29 }
  0x34   : > { %2002 = vmatpush3.bf16.msra.mxu1 %v2115_v27 }
  0x35   : > { %2003 = vmatprep.subr.bf16.mxu1 %v2122_v30 }
  0x37   : > { %897 = vmatmul.mubr.bf16.gmra.mrb[8].mxu0 %v2120_v31  ;;  %993 = vmatmul.mubr.bf16.gmra.mrb[8].mxu1 %v2121_v32 }
  0x38   : > { %2004 = vmatpush3.bf16.msra.mxu1 %v2122_v30  ;;  %904 = vmatprep.mubr.bf16.mxu0 %v2124_v34 }
  0x39   : > { %2005 = vmatprep.subr.bf16.mxu1 %v2123_v33  ;;  %1000 = vmatprep.mubr.bf16.mxu1 %v2126_v35 }
  0x3c   : > { %2006 = vmatpush3.bf16.msra.mxu1 %v2123_v33 }
  0x3d   : > { %2007 = vmatprep.subr.bf16.mxu1 %v2130_v36 }
  0x3f   : > { %905 = vmatmul.mubr.bf16.gmra.mrb[12].mxu0 %v2128_v37  ;;  %1001 = vmatmul.mubr.bf16.gmra.mrb[12].mxu1 %v2129_v38 }
  0x40   : > { %2008 = vmatpush3.bf16.msra.mxu1 %v2130_v36  ;;  %912 = vmatprep.mubr.bf16.mxu0 %v2132_v39 }
  0x41   : > { %2009 = vmatprep.subr.bf16.mxu1 %v2131_v40  ;;  %2011 = vmatprep.mubr.bf16.mxu1 %v2134_v41 }
  0x44   : > { %2010 = vmatpush3.bf16.msra.mxu1 %v2131_v40 }
  0x47   : > { %913 = vmatmul.mubr.bf16.gmra.mrb[16].mxu0 %v2135_v42  ;;  %2012 = vmatmul.mubr.bf16.vlgmr.msra.gmra.mrb[16].mxu1 %v2136_v43 }
  0x48   : > { %920 = vmatprep.mubr.bf16.mxu0 %v2137_v44  ;;  %2015 = vmatprep.mubr.bf16.mxu1 %v2139_v45 }
  0x4f   : > { %921 = vmatmul.mubr.bf16.gmra.mrb[20].mxu0 %v2140_v46  ;;  %2016 = vmatmul.mubr.bf16.gmra.mrb[20].mxu1 %v2141_v47 }
  0x50   : > { %928 = vmatprep.mubr.bf16.mxu0 %v2142_v48  ;;  %2019 = vmatprep.mubr.bf16.mxu1 %v2144_v49 }
  0x57   : > { %929 = vmatmul.mubr.bf16.gmra.mrb[24].mxu0 %v2145_v50  ;;  %2020 = vmatmul.mubr.bf16.gmra.mrb[24].mxu1 %v2146_v51 }
  0x58   : > { %936 = vmatprep.mubr.bf16.mxu0 %v2147_v52  ;;  %2023 = vmatprep.mubr.bf16.mxu1 %v2149_v53 }
  0x5f   : > { %937 = vmatmul.mubr.bf16.gmra.mrb[28].mxu0 %v2150_v54  ;;  %2024 = vmatmul.mubr.bf16.gmra.mrb[28].mxu1 %v2151_v55 }
  0x60   : > { %944 = vmatprep.mubr.bf16.mxu0 %v2152_v56  ;;  %2027 = vmatprep.mubr.bf16.mxu1 %v2154_v57 }
  0x67   : > { %945 = vmatmul.mubr.bf16.gmra.mrb[32].mxu0 %v2155_v58  ;;  %2028 = vmatmul.mubr.bf16.gmra.mrb[32].mxu1 %v2156_v59  ;;  %v2381_v58 = vld [vmem:[%s2462_s2] ss:$0 sm:$0xff] }
  0x68   : > { %952 = vmatprep.mubr.bf16.mxu0 %v2157_v60  ;;  %2031 = vmatprep.mubr.bf16.mxu1 %v2159_v61 }
  0x6f   : > { %953 = vmatmul.mubr.bf16.gmra.mrb[36].mxu0 %v2160_v62  ;;  %2032 = vmatmul.mubr.bf16.gmra.mrb[36].mxu1 %v2161_v63 }
  0x70   : > { %960 = vmatprep.mubr.bf16.mxu0 %v2162_v0  ;;  %2035 = vmatprep.mubr.bf16.mxu1 %v2164_v1 }
  0x77   : > { %961 = vmatmul.mubr.bf16.gmra.mrb[40].mxu0 %v2165_v2  ;;  %2036 = vmatmul.mubr.bf16.gmra.mrb[40].mxu1 %v2166_v3 }
  0x78   : > { %968 = vmatprep.mubr.bf16.mxu0 %v2167_v4  ;;  %2039 = vmatprep.mubr.bf16.mxu1 %v2169_v5 }
  0x7f   : > { %969 = vmatmul.mubr.bf16.gmra.mrb[44].mxu0 %v2170_v6  ;;  %2040 = vmatmul.mubr.bf16.gmra.mrb[44].mxu1 %v2171_v7 }
  0xfa   : > { %v1875_v8 = vpop.f32.mrb[0].mxu0  ;;  %v1947_v9 = vpop.f32.mrb[0].mxu1 }
  0xfb   : > { %v1876_v10 = vpop.f32.mrb[1].mxu0  ;;  %v1948_v11 = vpop.f32.mrb[1].mxu1 }
  0xfc   : > { %v1877_v12 = vadd.f32 %v1876_v10, %v1875_v8  ;;  %v2362_v13 = vadd.f32 %v1948_v11, %v1947_v9  ;;  %v1878_v14 = vpop.f32.mrb[2].mxu0  ;;  %v1950_v15 = vpop.f32.mrb[2].mxu1 }
  0xfd   : > { %v1879_v16 = vpop.f32.mrb[3].mxu0  ;;  %v1951_v17 = vpop.f32.mrb[3].mxu1 }
  0xfe   : > { %v1880_v18 = vadd.f32 %v1879_v16, %v1878_v14  ;;  %v2364_v19 = vadd.f32 %v1951_v17, %v1950_v15 }
 0x102   : > { %v1881_v20 = vpop.f32.mrb[4].mxu0  ;;  %v1953_v21 = vpop.f32.mrb[4].mxu1 }
 0x103   : > { %v1882_v22 = vpop.f32.mrb[5].mxu0  ;;  %v1954_v23 = vpop.f32.mrb[5].mxu1 }
 0x104   : > { %v1883_v24 = vadd.f32 %v1882_v22, %v1881_v20  ;;  %v2366_v25 = vadd.f32 %v1954_v23, %v1953_v21  ;;  %v1884_v26 = vpop.f32.mrb[6].mxu0  ;;  %v1956_v27 = vpop.f32.mrb[6].mxu1 }
 0x105   : > { %v1885_v28 = vpop.f32.mrb[7].mxu0  ;;  %v1957_v29 = vpop.f32.mrb[7].mxu1 }
 0x106   : > { %v1886_v30 = vadd.f32 %v1885_v28, %v1884_v26  ;;  %v2368_v31 = vadd.f32 %v1957_v29, %v1956_v27 }
 0x10a   : > { %v1887_v32 = vpop.f32.mrb[8].mxu0  ;;  %v1959_v33 = vpop.f32.mrb[8].mxu1 }
 0x10b   : > { %v1888_v34 = vpop.f32.mrb[9].mxu0  ;;  %v1960_v35 = vpop.f32.mrb[9].mxu1 }
 0x10c   : > { %v1889_v36 = vadd.f32 %v1888_v34, %v1887_v32  ;;  %v2370_v37 = vadd.f32 %v1960_v35, %v1959_v33  ;;  %v1890_v38 = vpop.f32.mrb[10].mxu0  ;;  %v1962_v39 = vpop.f32.mrb[10].mxu1 }
 0x10d   : > { %v1891_v40 = vpop.f32.mrb[11].mxu0  ;;  %v1963_v41 = vpop.f32.mrb[11].mxu1 }
 0x10e   : > { %v1892_v42 = vadd.f32 %v1891_v40, %v1890_v38  ;;  %v2372_v43 = vadd.f32 %v1963_v41, %v1962_v39 }
 0x112   : > { %v1893_v44 = vpop.f32.mrb[12].mxu0  ;;  %v1965_v45 = vpop.f32.mrb[12].mxu1 }
 0x113   : > { %v1894_v46 = vpop.f32.mrb[13].mxu0  ;;  %v1966_v47 = vpop.f32.mrb[13].mxu1 }
 0x114   : > { %v1895_v48 = vadd.f32 %v1894_v46, %v1893_v44  ;;  %v2374_v49 = vadd.f32 %v1966_v47, %v1965_v45  ;;  %v1896_v50 = vpop.f32.mrb[14].mxu0  ;;  %v1968_v51 = vpop.f32.mrb[14].mxu1 }
 0x115   : > { %v1897_v52 = vpop.f32.mrb[15].mxu0  ;;  %v1969_v53 = vpop.f32.mrb[15].mxu1 }
 0x116   : > { %v1898_v54 = vadd.f32 %v1897_v52, %v1896_v50  ;;  %v2376_v55 = vadd.f32 %v1969_v53, %v1968_v51 }
 0x11a   : > { %v1899_v56 = vpop.f32.mrb[16].mxu0  ;;  %v2013_v57 = vpop.f32.mrb[16].mxu1 }
 0x11b   : > { %v1052_v59 = vadd.f32 %v2013_v57, %v1883_v24  ;;  %v1900_v60 = vpop.f32.mrb[17].mxu0  ;;  %v1043_v61 = vpop.f32.mrb[17].mxu1 }
 0x11c   : > { %v1901_v62 = vadd.f32 %v1900_v60, %v1899_v56  ;;  %v1044_v63 = vadd.f32 %v1877_v12, %v1043_v61  ;;  %v1902_v0 = vpop.f32.mrb[18].mxu0  ;;  %v2014_v1 = vpop.f32.mrb[18].mxu1 }
 0x11d   : > { %v1278_v2 = vadd.f32 %v2381_v58, %v1052_v59  ;;  %v1055_v3 = vadd.f32 %v2014_v1, %v1886_v30  ;;  %v1903_v4 = vpop.f32.mrb[19].mxu0  ;;  %v1046_v5 = vpop.f32.mrb[19].mxu1 }
 0x11e   : > { %v1276_v6 = vadd.f32 %v2381_v58, %v1044_v63  ;;  %v1904_v7 = vadd.f32 %v1903_v4, %v1902_v0  ;;  %v1047_v8 = vadd.f32 %v1880_v18, %v1046_v5 }
 0x11f   : > { %v1279_v9 = vadd.f32 %v2381_v58, %v1055_v3  ;;  %v1310_v11 = vmax.f32 %v1278_v2, 0.0 }
 0x120   : > { %v1277_v10 = vadd.f32 %v2381_v58, %v1047_v8  ;;  %v1308_v15 = vmax.f32 %v1276_v6, 0.0 }
 0x121   : > { %v1311_v14 = vmax.f32 %v1279_v9, 0.0 }
 0x122   : > { %v1309_v12 = vmax.f32 %v1277_v10, 0.0  ;;  %v1905_v16 = vpop.f32.mrb[20].mxu0  ;;  %v2017_v17 = vpop.f32.mrb[20].mxu1 }
 0x123   : > { %v1772_v20 = vpack.c.bf16 %v1311_v14, %v1310_v11  ;;  %v1068_v18 = vadd.f32 %v2017_v17, %v1895_v48  ;;  %v1906_v21 = vpop.f32.mrb[21].mxu0  ;;  %v1059_v22 = vpop.f32.mrb[21].mxu1 }
 0x124   : > { %v1767_v23 = vpack.c.bf16 %v1309_v12, %v1308_v15  ;;  %v1907_v24 = vadd.f32 %v1906_v21, %v1905_v16  ;;  %v1060_v26 = vadd.f32 %v1889_v36, %v1059_v22  ;;  %v1908_v27 = vpop.f32.mrb[22].mxu0  ;;  %v2018_v28 = vpop.f32.mrb[22].mxu1 }
 0x125   : > { %1844 = vst [vmem:[%s2391_s28 + $0x8] sm:$0xff] %v1772_v20   ;;  %v1282_v29 = vadd.f32 %v2381_v58, %v1068_v18  ;;  %v1071_v30 = vadd.f32 %v2018_v28, %v1898_v54  ;;  %v1909_v32 = vpop.f32.mrb[23].mxu0  ;;  %v1062_v33 = vpop.f32.mrb[23].mxu1 }
 0x126   : > { %1768 = vst [vmem:[%s2391_s28] sm:$0xff] %v1767_v23   ;;  %v1280_v34 = vadd.f32 %v2381_v58, %v1060_v26  ;;  %v1910_v35 = vadd.f32 %v1909_v32, %v1908_v27  ;;  %v1063_v38 = vadd.f32 %v1892_v42, %v1062_v33 }
 0x127   : > { %v1283_v39 = vadd.f32 %v2381_v58, %v1071_v30  ;;  %v1314_v41 = vmax.f32 %v1282_v29, 0.0 }
 0x128   : > { %v1281_v40 = vadd.f32 %v2381_v58, %v1063_v38  ;;  %v1312_v44 = vmax.f32 %v1280_v34, 0.0 }
 0x129   : > { %v1315_v36 = vmax.f32 %v1283_v39, 0.0 }
 0x12a   : > { %v1313_v45 = vmax.f32 %v1281_v40, 0.0  ;;  %v1911_v46 = vpop.f32.mrb[24].mxu0  ;;  %v2021_v47 = vpop.f32.mrb[24].mxu1 }
 0x12b   : > { %v1782_v48 = vpack.c.bf16 %v1315_v36, %v1314_v41  ;;  %v1084_v50 = vadd.f32 %v2021_v47, %v1907_v24  ;;  %v1912_v51 = vpop.f32.mrb[25].mxu0  ;;  %v1075_v52 = vpop.f32.mrb[25].mxu1 }
 0x12c   : > { %v1777_v53 = vpack.c.bf16 %v1313_v45, %v1312_v44  ;;  %v1913_v54 = vadd.f32 %v1912_v51, %v1911_v46  ;;  %v1076_v56 = vadd.f32 %v1901_v62, %v1075_v52  ;;  %v1914_v42 = vpop.f32.mrb[26].mxu0  ;;  %v2022_v57 = vpop.f32.mrb[26].mxu1 }
 0x12d   : > { %1846 = vst [vmem:[%s2391_s28 + $0x18] sm:$0xff] %v1782_v48   ;;  %v1286_v59 = vadd.f32 %v2381_v58, %v1084_v50  ;;  %v1087_v60 = vadd.f32 %v2022_v57, %v1910_v35  ;;  %v1915_v61 = vpop.f32.mrb[27].mxu0  ;;  %v1078_v63 = vpop.f32.mrb[27].mxu1 }
 0x12e   : > { %1845 = vst [vmem:[%s2391_s28 + $0x10] sm:$0xff] %v1777_v53   ;;  %v1284_v0 = vadd.f32 %v2381_v58, %v1076_v56  ;;  %v1916_v1 = vadd.f32 %v1915_v61, %v1914_v42  ;;  %v1079_v2 = vadd.f32 %v1904_v7, %v1078_v63 }
 0x12f   : > { %v1287_v3 = vadd.f32 %v2381_v58, %v1087_v60  ;;  %v1318_v5 = vmax.f32 %v1286_v59, 0.0 }
 0x130   : > { %v1285_v4 = vadd.f32 %v2381_v58, %v1079_v2  ;;  %v1316_v6 = vmax.f32 %v1284_v0, 0.0 }
 0x131   : > { %v1319_v62 = vmax.f32 %v1287_v3, 0.0 }
 0x132   : > { %v1317_v8 = vmax.f32 %v1285_v4, 0.0  ;;  %v1917_v9 = vpop.f32.mrb[28].mxu0  ;;  %v2025_v10 = vpop.f32.mrb[28].mxu1 }
 0x133   : > { %v1792_v11 = vpack.c.bf16 %v1319_v62, %v1318_v5  ;;  %v1918_v14 = vpop.f32.mrb[29].mxu0  ;;  %v1091_v15 = vpop.f32.mrb[29].mxu1 }
 0x134   : > { %v1787_v12 = vpack.c.bf16 %v1317_v8, %v1316_v6  ;;  %v1919_v16 = vadd.f32 %v1918_v14, %v1917_v9  ;;  %v1092_v17 = vadd.f32 %v1913_v54, %v1091_v15  ;;  %v1920_v20 = vpop.f32.mrb[30].mxu0  ;;  %v2026_v7 = vpop.f32.mrb[30].mxu1 }
 0x135   : > { %1848 = vst [vmem:[%s2391_s28 + $0x28] sm:$0xff] %v1792_v11   ;;  %v1921_v18 = vpop.f32.mrb[31].mxu0  ;;  %v1094_v21 = vpop.f32.mrb[31].mxu1 }
 0x136   : > { %1847 = vst [vmem:[%s2391_s28 + $0x20] sm:$0xff] %v1787_v12   ;;  %v1100_v22 = vadd.f32 %v2025_v10, %v1919_v16  ;;  %v1288_v23 = vadd.f32 %v2381_v58, %v1092_v17  ;;  %v1922_v24 = vadd.f32 %v1921_v18, %v1920_v20  ;;  %v1095_v26 = vadd.f32 %v1916_v1, %v1094_v21 }
 0x138   : > { %v1290_v27 = vadd.f32 %v2381_v58, %v1100_v22  ;;  %v1103_v28 = vadd.f32 %v2026_v7, %v1922_v24  ;;  %v1289_v29 = vadd.f32 %v2381_v58, %v1095_v26  ;;  %v1320_v30 = vmax.f32 %v1288_v23, 0.0 }
 0x13a   : > { %v1291_v32 = vadd.f32 %v2381_v58, %v1103_v28  ;;  %v1321_v33 = vmax.f32 %v1289_v29, 0.0  ;;  %v1923_v34 = vpop.f32.mrb[32].mxu0  ;;  %v2029_v35 = vpop.f32.mrb[32].mxu1  ;;  %v1322_v40 = vmax.f32 %v1290_v27, 0.0 }
 0x13b   : > { %v1924_v38 = vpop.f32.mrb[33].mxu0  ;;  %v1107_v39 = vpop.f32.mrb[33].mxu1 }
 0x13c   : > { %v1323_v41 = vmax.f32 %v1291_v32, 0.0  ;;  %v1797_v36 = vpack.c.bf16 %v1321_v33, %v1320_v30  ;;  %v1925_v44 = vadd.f32 %v1924_v38, %v1923_v34  ;;  %v1926_v45 = vpop.f32.mrb[34].mxu0  ;;  %v2030_v46 = vpop.f32.mrb[34].mxu1 }
 0x13d   : > { %v1927_v47 = vpop.f32.mrb[35].mxu0  ;;  %v1110_v48 = vpop.f32.mrb[35].mxu1 }
 0x13e   : > { %v1802_v50 = vpack.c.bf16 %v1323_v41, %v1322_v40  ;;  %1849 = vst [vmem:[%s2391_s28 + $0x30] sm:$0xff] %v1797_v36   ;;  %v1108_v51 = vadd.f32 %v1925_v44, %v1107_v39  ;;  %v1928_v52 = vadd.f32 %v1927_v47, %v1926_v45 }
 0x140   : > { %1850 = vst [vmem:[%s2391_s28 + $0x38] sm:$0xff] %v1802_v50   ;;  %v1292_v53 = vadd.f32 %v2381_v58, %v1108_v51  ;;  %v1111_v54 = vadd.f32 %v1928_v52, %v1110_v48 }
 0x142   : > { %v1293_v56 = vadd.f32 %v2381_v58, %v1111_v54  ;;  %v1929_v42 = vpop.f32.mrb[36].mxu0  ;;  %v2415_v57 = vpop.f32.mrb[36].mxu1  ;;  %v1324_v61 = vmax.f32 %v1292_v53, 0.0 }
 0x143   : > { %v1930_v59 = vpop.f32.mrb[37].mxu0  ;;  %v1123_v60 = vpop.f32.mrb[37].mxu1 }
 0x144   : > { %v1325_v63 = vmax.f32 %v1293_v56, 0.0  ;;  %v1931_v0 = vadd.f32 %v1930_v59, %v1929_v42  ;;  %v1932_v1 = vpop.f32.mrb[38].mxu0  ;;  %v2417_v2 = vpop.f32.mrb[38].mxu1 }
 0x145   : > { %v1933_v3 = vpop.f32.mrb[39].mxu0  ;;  %v1126_v4 = vpop.f32.mrb[39].mxu1 }
 0x146   : > { %v1807_v5 = vpack.c.bf16 %v1325_v63, %v1324_v61  ;;  %v1116_v62 = vadd.f32 %v2029_v35, %v1931_v0  ;;  %v1934_v6 = vadd.f32 %v1933_v3, %v1932_v1 }
 0x148   : > { %1851 = vst [vmem:[%s2391_s28 + $0x40] sm:$0xff] %v1807_v5   ;;  %v1294_v8 = vadd.f32 %v2381_v58, %v1116_v62  ;;  %v1119_v9 = vadd.f32 %v2030_v46, %v1934_v6 }
 0x14a   : > { %v1295_v10 = vadd.f32 %v2381_v58, %v1119_v9  ;;  %v1935_v11 = vpop.f32.mrb[40].mxu0  ;;  %v2037_v14 = vpop.f32.mrb[40].mxu1  ;;  %v1326_v17 = vmax.f32 %v1294_v8, 0.0 }
 0x14b   : > { %v1148_v15 = vadd.f32 %v2037_v14, %v2366_v25  ;;  %v1936_v12 = vpop.f32.mrb[41].mxu0  ;;  %v1139_v16 = vpop.f32.mrb[41].mxu1 }
 0x14c   : > { %v1327_v20 = vmax.f32 %v1295_v10, 0.0  ;;  %v1937_v7 = vadd.f32 %v1936_v12, %v1935_v11  ;;  %v1140_v18 = vadd.f32 %v2362_v13, %v1139_v16  ;;  %v1938_v21 = vpop.f32.mrb[42].mxu0  ;;  %v2038_v22 = vpop.f32.mrb[42].mxu1 }
 0x14d   : > { %v1302_v23 = vadd.f32 %v2381_v58, %v1148_v15  ;;  %v1151_v24 = vadd.f32 %v2038_v22, %v2368_v31  ;;  %v1939_v26 = vpop.f32.mrb[43].mxu0  ;;  %v1142_v27 = vpop.f32.mrb[43].mxu1 }
 0x14e   : > { %v1812_v28 = vpack.c.bf16 %v1327_v20, %v1326_v17  ;;  %v1124_v29 = vadd.f32 %v1937_v7, %v1123_v60  ;;  %v1940_v30 = vadd.f32 %v1939_v26, %v1938_v21  ;;  %v1300_v25 = vadd.f32 %v2381_v58, %v1140_v18 }
 0x14f   : > { %v1303_v32 = vadd.f32 %v2381_v58, %v1151_v24  ;;  %v1143_v33 = vadd.f32 %v2364_v19, %v1142_v27  ;;  %v1334_v35 = vmax.f32 %v1302_v23, 0.0 }
 0x150   : > { %1852 = vst [vmem:[%s2391_s28 + $0x48] sm:$0xff] %v1812_v28   ;;  %v1296_v13 = vadd.f32 %v2381_v58, %v1124_v29  ;;  %v1127_v34 = vadd.f32 %v1940_v30, %v1126_v4  ;;  %v1332_v36 = vmax.f32 %v1300_v25, 0.0 }
 0x151   : > { %v1335_v38 = vmax.f32 %v1303_v32, 0.0  ;;  %v1301_v39 = vadd.f32 %v2381_v58, %v1143_v33 }
 0x152   : > { %v1297_v31 = vadd.f32 %v2381_v58, %v1127_v34  ;;  %v1941_v40 = vpop.f32.mrb[44].mxu0  ;;  %v2041_v41 = vpop.f32.mrb[44].mxu1  ;;  %v1328_v48 = vmax.f32 %v1296_v13, 0.0 }
 0x153   : > { %v1832_v44 = vpack.c.bf16 %v1335_v38, %v1334_v35  ;;  %v1333_v45 = vmax.f32 %v1301_v39, 0.0  ;;  %v1164_v46 = vadd.f32 %v2041_v41, %v2374_v49  ;;  %v1942_v47 = vpop.f32.mrb[45].mxu0  ;;  %v1155_v19 = vpop.f32.mrb[45].mxu1 }
 0x154   : > { %v1329_v50 = vmax.f32 %v1297_v31, 0.0  ;;  %v1943_v51 = vadd.f32 %v1942_v47, %v1941_v40  ;;  %v1156_v52 = vadd.f32 %v2370_v37, %v1155_v19  ;;  %v1944_v53 = vpop.f32.mrb[46].mxu0  ;;  %v2042_v54 = vpop.f32.mrb[46].mxu1 }
 0x155   : > { %1856 = vst [vmem:[%s2391_s28 + $0x68] sm:$0xff] %v1832_v44   ;;  %v1827_v56 = vpack.c.bf16 %v1333_v45, %v1332_v36  ;;  %v1306_v42 = vadd.f32 %v2381_v58, %v1164_v46  ;;  %v1167_v59 = vadd.f32 %v2042_v54, %v2376_v55  ;;  %v1945_v60 = vpop.f32.mrb[47].mxu0  ;;  %v1158_v61 = vpop.f32.mrb[47].mxu1 }
 0x156   : > { %v1817_v49 = vpack.c.bf16 %v1329_v50, %v1328_v48  ;;  %v1132_v63 = vadd.f32 %v2415_v57, %v1943_v51  ;;  %v1946_v0 = vadd.f32 %v1945_v60, %v1944_v53  ;;  %v1304_v1 = vadd.f32 %v2381_v58, %v1156_v52 }
 0x157   : > { %1855 = vst [vmem:[%s2391_s28 + $0x60] sm:$0xff] %v1827_v56   ;;  %v1307_v37 = vadd.f32 %v2381_v58, %v1167_v59  ;;  %v1159_v3 = vadd.f32 %v2372_v43, %v1158_v61  ;;  %v1338_v5 = vmax.f32 %v1306_v42, 0.0 }
 0x158   : > { %1853 = vst [vmem:[%s2391_s28 + $0x50] sm:$0xff] %v1817_v49   ;;  %v1298_v4 = vadd.f32 %v2381_v58, %v1132_v63  ;;  %v1135_v55 = vadd.f32 %v2417_v2, %v1946_v0  ;;  %v1336_v8 = vmax.f32 %v1304_v1, 0.0 }
 0x159   : > { %v1339_v62 = vmax.f32 %v1307_v37, 0.0  ;;  %v1305_v57 = vadd.f32 %v2381_v58, %v1159_v3 }
 0x15a   : > { %v1299_v6 = vadd.f32 %v2381_v58, %v1135_v55  ;;  %v1330_v11 = vmax.f32 %v1298_v4, 0.0 }
 0x15b   : > { %v1842_v9 = vpack.c.bf16 %v1339_v62, %v1338_v5  ;;  %v1337_v10 = vmax.f32 %v1305_v57, 0.0 }
 0x15c   : > { %v1331_v14 = vmax.f32 %v1299_v6, 0.0 }
 0x15d   : > { %1858 = vst [vmem:[%s2391_s28 + $0x78] sm:$0xff] %v1842_v9   ;;  %v1837_v43 = vpack.c.bf16 %v1337_v10, %v1336_v8 }
 0x15e   : > { %v1822_v15 = vpack.c.bf16 %v1331_v14, %v1330_v11 }
 0x15f   : > { %1857 = vst [vmem:[%s2391_s28 + $0x70] sm:$0xff] %v1837_v43  }
 0x160   : > { %1854 = vst [vmem:[%s2391_s28 + $0x58] sm:$0xff] %v1822_v15  }
 0x161 PF: > { %s13_s14 = sadd.s32 1, %s2194_s14   ;;  %s2464_s12 = smov %s2190_s13 }
 0x162   : > { %p10_p5 = scmp.ge.s32.totalorder %s13_s14, 4   ;;  %s2465_s13 = smov %s2467_s15 }
 0x164   :  { %12 = sbr.rel (!%p10_p5) target bundleno = 2 (0x2), region = 76 }

// kernel: caffenet_pool5_forward.6
= control target key start
LH: loop header
LB: loop body
LE: loop exit
PB: predicated region body
PF: predicated region fallthrough
CT: control target
= control target key end

     0   :  { %s1905_s12 = smov 0   ;;  %s1907_s13 = smov 0   ;;  %s2194_s0 = inlined_call_operand.vmem [shape: bf16[104,2560], index: 0, kind: input, shape index: {}]   ;;  %s2195_s1 = inlined_call_operand.vmem [shape: bf16[2560,256], index: 1, kind: input, shape index: {}]   ;;  %s2196_s2 = inlined_call_operand.vmem [shape: f32[1,256], index: 2, kind: input, shape index: {}]   ;;  %s2197_s3 = inlined_call_operand.vmem [shape: bf16[104,256], index: 3, kind: output, shape index: {}]  }
   0x1   :  { %s1909_s14 = smov 0   ;;  %s1911_s15 = smov 0  }
   0x2   :  { %s1913_s16 = smov 0  }
   0x3 LB: > { %s25_s17 = sadd.s32 1, %s1878_s15  ;;  %p48_p1 = scmp.ne.s32.totalorder %s1870_s13, %s1866_s12  ;;  %s1882_s16 = sphi %s1913_s16, %s13_s16   ;;  %s1878_s15 = sphi %s1911_s15, %s2201_s15   ;;  %s1874_s14 = sphi %s1909_s14, %s2200_s14   ;;  %s1870_s13 = sphi %s1907_s13, %s2199_s13   ;;  %s1866_s12 = sphi %s1905_s12, %s2198_s12  }
   0x4   : > { %p26_p0 = scmp.ge.s32.totalorder %s25_s17, 5  ;;  %p49_p2 = scmp.eq.s32.totalorder %s1882_s16, 0 }
   0x5   : > { %s41_s19 = sadd.s32 1, %s1870_s13  ;;  %p1508_p5 = scmp.ge.s32.totalorder %s1882_s16, 5 }
   0x6   : > { %s2203_s17 = smov (%p26_p0, %s25_s17), 0  ;;  %p50_p3 = por %p49_p2, %p48_p1 }
   0x7   : > { %s37_s18 = ssub.s32 %s1878_s15, %s2203_s17  ;;  %164 = sbr.rel (%p1508_p5) target bundleno = 32 (0x20), region = 20 }
   0x8   : > { %p39_p4 = scmp.eq.s32.totalorder %s37_s18, 0 }
   0xa   : > { %s1940_s20 = scalar_select %p39_p4, %s1870_s13, %s41_s19  }
   0xe   : > { %167 = sbr.rel (!%p50_p3) target bundleno = 32 (0x20), region = 24  ;;  %s169_s21 = sand.u32 (%p50_p3), 1, %s1870_s13  }
   0xf   : > { %s1626_s22 = sshll.u32 (%p50_p3), %s1878_s15, 4  ;;  %s1665_s23 = smul.u32 (%p50_p3), 208, %s169_s21 }
  0x10   : > { %s1948_s26 = scalar_lea.vmem (%p50_p3), %s2194_s0, %s1626_s22 }
  0x11   : > { %v190_v0 = vld [vmem:[%s1948_s26] sm:$0xff] (%p50_p3)  ;;  %v192_v1 = vld [vmem:[%s1948_s26 + $0x8] sm:$0xff] (%p50_p3)  ;;  %v194_v2 = vld [vmem:[%s1948_s26 + $0x50] sm:$0xff] (%p50_p3)  ;;  %s1956_s27 = scalar_lea.vmem (%p50_p3), [#allocation3], %s1665_s23 }
  0x12   : > { %v196_v3 = vld [vmem:[%s1948_s26 + $0x58] sm:$0xff] (%p50_p3)  ;;  %v198_v4 = vld [vmem:[%s1948_s26 + $0xa0] sm:$0xff] (%p50_p3)  ;;  %v200_v5 = vld [vmem:[%s1948_s26 + $0xa8] sm:$0xff] (%p50_p3)  ;;  %191 = vst [vmem:[%s1956_s27] sm:$0xff] (%p50_p3), %v190_v0 }
  0x13   : > { %193 = vst [vmem:[%s1956_s27 + $0x8] sm:$0xff] (%p50_p3), %v192_v1  ;;  %195 = vst [vmem:[%s1956_s27 + $0x10] sm:$0xff] (%p50_p3), %v194_v2  ;;  %v202_v6 = vld [vmem:[%s1948_s26 + $0xf0] sm:$0xff] (%p50_p3)  ;;  %v204_v7 = vld [vmem:[%s1948_s26 + $0xf8] sm:$0xff] (%p50_p3) }
  0x14   : > { %197 = vst [vmem:[%s1956_s27 + $0x18] sm:$0xff] (%p50_p3), %v196_v3  ;;  %199 = vst [vmem:[%s1956_s27 + $0x20] sm:$0xff] (%p50_p3), %v198_v4  ;;  %v206_v8 = vld [vmem:[%s1948_s26 + $0x140] sm:$0xff] (%p50_p3)  ;;  %v208_v9 = vld [vmem:[%s1948_s26 + $0x148] sm:$0xff] (%p50_p3) }
  0x15   : > { %201 = vst [vmem:[%s1956_s27 + $0x28] sm:$0xff] %v200_v5  ;;  %203 = vst [vmem:[%s1956_s27 + $0x30] sm:$0xff] %v202_v6  ;;  %v210_v10 = vld [vmem:[%s1948_s26 + $0x190] sm:$0xff]  ;;  %v212_v11 = vld [vmem:[%s1948_s26 + $0x198] sm:$0xff] }
  0x16   : > { %205 = vst [vmem:[%s1956_s27 + $0x38] sm:$0xff] %v204_v7  ;;  %207 = vst [vmem:[%s1956_s27 + $0x40] sm:$0xff] %v206_v8  ;;  %v214_v12 = vld [vmem:[%s1948_s26 + $0x1e0] sm:$0xff]  ;;  %v216_v13 = vld [vmem:[%s1948_s26 + $0x1e8] sm:$0xff] }
  0x17   : > { %209 = vst [vmem:[%s1956_s27 + $0x48] sm:$0xff] %v208_v9  ;;  %211 = vst [vmem:[%s1956_s27 + $0x50] sm:$0xff] %v210_v10  ;;  %v218_v14 = vld [vmem:[%s1948_s26 + $0x230] sm:$0xff]  ;;  %v220_v15 = vld [vmem:[%s1948_s26 + $0x238] sm:$0xff] }
  0x18   : > { %213 = vst [vmem:[%s1956_s27 + $0x58] sm:$0xff] %v212_v11  ;;  %215 = vst [vmem:[%s1956_s27 + $0x60] sm:$0xff] %v214_v12  ;;  %v222_v16 = vld [vmem:[%s1948_s26 + $0x280] sm:$0xff]  ;;  %v224_v17 = vld [vmem:[%s1948_s26 + $0x288] sm:$0xff] }
  0x19   : > { %217 = vst [vmem:[%s1956_s27 + $0x68] sm:$0xff] %v216_v13  ;;  %219 = vst [vmem:[%s1956_s27 + $0x70] sm:$0xff] %v218_v14  ;;  %v226_v18 = vld [vmem:[%s1948_s26 + $0x2d0] sm:$0xff]  ;;  %v228_v19 = vld [vmem:[%s1948_s26 + $0x2d8] sm:$0xff] }
  0x1a   : > { %221 = vst [vmem:[%s1956_s27 + $0x78] sm:$0xff] %v220_v15  ;;  %223 = vst [vmem:[%s1956_s27 + $0x80] sm:$0xff] %v222_v16  ;;  %v230_v20 = vld [vmem:[%s1948_s26 + $0x320] sm:$0xff]  ;;  %v232_v21 = vld [vmem:[%s1948_s26 + $0x328] sm:$0xff] }
  0x1b   : > { %225 = vst [vmem:[%s1956_s27 + $0x88] sm:$0xff] %v224_v17  ;;  %227 = vst [vmem:[%s1956_s27 + $0x90] sm:$0xff] %v226_v18  ;;  %v234_v22 = vld [vmem:[%s1948_s26 + $0x370] sm:$0xff]  ;;  %v236_v23 = vld [vmem:[%s1948_s26 + $0x378] sm:$0xff] }
  0x1c   : > { %229 = vst [vmem:[%s1956_s27 + $0x98] sm:$0xff] %v228_v19  ;;  %231 = vst [vmem:[%s1956_s27 + $0xa0] sm:$0xff] %v230_v20  ;;  %v238_v24 = vld [vmem:[%s1948_s26 + $0x3c0] sm:$0xff]  ;;  %v240_v25 = vld [vmem:[%s1948_s26 + $0x3c8] sm:$0xff] }
  0x1d   : > { %233 = vst [vmem:[%s1956_s27 + $0xa8] sm:$0xff] %v232_v21  ;;  %235 = vst [vmem:[%s1956_s27 + $0xb0] sm:$0xff] %v234_v22 }
  0x1e   : > { %237 = vst [vmem:[%s1956_s27 + $0xb8] sm:$0xff] %v236_v23  ;;  %239 = vst [vmem:[%s1956_s27 + $0xc0] sm:$0xff] %v238_v24 }
  0x1f   : > { %241 = vst [vmem:[%s1956_s27 + $0xc8] sm:$0xff] %v240_v25 }
  0x20 PF: > { %p1511_p6 = scmp.ge.s32.totalorder %s1882_s16, 1  ;;  %p261_p7 = scmp.lt.s32.totalorder %s1882_s16, 6 }
  0x22   : > { %p262_p8 = pnand %p1511_p6, %p261_p7 }
  0x23   : > { %s268_s28 = sand.u32 (!%p262_p8), 1, %s1866_s12   ;;  %s1512_s29 = sshll.u32 (!%p262_p8), %s1874_s14, 6 }
  0x24   : > { %265 = sbr.rel (%p262_p8) target bundleno = 404 (0x194), region = 51  ;;  %p314_p9 = scmp.lt.s32.totalorder (!%p262_p8), %s1512_s29, 319 }
  0x25   : > { %s1666_s30 = smul.u32 (!%p262_p8), 208, %s268_s28  ;;  %p1515_p10 = scmp.ne.s32.totalorder (!%p262_p8), %s1874_s14, 0 }
  0x27   : > { %s2013_s8 = scalar_lea.vmem (!%p262_p8), [#allocation3], %s1666_s30 }
  0x2b   : > { %s2205_s29 = smov (!%p314_p9, %s1512_s29), 319  ;;  %344 = sbr.rel (%p1515_p10) target bundleno = 58 (0x3a), region = 59 }
  0x2c   : > { %s1627_s4 = sshll.u32 %s2205_s29, 3  ;;  %v1884_v26 = vmov (!%p1515_p10), 0.0  }
  0x2d   : > { %s2011_s7 = scalar_lea.vmem %s2195_s1, %s1627_s4  ;;  %345 = vst [vmem:[#allocation2] sm:$0xff] (!%p1515_p10), %v1884_v26  ;;  %346 = vst [vmem:[#allocation2 + $0x8] sm:$0xff] (!%p1515_p10), %v1884_v26 }
  0x2e   : > { %347 = vst [vmem:[#allocation2 + $0x10] sm:$0xff] (!%p1515_p10), %v1884_v26  ;;  %348 = vst [vmem:[#allocation2 + $0x18] sm:$0xff] (!%p1515_p10), %v1884_v26 }
  0x2f   : > { %349 = vst [vmem:[#allocation2 + $0x20] sm:$0xff] (!%p1515_p10), %v1884_v26  ;;  %350 = vst [vmem:[#allocation2 + $0x28] sm:$0xff] (!%p1515_p10), %v1884_v26 }
  0x30   : > { %351 = vst [vmem:[#allocation2 + $0x30] sm:$0xff] (!%p1515_p10), %v1884_v26  ;;  %352 = vst [vmem:[#allocation2 + $0x38] sm:$0xff] (!%p1515_p10), %v1884_v26 }
  0x31   : > { %353 = vst [vmem:[#allocation2 + $0x40] sm:$0xff] (!%p1515_p10), %v1884_v26  ;;  %354 = vst [vmem:[#allocation2 + $0x48] sm:$0xff] (!%p1515_p10), %v1884_v26 }
  0x32   : > { %355 = vst [vmem:[#allocation2 + $0x50] sm:$0xff] %v1884_v26  ;;  %356 = vst [vmem:[#allocation2 + $0x58] sm:$0xff] %v1884_v26 }
  0x33   : > { %357 = vst [vmem:[#allocation2 + $0x60] sm:$0xff] %v1884_v26  ;;  %358 = vst [vmem:[#allocation2 + $0x68] sm:$0xff] %v1884_v26 }
  0x34   : > { %359 = vst [vmem:[#allocation2 + $0x70] sm:$0xff] %v1884_v26  ;;  %360 = vst [vmem:[#allocation2 + $0x78] sm:$0xff] %v1884_v26 }
  0x35   : > { %361 = vst [vmem:[#allocation2 + $0x80] sm:$0xff] %v1884_v26  ;;  %362 = vst [vmem:[#allocation2 + $0x88] sm:$0xff] %v1884_v26 }
  0x36   : > { %363 = vst [vmem:[#allocation2 + $0x90] sm:$0xff] %v1884_v26  ;;  %364 = vst [vmem:[#allocation2 + $0x98] sm:$0xff] %v1884_v26 }
  0x37   : > { %365 = vst [vmem:[#allocation2 + $0xa0] sm:$0xff] %v1884_v26  ;;  %366 = vst [vmem:[#allocation2 + $0xa8] sm:$0xff] %v1884_v26 }
  0x38   : > { %367 = vst [vmem:[#allocation2 + $0xb0] sm:$0xff] %v1884_v26  ;;  %368 = vst [vmem:[#allocation2 + $0xb8] sm:$0xff] %v1884_v26 }
  0x39   : > { %369 = vst [vmem:[#allocation2 + $0xc0] sm:$0xff] %v1884_v26  ;;  %370 = vst [vmem:[#allocation2 + $0xc8] sm:$0xff] %v1884_v26 }
  0x3a PF: > { %v1708_v27 = vld [vmem:[%s2011_s7 + $0x4] ss:$8 sps:$4 sm:$0xff]   ;;  %v1712_v29 = vld [vmem:[%s2011_s7] ss:$8 sps:$4 sm:$0xff]   ;;  %v1714_v31 = vld [vmem:[%s2011_s7 + $0x14] ss:$8 sps:$4 sm:$0xff]  }
  0x3b   : > { %v1710_v28 = vld [vmem:[%s2011_s7 + $0x104] ss:$8 sps:$4 sm:$0xff]   ;;  %941 = vmatprep.subr.bf16.mxu1 %v1708_v27  ;;  %v1713_v30 = vld [vmem:[%s2011_s7 + $0x100] ss:$8 sps:$4 sm:$0xff]   ;;  %v1716_v32 = vld [vmem:[%s2011_s7 + $0x114] ss:$8 sps:$4 sm:$0xff]  }
  0x3c   : > { %1042 = vmatprep.subr.bf16.mxu0 %v1710_v28  ;;  %942 = vmatpush1.bf16.msra.mxu1 %v1712_v29  ;;  %v1718_v33 = vld [vmem:[%s2011_s7 + $0x10] ss:$8 sps:$4 sm:$0xff]   ;;  %v1720_v35 = vld [vmem:[%s2011_s7 + $0x24] ss:$8 sps:$4 sm:$0xff]   ;;  %v1724_v37 = vld [vmem:[%s2011_s7 + $0x20] ss:$8 sps:$4 sm:$0xff]  }
  0x3d   : > { %1043 = vmatpush1.bf16.msra.mxu0 %v1713_v30  ;;  %943 = vmatprep.subr.bf16.mxu1 %v1714_v31  ;;  %v1719_v34 = vld [vmem:[%s2011_s7 + $0x110] ss:$8 sps:$4 sm:$0xff]   ;;  %v1722_v36 = vld [vmem:[%s2011_s7 + $0x124] ss:$8 sps:$4 sm:$0xff]   ;;  %v1725_v38 = vld [vmem:[%s2011_s7 + $0x120] ss:$8 sps:$4 sm:$0xff]  }
  0x3e   : > { %1044 = vmatprep.subr.bf16.mxu0 %v1716_v32  ;;  %v1726_v39 = vld [vmem:[%s2011_s7 + $0x34] ss:$8 sps:$4 sm:$0xff]   ;;  %v1730_v41 = vld [vmem:[%s2011_s7 + $0x30] ss:$8 sps:$4 sm:$0xff]   ;;  %v1732_v43 = vld [vmem:[%s2011_s7 + $0x44] ss:$8 sps:$4 sm:$0xff]  }
  0x3f   : > { %v1728_v40 = vld [vmem:[%s2011_s7 + $0x134] ss:$8 sps:$4 sm:$0xff]   ;;  %v1731_v42 = vld [vmem:[%s2011_s7 + $0x130] ss:$8 sps:$4 sm:$0xff]   ;;  %v1734_v44 = vld [vmem:[%s2011_s7 + $0x144] ss:$8 sps:$4 sm:$0xff]  }
  0x40   : > { %944 = vmatpush1.bf16.msra.mxu1 %v1718_v33  ;;  %v1736_v45 = vld [vmem:[%s2011_s7 + $0x40] ss:$8 sps:$4 sm:$0xff]   ;;  %v1738_v47 = vld [vmem:[%s2011_s7 + $0x54] ss:$8 sps:$4 sm:$0xff]   ;;  %v1742_v49 = vld [vmem:[%s2011_s7 + $0x50] ss:$8 sps:$4 sm:$0xff]  }
  0x41   : > { %1045 = vmatpush1.bf16.msra.mxu0 %v1719_v34  ;;  %945 = vmatprep.subr.bf16.mxu1 %v1720_v35  ;;  %v1737_v46 = vld [vmem:[%s2011_s7 + $0x140] ss:$8 sps:$4 sm:$0xff]   ;;  %v1740_v48 = vld [vmem:[%s2011_s7 + $0x154] ss:$8 sps:$4 sm:$0xff]   ;;  %v1743_v50 = vld [vmem:[%s2011_s7 + $0x150] ss:$8 sps:$4 sm:$0xff]  }
  0x42   : > { %1046 = vmatprep.subr.bf16.mxu0 %v1722_v36  ;;  %v1744_v51 = vld [vmem:[%s2011_s7 + $0x64] ss:$8 sps:$4 sm:$0xff]   ;;  %v1748_v53 = vld [vmem:[%s2011_s7 + $0x60] ss:$8 sps:$4 sm:$0xff]   ;;  %v1750_v55 = vld [vmem:[%s2011_s7 + $0x74] ss:$8 sps:$4 sm:$0xff]  }
  0x43   : > { %v1746_v52 = vld [vmem:[%s2011_s7 + $0x164] ss:$8 sps:$4 sm:$0xff]   ;;  %v1749_v54 = vld [vmem:[%s2011_s7 + $0x160] ss:$8 sps:$4 sm:$0xff]   ;;  %v1752_v56 = vld [vmem:[%s2011_s7 + $0x174] ss:$8 sps:$4 sm:$0xff]  }
  0x44   : > { %946 = vmatpush1.bf16.msra.mxu1 %v1724_v37  ;;  %v1754_v57 = vld [vmem:[%s2011_s7 + $0x70] ss:$8 sps:$4 sm:$0xff]   ;;  %v1756_v59 = vld [vmem:[%s2011_s7 + $0x84] ss:$8 sps:$4 sm:$0xff]   ;;  %v1760_v61 = vld [vmem:[%s2011_s7 + $0x80] ss:$8 sps:$4 sm:$0xff]  }
  0x45   : > { %1047 = vmatpush1.bf16.msra.mxu0 %v1725_v38  ;;  %947 = vmatprep.subr.bf16.mxu1 %v1726_v39  ;;  %v1755_v58 = vld [vmem:[%s2011_s7 + $0x170] ss:$8 sps:$4 sm:$0xff]   ;;  %v1758_v60 = vld [vmem:[%s2011_s7 + $0x184] ss:$8 sps:$4 sm:$0xff]   ;;  %v1761_v62 = vld [vmem:[%s2011_s7 + $0x180] ss:$8 sps:$4 sm:$0xff]  }
  0x46   : > { %1048 = vmatprep.subr.bf16.mxu0 %v1728_v40  ;;  %v1762_v63 = vld [vmem:[%s2011_s7 + $0x94] ss:$8 sps:$4 sm:$0xff]   ;;  %v1766_v1 = vld [vmem:[%s2011_s7 + $0x90] ss:$8 sps:$4 sm:$0xff]   ;;  %v1768_v3 = vld [vmem:[%s2011_s7 + $0xa4] ss:$8 sps:$4 sm:$0xff]  }
  0x47   : > { %v1764_v0 = vld [vmem:[%s2011_s7 + $0x194] ss:$8 sps:$4 sm:$0xff]   ;;  %v1767_v2 = vld [vmem:[%s2011_s7 + $0x190] ss:$8 sps:$4 sm:$0xff]   ;;  %v1770_v4 = vld [vmem:[%s2011_s7 + $0x1a4] ss:$8 sps:$4 sm:$0xff]  }
  0x48   : > { %948 = vmatpush1.bf16.msra.mxu1 %v1730_v41  ;;  %v1772_v5 = vld [vmem:[%s2011_s7 + $0xa0] ss:$8 sps:$4 sm:$0xff]   ;;  %v1774_v7 = vld [vmem:[%s2011_s7 + $0xb4] ss:$8 sps:$4 sm:$0xff]   ;;  %v1778_v9 = vld [vmem:[%s2011_s7 + $0xb0] ss:$8 sps:$4 sm:$0xff]  }
  0x49   : > { %1049 = vmatpush1.bf16.msra.mxu0 %v1731_v42  ;;  %949 = vmatprep.subr.bf16.mxu1 %v1732_v43  ;;  %v1773_v6 = vld [vmem:[%s2011_s7 + $0x1a0] ss:$8 sps:$4 sm:$0xff]   ;;  %v1776_v8 = vld [vmem:[%s2011_s7 + $0x1b4] ss:$8 sps:$4 sm:$0xff]   ;;  %v1779_v10 = vld [vmem:[%s2011_s7 + $0x1b0] ss:$8 sps:$4 sm:$0xff]  }
  0x4a   : > { %1050 = vmatprep.subr.bf16.mxu0 %v1734_v44  ;;  %v1780_v11 = vld [vmem:[%s2011_s7 + $0xc4] ss:$8 sps:$4 sm:$0xff]   ;;  %v1784_v15 = vld [vmem:[%s2011_s7 + $0xc0] ss:$8 sps:$4 sm:$0xff]   ;;  %v1786_v17 = vld [vmem:[%s2011_s7 + $0xd4] ss:$8 sps:$4 sm:$0xff]  }
  0x4b   : > { %v1806_v12 = vld [vmem:[%s2013_s8 + $0x4] ss:$16 sps:$4 sm:$0xff]   ;;  %v1809_v14 = vld [vmem:[%s2013_s8 + $0xc] ss:$16 sps:$4 sm:$0xff]   ;;  %v1785_v16 = vld [vmem:[%s2011_s7 + $0x1c0] ss:$8 sps:$4 sm:$0xff]  }
  0x4c   : > { %950 = vmatpush1.bf16.msra.mxu1 %v1736_v45  ;;  %v1782_v13 = vld [vmem:[%s2011_s7 + $0x1c4] ss:$8 sps:$4 sm:$0xff]   ;;  %973 = vmatprep.mubr.bf16.mxu1 %v1806_v12  ;;  %v1788_v18 = vld [vmem:[%s2011_s7 + $0x1d4] ss:$8 sps:$4 sm:$0xff]   ;;  %v1790_v19 = vld [vmem:[%s2011_s7 + $0xd0] ss:$8 sps:$4 sm:$0xff]  }
  0x4d   : > { %1051 = vmatpush1.bf16.msra.mxu0 %v1737_v46  ;;  %951 = vmatprep.subr.bf16.mxu1 %v1738_v47  ;;  %v1791_v20 = vld [vmem:[%s2011_s7 + $0x1d0] ss:$8 sps:$4 sm:$0xff]   ;;  %v1792_v21 = vld [vmem:[%s2011_s7 + $0xe4] ss:$8 sps:$4 sm:$0xff]   ;;  %v1796_v23 = vld [vmem:[%s2011_s7 + $0xe0] ss:$8 sps:$4 sm:$0xff]  }
  0x4e   : > { %1052 = vmatprep.subr.bf16.mxu0 %v1740_v48  ;;  %1074 = vmatprep.mubr.bf16.mxu0 %v1809_v14  ;;  %v1794_v22 = vld [vmem:[%s2011_s7 + $0x1e4] ss:$8 sps:$4 sm:$0xff]   ;;  %v1797_v24 = vld [vmem:[%s2011_s7 + $0x1e0] ss:$8 sps:$4 sm:$0xff]   ;;  %v1798_v25 = vld [vmem:[%s2011_s7 + $0xf4] ss:$8 sps:$4 sm:$0xff]  }
  0x4f   : > { %v1800_v26 = vld [vmem:[%s2011_s7 + $0x1f4] ss:$8 sps:$4 sm:$0xff]   ;;  %v1802_v27 = vld [vmem:[%s2011_s7 + $0xf0] ss:$8 sps:$4 sm:$0xff]   ;;  %v375_v14 = vld [vmem:[#allocation2 + $0x20] sm:$0xff]  ;;  %p1608_p11 = scmp.ne.s32.totalorder %s1874_s14, 4 }
  0x50   : > { %952 = vmatpush1.bf16.msra.mxu1 %v1742_v49  ;;  %v1803_v28 = vld [vmem:[%s2011_s7 + $0x1f0] ss:$8 sps:$4 sm:$0xff]   ;;  %v1810_v31 = vld [vmem:[%s2013_s8 + $0x24] ss:$16 sps:$4 sm:$0xff]   ;;  %v1812_v32 = vld [vmem:[%s2013_s8 + $0x2c] ss:$16 sps:$4 sm:$0xff]  }
  0x51   : > { %1053 = vmatpush1.bf16.msra.mxu0 %v1743_v50  ;;  %953 = vmatprep.subr.bf16.mxu1 %v1744_v51  ;;  %v1804_v29 = vld [vmem:[%s2013_s8] ss:$16 sps:$4 sm:$0xff]   ;;  %v1807_v30 = vld [vmem:[%s2013_s8 + $0x8] ss:$16 sps:$4 sm:$0xff]   ;;  %v1816_v35 = vld [vmem:[%s2013_s8 + $0x44] ss:$16 sps:$4 sm:$0xff]  }
  0x52   : > { %1054 = vmatprep.subr.bf16.mxu0 %v1746_v52  ;;  %v1814_v33 = vld [vmem:[%s2013_s8 + $0x20] ss:$16 sps:$4 sm:$0xff]   ;;  %v1815_v34 = vld [vmem:[%s2013_s8 + $0x28] ss:$16 sps:$4 sm:$0xff]   ;;  %v1818_v36 = vld [vmem:[%s2013_s8 + $0x4c] ss:$16 sps:$4 sm:$0xff]  }
  0x53   : > { %v1820_v37 = vld [vmem:[%s2013_s8 + $0x40] ss:$16 sps:$4 sm:$0xff]   ;;  %v1821_v38 = vld [vmem:[%s2013_s8 + $0x48] ss:$16 sps:$4 sm:$0xff]   ;;  %v1822_v39 = vld [vmem:[%s2013_s8 + $0x64] ss:$16 sps:$4 sm:$0xff]  }
  0x54   : > { %954 = vmatpush1.bf16.msra.mxu1 %v1748_v53  ;;  %v1824_v40 = vld [vmem:[%s2013_s8 + $0x6c] ss:$16 sps:$4 sm:$0xff]   ;;  %v1826_v41 = vld [vmem:[%s2013_s8 + $0x60] ss:$16 sps:$4 sm:$0xff]   ;;  %v1827_v42 = vld [vmem:[%s2013_s8 + $0x68] ss:$16 sps:$4 sm:$0xff]  }
  0x55   : > { %1055 = vmatpush1.bf16.msra.mxu0 %v1749_v54  ;;  %955 = vmatprep.subr.bf16.mxu1 %v1750_v55  ;;  %v1828_v43 = vld [vmem:[%s2013_s8 + $0x84] ss:$16 sps:$4 sm:$0xff]   ;;  %v1830_v44 = vld [vmem:[%s2013_s8 + $0x8c] ss:$16 sps:$4 sm:$0xff]   ;;  %v1832_v45 = vld [vmem:[%s2013_s8 + $0x80] ss:$16 sps:$4 sm:$0xff]  }
  0x56   : > { %1056 = vmatprep.subr.bf16.mxu0 %v1752_v56  ;;  %v1833_v46 = vld [vmem:[%s2013_s8 + $0x88] ss:$16 sps:$4 sm:$0xff]   ;;  %v1834_v47 = vld [vmem:[%s2013_s8 + $0xa4] ss:$16 sps:$4 sm:$0xff]   ;;  %v1836_v48 = vld [vmem:[%s2013_s8 + $0xac] ss:$16 sps:$4 sm:$0xff]  }
  0x57   : > { %v421_v49 = vld [vmem:[%s2013_s8 + $0xc0] sm:$0xff]  ;;  %v422_v50 = vld [vmem:[%s2013_s8 + $0xc8] sm:$0xff] }
  0x58   : > { %956 = vmatpush1.bf16.msra.mxu1 %v1754_v57  ;;  %v1838_v51 = vld [vmem:[%s2013_s8 + $0xa0] ss:$16 sps:$4 sm:$0xff]   ;;  %v1839_v52 = vld [vmem:[%s2013_s8 + $0xa8] ss:$16 sps:$4 sm:$0xff]   ;;  %v1541_v53 = vcombine.high %v421_v49, %v421_v49  ;;  %v1543_v54 = vcombine.high %v422_v50, %v422_v50  ;;  %v1540_v55 = vcombine.low %v421_v49, %v421_v49  ;;  %v1542_v56 = vcombine.low %v422_v50, %v422_v50 }
  0x59   : > { %1057 = vmatpush1.bf16.msra.mxu0 %v1755_v58  ;;  %957 = vmatprep.subr.bf16.mxu1 %v1756_v59  ;;  %v371_v58 = vld [vmem:[#allocation2] sm:$0xff] }
  0x5a   : > { %1058 = vmatprep.subr.bf16.mxu0 %v1758_v60 }
  0x5c   : > { %958 = vmatpush1.bf16.msra.mxu1 %v1760_v61 }
  0x5d   : > { %1059 = vmatpush1.bf16.msra.mxu0 %v1761_v62  ;;  %959 = vmatprep.subr.bf16.mxu1 %v1762_v63  ;;  %v372_v62 = vld [vmem:[#allocation2 + $0x8] sm:$0xff] }
  0x5e   : > { %1060 = vmatprep.subr.bf16.mxu0 %v1764_v0 }
  0x60   : > { %960 = vmatpush1.bf16.msra.mxu1 %v1766_v1 }
  0x61   : > { %1061 = vmatpush1.bf16.msra.mxu0 %v1767_v2  ;;  %961 = vmatprep.subr.bf16.mxu1 %v1768_v3  ;;  %v373_v2 = vld [vmem:[#allocation2 + $0x10] sm:$0xff] }
  0x62   : > { %1062 = vmatprep.subr.bf16.mxu0 %v1770_v4 }
  0x64   : > { %962 = vmatpush1.bf16.msra.mxu1 %v1772_v5 }
  0x65   : > { %1063 = vmatpush1.bf16.msra.mxu0 %v1773_v6  ;;  %963 = vmatprep.subr.bf16.mxu1 %v1774_v7  ;;  %v374_v7 = vld [vmem:[#allocation2 + $0x18] sm:$0xff] }
  0x66   : > { %1064 = vmatprep.subr.bf16.mxu0 %v1776_v8 }
  0x68   : > { %964 = vmatpush1.bf16.msra.mxu1 %v1778_v9 }
  0x69   : > { %1065 = vmatpush1.bf16.msra.mxu0 %v1779_v10  ;;  %965 = vmatprep.subr.bf16.mxu1 %v1780_v11 }
  0x6a   : > { %1066 = vmatprep.subr.bf16.mxu0 %v1782_v13 }
  0x6c   : > { %966 = vmatpush1.bf16.msra.mxu1 %v1784_v15 }
  0x6d   : > { %1067 = vmatpush1.bf16.msra.mxu0 %v1785_v16  ;;  %967 = vmatprep.subr.bf16.mxu1 %v1786_v17 }
  0x6e   : > { %1068 = vmatprep.subr.bf16.mxu0 %v1788_v18  ;;  %v376_v18 = vld [vmem:[#allocation2 + $0x28] sm:$0xff] }
  0x70   : > { %968 = vmatpush1.bf16.msra.mxu1 %v1790_v19 }
  0x71   : > { %1069 = vmatpush1.bf16.msra.mxu0 %v1791_v20  ;;  %969 = vmatprep.subr.bf16.mxu1 %v1792_v21 }
  0x72   : > { %1070 = vmatprep.subr.bf16.mxu0 %v1794_v22  ;;  %v377_v22 = vld [vmem:[#allocation2 + $0x30] sm:$0xff] }
  0x74   : > { %970 = vmatpush1.bf16.msra.mxu1 %v1796_v23 }
  0x75   : > { %1071 = vmatpush1.bf16.msra.mxu0 %v1797_v24  ;;  %971 = vmatprep.subr.bf16.mxu1 %v1798_v25 }
  0x76   : > { %1072 = vmatprep.subr.bf16.mxu0 %v1800_v26 }
  0x78   : > { %972 = vmatpush1.bf16.msra.mxu1 %v1802_v27  ;;  %v378_v27 = vld [vmem:[#allocation2 + $0x38] sm:$0xff] }
  0x79   : > { %1073 = vmatpush1.bf16.msra.mxu0 %v1803_v28 }
  0x7b   : > { %974 = vmatmul.mubr.bf16.vlgmr.msra.gmra.mrb[0].mxu1 %v1804_v29 }
  0x7c   : > { %1075 = vmatmul.mubr.bf16.vlgmr.msra.gmra.mrb[0].mxu0 %v1807_v30  ;;  %983 = vmatprep.mubr.bf16.mxu1 %v1810_v31 }
  0x7d   : > { %1084 = vmatprep.mubr.bf16.mxu0 %v1812_v32 }
  0x83   : > { %984 = vmatmul.mubr.bf16.gmra.mrb[4].mxu1 %v1814_v33 }
  0x84   : > { %1085 = vmatmul.mubr.bf16.gmra.mrb[4].mxu0 %v1815_v34  ;;  %993 = vmatprep.mubr.bf16.mxu1 %v1816_v35  ;;  %v379_v34 = vld [vmem:[#allocation2 + $0x40] sm:$0xff] }
  0x85   : > { %1094 = vmatprep.mubr.bf16.mxu0 %v1818_v36 }
  0x8b   : > { %994 = vmatmul.mubr.bf16.gmra.mrb[8].mxu1 %v1820_v37 }
  0x8c   : > { %1095 = vmatmul.mubr.bf16.gmra.mrb[8].mxu0 %v1821_v38  ;;  %1003 = vmatprep.mubr.bf16.mxu1 %v1822_v39  ;;  %v380_v38 = vld [vmem:[#allocation2 + $0x48] sm:$0xff] }
  0x8d   : > { %1104 = vmatprep.mubr.bf16.mxu0 %v1824_v40 }
  0x93   : > { %1004 = vmatmul.mubr.bf16.gmra.mrb[12].mxu1 %v1826_v41 }
  0x94   : > { %1105 = vmatmul.mubr.bf16.gmra.mrb[12].mxu0 %v1827_v42  ;;  %1013 = vmatprep.mubr.bf16.mxu1 %v1828_v43  ;;  %v381_v42 = vld [vmem:[#allocation2 + $0x50] sm:$0xff] }
  0x95   : > { %1114 = vmatprep.mubr.bf16.mxu0 %v1830_v44 }
  0x9b   : > { %1014 = vmatmul.mubr.bf16.gmra.mrb[16].mxu1 %v1832_v45 }
  0x9c   : > { %1115 = vmatmul.mubr.bf16.gmra.mrb[16].mxu0 %v1833_v46  ;;  %1023 = vmatprep.mubr.bf16.mxu1 %v1834_v47  ;;  %v382_v47 = vld [vmem:[#allocation2 + $0x58] sm:$0xff] }
  0x9d   : > { %1124 = vmatprep.mubr.bf16.mxu0 %v1836_v48 }
  0xa3   : > { %1024 = vmatmul.mubr.bf16.gmra.mrb[20].mxu1 %v1838_v51 }
  0xa4   : > { %1125 = vmatmul.mubr.bf16.gmra.mrb[20].mxu0 %v1839_v52  ;;  %1033 = vmatprep.mubr.bf16.mxu1 %v1541_v53 }
  0xa5   : > { %1134 = vmatprep.mubr.bf16.mxu0 %v1543_v54  ;;  %v383_v54 = vld [vmem:[#allocation2 + $0x60] sm:$0xff] }
  0xab   : > { %1034 = vmatmul.mubr.bf16.gmra.mrb[24].mxu1 %v1540_v55 }
  0xac   : > { %1135 = vmatmul.mubr.bf16.gmra.mrb[24].mxu0 %v1542_v56 }
 0x14e   : > { %v975_v57 = vpop.f32.mrb[0].mxu1 }
 0x14f   : > { %v1076_v59 = vpop.f32.mrb[0].mxu0  ;;  %v977_v61 = vpop.f32.mrb[1].mxu1 }
 0x150   : > { %v1077_v60 = vadd.f32 %v1076_v59, %v975_v57  ;;  %v1078_v63 = vpop.f32.mrb[1].mxu0  ;;  %v979_v1 = vpop.f32.mrb[2].mxu1 }
 0x151   : > { %v1079_v0 = vadd.f32 %v1078_v63, %v977_v61  ;;  %v1080_v3 = vpop.f32.mrb[2].mxu0  ;;  %v981_v6 = vpop.f32.mrb[3].mxu1 }
 0x152   : > { %v1143_v4 = vadd.f32 %v1077_v60, %v371_v58  ;;  %v1081_v5 = vadd.f32 %v1080_v3, %v979_v1  ;;  %v1082_v8 = vpop.f32.mrb[3].mxu0  ;;  %v384_v58 = vld [vmem:[#allocation2 + $0x68] sm:$0xff]  ;;  %v386_v3 = vld [vmem:[#allocation2 + $0x78] sm:$0xff] }
 0x153   : > { %v1144_v9 = vadd.f32 %v1079_v0, %v372_v62  ;;  %v1083_v10 = vadd.f32 %v1082_v8, %v981_v6  ;;  %v385_v62 = vld [vmem:[#allocation2 + $0x70] sm:$0xff] }
 0x154   : > { %1169 = vst [vmem:[#allocation2] sm:$0xff] %v1143_v4  ;;  %v1145_v11 = vadd.f32 %v1081_v5, %v373_v2 }
 0x155   : > { %1170 = vst [vmem:[#allocation2 + $0x8] sm:$0xff] %v1144_v9  ;;  %v1146_v12 = vadd.f32 %v1083_v10, %v374_v7  ;;  %v387_v10 = vld [vmem:[#allocation2 + $0x80] sm:$0xff] }
 0x156   : > { %1171 = vst [vmem:[#allocation2 + $0x10] sm:$0xff] %v1145_v11  ;;  %v985_v13 = vpop.f32.mrb[4].mxu1 }
 0x157   : > { %1172 = vst [vmem:[#allocation2 + $0x18] sm:$0xff] %v1146_v12  ;;  %v1086_v15 = vpop.f32.mrb[4].mxu0  ;;  %v987_v17 = vpop.f32.mrb[5].mxu1 }
 0x158   : > { %v1087_v16 = vadd.f32 %v1086_v15, %v985_v13  ;;  %v1088_v19 = vpop.f32.mrb[5].mxu0  ;;  %v989_v21 = vpop.f32.mrb[6].mxu1 }
 0x159   : > { %v1089_v20 = vadd.f32 %v1088_v19, %v987_v17  ;;  %v1090_v23 = vpop.f32.mrb[6].mxu0  ;;  %v991_v26 = vpop.f32.mrb[7].mxu1 }
 0x15a   : > { %v1147_v24 = vadd.f32 %v1087_v16, %v375_v14  ;;  %v1091_v25 = vadd.f32 %v1090_v23, %v989_v21  ;;  %v1092_v28 = vpop.f32.mrb[7].mxu0  ;;  %v388_v14 = vld [vmem:[#allocation2 + $0x88] sm:$0xff]  ;;  %v390_v23 = vld [vmem:[#allocation2 + $0x98] sm:$0xff] }
 0x15b   : > { %v1148_v29 = vadd.f32 %v1089_v20, %v376_v18  ;;  %v1093_v30 = vadd.f32 %v1092_v28, %v991_v26  ;;  %v389_v18 = vld [vmem:[#allocation2 + $0x90] sm:$0xff] }
 0x15c   : > { %1173 = vst [vmem:[#allocation2 + $0x20] sm:$0xff] %v1147_v24  ;;  %v1149_v31 = vadd.f32 %v1091_v25, %v377_v22 }
 0x15d   : > { %1174 = vst [vmem:[#allocation2 + $0x28] sm:$0xff] %v1148_v29  ;;  %v1150_v32 = vadd.f32 %v1093_v30, %v378_v27  ;;  %v391_v30 = vld [vmem:[#allocation2 + $0xa0] sm:$0xff] }
 0x15e   : > { %1175 = vst [vmem:[#allocation2 + $0x30] sm:$0xff] %v1149_v31  ;;  %v995_v33 = vpop.f32.mrb[8].mxu1 }
 0x15f   : > { %1176 = vst [vmem:[#allocation2 + $0x38] sm:$0xff] %v1150_v32  ;;  %v1096_v35 = vpop.f32.mrb[8].mxu0  ;;  %v997_v37 = vpop.f32.mrb[9].mxu1 }
 0x160   : > { %v1097_v36 = vadd.f32 %v1096_v35, %v995_v33  ;;  %v1098_v39 = vpop.f32.mrb[9].mxu0  ;;  %v999_v41 = vpop.f32.mrb[10].mxu1 }
 0x161   : > { %v1099_v40 = vadd.f32 %v1098_v39, %v997_v37  ;;  %v1100_v43 = vpop.f32.mrb[10].mxu0  ;;  %v1001_v46 = vpop.f32.mrb[11].mxu1 }
 0x162   : > { %v1151_v44 = vadd.f32 %v1097_v36, %v379_v34  ;;  %v1101_v45 = vadd.f32 %v1100_v43, %v999_v41  ;;  %v1102_v48 = vpop.f32.mrb[11].mxu0  ;;  %v392_v34 = vld [vmem:[#allocation2 + $0xa8] sm:$0xff]  ;;  %v394_v43 = vld [vmem:[#allocation2 + $0xb8] sm:$0xff] }
 0x163   : > { %v1152_v49 = vadd.f32 %v1099_v40, %v380_v38  ;;  %v1103_v50 = vadd.f32 %v1102_v48, %v1001_v46  ;;  %v393_v38 = vld [vmem:[#allocation2 + $0xb0] sm:$0xff] }
 0x164   : > { %1177 = vst [vmem:[#allocation2 + $0x40] sm:$0xff] %v1151_v44  ;;  %v1153_v51 = vadd.f32 %v1101_v45, %v381_v42 }
 0x165   : > { %1178 = vst [vmem:[#allocation2 + $0x48] sm:$0xff] %v1152_v49  ;;  %v1154_v52 = vadd.f32 %v1103_v50, %v382_v47  ;;  %v395_v50 = vld [vmem:[#allocation2 + $0xc0] sm:$0xff] }
 0x166   : > { %1179 = vst [vmem:[#allocation2 + $0x50] sm:$0xff] %v1153_v51  ;;  %v1005_v53 = vpop.f32.mrb[12].mxu1 }
 0x167   : > { %1180 = vst [vmem:[#allocation2 + $0x58] sm:$0xff] %v1154_v52  ;;  %v1106_v55 = vpop.f32.mrb[12].mxu0  ;;  %v1007_v57 = vpop.f32.mrb[13].mxu1 }
 0x168   : > { %v1107_v56 = vadd.f32 %v1106_v55, %v1005_v53  ;;  %v1108_v59 = vpop.f32.mrb[13].mxu0  ;;  %v1009_v61 = vpop.f32.mrb[14].mxu1 }
 0x169   : > { %v1109_v60 = vadd.f32 %v1108_v59, %v1007_v57  ;;  %v1110_v63 = vpop.f32.mrb[14].mxu0  ;;  %v1011_v2 = vpop.f32.mrb[15].mxu1 }
 0x16a   : > { %v1155_v0 = vadd.f32 %v1107_v56, %v383_v54  ;;  %v1111_v1 = vadd.f32 %v1110_v63, %v1009_v61  ;;  %v1112_v4 = vpop.f32.mrb[15].mxu0  ;;  %v396_v54 = vld [vmem:[#allocation2 + $0xc8] sm:$0xff]  ;;  %v1227_v63 = vlaneseq (!%p1608_p11) }
 0x16b   : > { %v1156_v5 = vadd.f32 %v1109_v60, %v384_v58  ;;  %v1113_v6 = vadd.f32 %v1112_v4, %v1011_v2  ;;  %v1199_v2 = vld [vmem:[#allocation2] sm:$0xff] (!%p1608_p11) }
 0x16c   : > { %1181 = vst [vmem:[#allocation2 + $0x60] sm:$0xff] %v1155_v0  ;;  %v1157_v7 = vadd.f32 %v1111_v1, %v385_v62  ;;  %v1228_v0 = vshrl.u32 (!%p1608_p11), %v1227_v63, 7  ;;  %v1225_v1 = vld [vmem:[%s2196_s2] sm:$0x3] (!%p1608_p11) }
 0x16d   : > { %1182 = vst [vmem:[#allocation2 + $0x68] sm:$0xff] %v1156_v5  ;;  %v1158_v8 = vadd.f32 %v1113_v6, %v386_v3  ;;  %v1200_v3 = vld [vmem:[#allocation2 + $0x8] sm:$0xff] (!%p1608_p11)  ;;  %v1201_v6 = vld [vmem:[#allocation2 + $0x10] sm:$0xff] (!%p1608_p11) }
 0x16e   : > { %1183 = vst [vmem:[#allocation2 + $0x70] sm:$0xff] %v1157_v7  ;;  %v1015_v9 = vpop.f32.mrb[16].mxu1  ;;  %v1229_v4 = vsub.s32 (!%p1608_p11), 0, %v1228_v0  ;;  %v1233_v5 = vsub.s32 (!%p1608_p11), 1, %v1228_v0  ;;  %v1202_v7 = vld [vmem:[#allocation2 + $0x18] sm:$0xff] (!%p1608_p11) }
 0x16f   : > { %1184 = vst [vmem:[#allocation2 + $0x78] sm:$0xff] %v1158_v8  ;;  %v1116_v11 = vpop.f32.mrb[16].mxu0  ;;  %v1017_v13 = vpop.f32.mrb[17].mxu1  ;;  %v1203_v8 = vld [vmem:[#allocation2 + $0x20] sm:$0xff] (!%p1608_p11) }
 0x170   : > { %v1117_v12 = vadd.f32 %v1116_v11, %v1015_v9  ;;  %v1118_v15 = vpop.f32.mrb[17].mxu0  ;;  %v1019_v17 = vpop.f32.mrb[18].mxu1  ;;  %v2110_v9 = vrot.slane (!%p1608_p11), %v1225_v1, %v1229_v4  ;;  %v1204_v11 = vld [vmem:[#allocation2 + $0x28] sm:$0xff] (!%p1608_p11) }
 0x171   : > { %v1119_v16 = vadd.f32 %v1118_v15, %v1017_v13  ;;  %v1120_v19 = vpop.f32.mrb[18].mxu0  ;;  %v1021_v22 = vpop.f32.mrb[19].mxu1  ;;  %v1206_v13 = vld [vmem:[#allocation2 + $0x38] sm:$0xff] (!%p1608_p11) }
 0x172   : > { %v1159_v20 = vadd.f32 %v1117_v12, %v387_v10  ;;  %v1121_v21 = vadd.f32 %v1120_v19, %v1019_v17  ;;  %v1122_v24 = vpop.f32.mrb[19].mxu0  ;;  %v2112_v10 = vrot.slane (!%p1608_p11), %v1225_v1, %v1233_v5  ;;  %v1205_v12 = vld [vmem:[#allocation2 + $0x30] sm:$0xff] (!%p1608_p11) }
 0x173   : > { %v1160_v25 = vadd.f32 %v1119_v16, %v388_v14  ;;  %v1123_v26 = vadd.f32 %v1122_v24, %v1021_v22  ;;  %v1237_v14 = vadd.f32 (!%p1608_p11), %v2110_v9, %v1199_v2  ;;  %v1239_v16 = vadd.f32 (!%p1608_p11), %v2110_v9, %v1201_v6  ;;  %v1207_v22 = vld [vmem:[#allocation2 + $0x40] sm:$0xff] (!%p1608_p11) }
 0x174   : > { %1185 = vst [vmem:[#allocation2 + $0x80] sm:$0xff] %v1159_v20  ;;  %v1161_v27 = vadd.f32 %v1121_v21, %v389_v18  ;;  %v1238_v15 = vadd.f32 (!%p1608_p11), %v2112_v10, %v1200_v3  ;;  %v1240_v17 = vadd.f32 (!%p1608_p11), %v2112_v10, %v1202_v7  ;;  %v1241_v18 = vadd.f32 (!%p1608_p11), %v2110_v9, %v1203_v8 }
 0x175   : > { %1186 = vst [vmem:[#allocation2 + $0x88] sm:$0xff] %v1160_v25  ;;  %v1162_v28 = vadd.f32 %v1123_v26, %v390_v23  ;;  %v1242_v19 = vadd.f32 (!%p1608_p11), %v2112_v10, %v1204_v11  ;;  %v1243_v20 = vadd.f32 (!%p1608_p11), %v2110_v9, %v1205_v12  ;;  %v1244_v21 = vadd.f32 (!%p1608_p11), %v2112_v10, %v1206_v13  ;;  %v1208_v23 = vld [vmem:[#allocation2 + $0x48] sm:$0xff] (!%p1608_p11) }
 0x176   : > { %1187 = vst [vmem:[#allocation2 + $0x90] sm:$0xff] %v1161_v27  ;;  %v1025_v29 = vpop.f32.mrb[20].mxu1  ;;  %v1263_v24 = vmax.f32 (!%p1608_p11), %v1237_v14, 0.0  ;;  %v1264_v25 = vmax.f32 (!%p1608_p11), %v1238_v15, 0.0  ;;  %v1265_v26 = vmax.f32 (!%p1608_p11), %v1239_v16, 0.0  ;;  %v1266_v27 = vmax.f32 (!%p1608_p11), %v1240_v17, 0.0 }
 0x177   : > { %1188 = vst [vmem:[#allocation2 + $0x98] sm:$0xff] %v1162_v28  ;;  %v1126_v31 = vpop.f32.mrb[20].mxu0  ;;  %v1027_v33 = vpop.f32.mrb[21].mxu1  ;;  %v1209_v28 = vld [vmem:[#allocation2 + $0x50] sm:$0xff] (!%p1608_p11) }
 0x178   : > { %v1127_v32 = vadd.f32 %v1126_v31, %v1025_v29  ;;  %v1128_v35 = vpop.f32.mrb[21].mxu0  ;;  %v1029_v37 = vpop.f32.mrb[22].mxu1  ;;  %v1210_v29 = vld [vmem:[#allocation2 + $0x58] sm:$0xff] (!%p1608_p11)  ;;  %v1268_v31 = vmax.f32 (!%p1608_p11), %v1242_v19, 0.0 }
 0x179   : > { %v1129_v36 = vadd.f32 %v1128_v35, %v1027_v33  ;;  %v1130_v39 = vpop.f32.mrb[22].mxu0  ;;  %v1031_v42 = vpop.f32.mrb[23].mxu1  ;;  %v1270_v33 = vmax.f32 (!%p1608_p11), %v1244_v21, 0.0  ;;  %v1212_v35 = vld [vmem:[#allocation2 + $0x68] sm:$0xff] (!%p1608_p11) }
 0x17a   : > { %v1163_v40 = vadd.f32 %v1127_v32, %v391_v30  ;;  %v1131_v41 = vadd.f32 %v1130_v39, %v1029_v37  ;;  %v1132_v44 = vpop.f32.mrb[23].mxu0  ;;  %v1267_v30 = vmax.f32 (!%p1608_p11), %v1241_v18, 0.0  ;;  %v1269_v32 = vmax.f32 (!%p1608_p11), %v1243_v20, 0.0 }
 0x17b   : > { %v1164_v45 = vadd.f32 %v1129_v36, %v392_v34  ;;  %v1133_v46 = vadd.f32 %v1132_v44, %v1031_v42  ;;  %v1211_v34 = vld [vmem:[#allocation2 + $0x60] sm:$0xff] (!%p1608_p11)  ;;  %v1628_v36 = vpack.c.bf16 (!%p1608_p11), %v1264_v25, %v1263_v24  ;;  %v1629_v37 = vpack.c.bf16 (!%p1608_p11), %v1266_v27, %v1265_v26 }
 0x17c   : > { %1189 = vst [vmem:[#allocation2 + $0xa0] sm:$0xff] %v1163_v40  ;;  %v1165_v47 = vadd.f32 %v1131_v41, %v393_v38  ;;  %v1245_v38 = vadd.f32 (!%p1608_p11), %v2110_v9, %v1207_v22  ;;  %v1246_v39 = vadd.f32 (!%p1608_p11), %v2112_v10, %v1208_v23  ;;  %v1213_v40 = vld [vmem:[#allocation2 + $0x70] sm:$0xff] (!%p1608_p11)  ;;  %v1214_v41 = vld [vmem:[#allocation2 + $0x78] sm:$0xff] (!%p1608_p11)  ;;  %v1630_v42 = vpack.c.bf16 (!%p1608_p11), %v1268_v31, %v1267_v30 }
 0x17d   : > { %1190 = vst [vmem:[#allocation2 + $0xa8] sm:$0xff] %v1164_v45  ;;  %v1166_v48 = vadd.f32 %v1133_v46, %v394_v43  ;;  %v1631_v43 = vpack.c.bf16 (!%p1608_p11), %v1270_v33, %v1269_v32  ;;  %v1247_v44 = vadd.f32 (!%p1608_p11), %v2110_v9, %v1209_v28  ;;  %v1248_v45 = vadd.f32 (!%p1608_p11), %v2112_v10, %v1210_v29  ;;  %v1215_v46 = vld [vmem:[#allocation2 + $0x80] sm:$0xff] (!%p1608_p11) }
 0x17e   : > { %1191 = vst [vmem:[#allocation2 + $0xb0] sm:$0xff] %v1165_v47  ;;  %v1035_v49 = vpop.f32.mrb[24].mxu1  ;;  %1369 = vst [vmem:[%s2197_s3] sm:$0xff] (!%p1608_p11), %v1628_v36  ;;  %v1271_v47 = vmax.f32 (!%p1608_p11), %v1245_v38, 0.0 }
 0x17f   : > { %1192 = vst [vmem:[#allocation2 + $0xb8] sm:$0xff] %v1166_v48  ;;  %v1136_v51 = vpop.f32.mrb[24].mxu0  ;;  %v1037_v53 = vpop.f32.mrb[25].mxu1  ;;  %1198 = sbr.rel (%p1608_p11) target bundleno = 404 (0x194), region = 63  ;;  %1370 = vst [vmem:[%s2197_s3 + $0x8] sm:$0xff] (!%p1608_p11), %v1629_v37  ;;  %v1272_v48 = vmax.f32 (!%p1608_p11), %v1246_v39, 0.0 }
 0x180   : > { %v1137_v52 = vadd.f32 %v1136_v51, %v1035_v49  ;;  %v1138_v55 = vpop.f32.mrb[25].mxu0  ;;  %v1039_v57 = vpop.f32.mrb[26].mxu1  ;;  %v1249_v49 = vadd.f32 (!%p1608_p11), %v2110_v9, %v1211_v34  ;;  %v1216_v51 = vld [vmem:[#allocation2 + $0x88] sm:$0xff] (!%p1608_p11)  ;;  %1371 = vst [vmem:[%s2197_s3 + $0x10] sm:$0xff] (!%p1608_p11), %v1630_v42  ;;  %1372 = vst [vmem:[%s2197_s3 + $0x18] sm:$0xff] (!%p1608_p11), %v1631_v43 }
 0x181   : > { %v1139_v56 = vadd.f32 %v1138_v55, %v1037_v53  ;;  %v1140_v58 = vpop.f32.mrb[26].mxu0  ;;  %v1040_v60 = vpop.f32.mrb[27].mxu1  ;;  %v1274_v53 = vmax.f32 (!%p1608_p11), %v1248_v45, 0.0  ;;  %v1252_v55 = vadd.f32 (!%p1608_p11), %v2112_v10, %v1214_v41  ;;  %v1218_v57 = vld [vmem:[#allocation2 + $0x98] sm:$0xff] (!%p1608_p11)  ;;  %v1254_v3 = vadd.f32 (!%p1608_p11), %v2112_v10, %v1216_v51 }
 0x182   : > { %v1167_v59 = vadd.f32 %v1137_v52, %v395_v50  ;;  %v1141_v61 = vpop.f32.mrb[27].mxu0  ;;  %v1250_v50 = vadd.f32 (!%p1608_p11), %v2112_v10, %v1212_v35  ;;  %v1273_v52 = vmax.f32 (!%p1608_p11), %v1247_v44, 0.0  ;;  %v1632_v58 = vpack.c.bf16 (!%p1608_p11), %v1272_v48, %v1271_v47 }
 0x183   : > { %v1168_v62 = vadd.f32 %v1139_v56, %v396_v54  ;;  %v1251_v54 = vadd.f32 (!%p1608_p11), %v2110_v9, %v1213_v40  ;;  %v1217_v56 = vld [vmem:[#allocation2 + $0x90] sm:$0xff] (!%p1608_p11)  ;;  %v1253_v61 = vadd.f32 (!%p1608_p11), %v2110_v9, %v1215_v46  ;;  %v1278_v2 = vmax.f32 (!%p1608_p11), %v1252_v55, 0.0 }
 0x184   : > { %1193 = vst [vmem:[#allocation2 + $0xc0] sm:$0xff] %v1167_v59  ;;  %v1275_v59 = vmax.f32 (!%p1608_p11), %v1249_v49, 0.0  ;;  %v1276_v60 = vmax.f32 (!%p1608_p11), %v1250_v50, 0.0  ;;  %v1220_v63 = vld [vmem:[#allocation2 + $0xa8] sm:$0xff] (!%p1608_p11)  ;;  %v1633_v0 = vpack.c.bf16 (!%p1608_p11), %v1274_v53, %v1273_v52  ;;  %1373 = vst [vmem:[%s2197_s3 + $0x20] sm:$0xff] (!%p1608_p11), %v1632_v58  ;;  %v1255_v8 = vadd.f32 (!%p1608_p11), %v2110_v9, %v1217_v56 }
 0x185   : > { %1194 = vst [vmem:[#allocation2 + $0xc8] sm:$0xff] %v1168_v62  ;;  %v1219_v62 = vld [vmem:[#allocation2 + $0xa0] sm:$0xff] (!%p1608_p11)  ;;  %v1277_v1 = vmax.f32 (!%p1608_p11), %v1251_v54, 0.0  ;;  %v1221_v4 = vld [vmem:[#allocation2 + $0xb0] sm:$0xff] (!%p1608_p11)  ;;  %v1279_v7 = vmax.f32 (!%p1608_p11), %v1253_v61, 0.0  ;;  %v1256_v11 = vadd.f32 (!%p1608_p11), %v2112_v10, %v1218_v57  ;;  %v1280_v14 = vmax.f32 (!%p1608_p11), %v1254_v3, 0.0 }
 0x186   : > { %v1222_v5 = vld [vmem:[#allocation2 + $0xb8] sm:$0xff]  ;;  %v1634_v6 = vpack.c.bf16 %v1276_v60, %v1275_v59  ;;  %1374 = vst [vmem:[%s2197_s3 + $0x28] sm:$0xff] %v1633_v0  ;;  %v1257_v15 = vadd.f32 %v2110_v9, %v1219_v62  ;;  %v1258_v16 = vadd.f32 %v2112_v10, %v1220_v63  ;;  %v1281_v18 = vmax.f32 %v1255_v8, 0.0 }
 0x187   : > { %v1635_v13 = vpack.c.bf16 %v1278_v2, %v1277_v1  ;;  %v1282_v19 = vmax.f32 %v1256_v11, 0.0  ;;  %v1259_v20 = vadd.f32 %v2110_v9, %v1221_v4  ;;  %v1260_v21 = vadd.f32 %v2112_v10, %v1222_v5 }
 0x188   : > { %1375 = vst [vmem:[%s2197_s3 + $0x30] sm:$0xff] %v1634_v6  ;;  %v1636_v22 = vpack.c.bf16 %v1280_v14, %v1279_v7  ;;  %v1283_v23 = vmax.f32 %v1257_v15, 0.0  ;;  %v1284_v24 = vmax.f32 %v1258_v16, 0.0 }
 0x189   : > { %1376 = vst [vmem:[%s2197_s3 + $0x38] sm:$0xff] %v1635_v13  ;;  %v1637_v26 = vpack.c.bf16 %v1282_v19, %v1281_v18  ;;  %v1285_v27 = vmax.f32 %v1259_v20, 0.0  ;;  %v1286_v28 = vmax.f32 %v1260_v21, 0.0 }
 0x18a   : > { %1377 = vst [vmem:[%s2197_s3 + $0x40] sm:$0xff] %v1636_v22  ;;  %v1638_v30 = vpack.c.bf16 %v1284_v24, %v1283_v23 }
 0x18b   : > { %v1223_v12 = vld [vmem:[#allocation2 + $0xc0] sm:$0xff]  ;;  %1378 = vst [vmem:[%s2197_s3 + $0x48] sm:$0xff] %v1637_v26  ;;  %v1639_v32 = vpack.c.bf16 %v1286_v28, %v1285_v27 }
 0x18c   : > { %v1224_v17 = vld [vmem:[#allocation2 + $0xc8] sm:$0xff]  ;;  %v1261_v25 = vadd.f32 %v2110_v9, %v1223_v12  ;;  %1379 = vst [vmem:[%s2197_s3 + $0x50] sm:$0xff] %v1638_v30 }
 0x18d   : > { %v1262_v29 = vadd.f32 %v2112_v10, %v1224_v17  ;;  %1380 = vst [vmem:[%s2197_s3 + $0x58] sm:$0xff] %v1639_v32 }
 0x18e   : > { %v1287_v31 = vmax.f32 %v1261_v25, 0.0 }
 0x18f   : > { %v1288_v33 = vmax.f32 %v1262_v29, 0.0 }
 0x191   : > { %v1640_v9 = vpack.c.bf16 %v1288_v33, %v1287_v31 }
 0x193   : > { %1381 = vst [vmem:[%s2197_s3 + $0x60] sm:$0xff] %v1640_v9 }
 0x194 PF: > { %s13_s16 = sadd.s32 1, %s1882_s16   ;;  %s2198_s12 = smov %s1870_s13 }
 0x195   : > { %p10_p12 = scmp.ge.s32.totalorder %s13_s16, 7   ;;  %s2199_s13 = smov %s1940_s20 }
 0x196   : > { %s2200_s14 = smov %s1878_s15  ;;  %s2201_s15 = smov %s2203_s17 }
 0x197   :  { %12 = sbr.rel (!%p10_p12) target bundleno = 3 (0x3), region = 104 }

// kernel: caffenet_pool5_forward.7
= control target key start
LH: loop header
LB: loop body
LE: loop exit
PB: predicated region body
PF: predicated region fallthrough
CT: control target
= control target key end

     0   :  { %s1865_s12 = smov 0   ;;  %s1867_s13 = smov 0   ;;  %s2059_s0 = inlined_call_operand.vmem [shape: bf16[24,2560], index: 0, kind: input, shape index: {}]   ;;  %s2060_s1 = inlined_call_operand.vmem [shape: bf16[2560,384], index: 1, kind: input, shape index: {}]   ;;  %s2061_s2 = inlined_call_operand.vmem [shape: f32[1,384], index: 2, kind: input, shape index: {}]   ;;  %s2062_s3 = inlined_call_operand.vmem [shape: bf16[24,384], index: 3, kind: output, shape index: {}]  }
   0x1   :  { %s1869_s14 = smov 0   ;;  %s1871_s15 = smov 0  }
   0x2   :  { %s1873_s16 = smov 0  }
   0x3 LB: > { %s25_s17 = sadd.s32 1, %s1838_s15  ;;  %p48_p1 = scmp.ne.s32.totalorder %s1830_s13, %s1826_s12  ;;  %s1842_s16 = sphi %s1873_s16, %s13_s16   ;;  %s1838_s15 = sphi %s1871_s15, %s2066_s15   ;;  %s1834_s14 = sphi %s1869_s14, %s2065_s14   ;;  %s1830_s13 = sphi %s1867_s13, %s2064_s13   ;;  %s1826_s12 = sphi %s1865_s12, %s2063_s12  }
   0x4   : > { %p26_p0 = scmp.ge.s32.totalorder %s25_s17, 5  ;;  %p49_p2 = scmp.eq.s32.totalorder %s1842_s16, 0 }
   0x5   : > { %s41_s19 = sadd.s32 1, %s1830_s13  ;;  %p1433_p5 = scmp.ge.s32.totalorder %s1842_s16, 5 }
   0x6   : > { %s2068_s17 = smov (%p26_p0, %s25_s17), 0  ;;  %p50_p3 = por %p49_p2, %p48_p1 }
   0x7   : > { %s37_s18 = ssub.s32 %s1838_s15, %s2068_s17  ;;  %164 = sbr.rel (%p1433_p5) target bundleno = 22 (0x16), region = 20 }
   0x8   : > { %p39_p4 = scmp.eq.s32.totalorder %s37_s18, 0 }
   0xa   : > { %s1900_s20 = scalar_select %p39_p4, %s1830_s13, %s41_s19  }
   0xe   : > { %167 = sbr.rel (!%p50_p3) target bundleno = 22 (0x16), region = 24  ;;  %s169_s21 = sand.u32 (%p50_p3), 1, %s1830_s13  }
   0xf   : > { %s1555_s22 = sshll.u32 (%p50_p3), %s1838_s15, 4  ;;  %s1622_s23 = smul.u32 (%p50_p3), 48, %s169_s21 }
  0x10   : > { %s177_s26 = scalar_lea.vmem (%p50_p3), %s2059_s0, %s1555_s22 }
  0x11   : > { %v190_v0 = vld [vmem:[%s177_s26] sm:$0xff] (%p50_p3)  ;;  %v192_v1 = vld [vmem:[%s177_s26 + $0x8] sm:$0xff] (%p50_p3)  ;;  %v194_v2 = vld [vmem:[%s177_s26 + $0x50] sm:$0xff] (%p50_p3)  ;;  %s171_s27 = scalar_lea.vmem (%p50_p3), [#allocation3], %s1622_s23 }
  0x12   : > { %v196_v3 = vld [vmem:[%s177_s26 + $0x58] sm:$0xff] (%p50_p3)  ;;  %v198_v4 = vld [vmem:[%s177_s26 + $0xa0] sm:$0xff] (%p50_p3)  ;;  %v200_v5 = vld [vmem:[%s177_s26 + $0xa8] sm:$0xff] (%p50_p3)  ;;  %191 = vst [vmem:[%s171_s27] sm:$0xff] (%p50_p3), %v190_v0 }
  0x13   : > { %193 = vst [vmem:[%s171_s27 + $0x8] sm:$0xff] (%p50_p3), %v192_v1  ;;  %195 = vst [vmem:[%s171_s27 + $0x10] sm:$0xff] (%p50_p3), %v194_v2 }
  0x14   : > { %197 = vst [vmem:[%s171_s27 + $0x18] sm:$0xff] (%p50_p3), %v196_v3  ;;  %199 = vst [vmem:[%s171_s27 + $0x20] sm:$0xff] (%p50_p3), %v198_v4 }
  0x15   : > { %201 = vst [vmem:[%s171_s27 + $0x28] sm:$0xff] %v200_v5 }
  0x16 PF: > { %p1436_p6 = scmp.ge.s32.totalorder %s1842_s16, 1  ;;  %p221_p7 = scmp.lt.s32.totalorder %s1842_s16, 6 }
  0x18   : > { %p222_p8 = pnand %p1436_p6, %p221_p7 }
  0x19   : > { %s228_s28 = sand.u32 (!%p222_p8), 1, %s1826_s12   ;;  %s1437_s29 = sshll.u32 (!%p222_p8), %s1834_s14, 6 }
  0x1a   : > { %225 = sbr.rel (%p222_p8) target bundleno = 409 (0x199), region = 51  ;;  %p274_p9 = scmp.lt.s32.totalorder (!%p222_p8), %s1437_s29, 319 }
  0x1b   : > { %s1623_s30 = smul.u32 (!%p222_p8), 48, %s228_s28  ;;  %p1439_p10 = scmp.ne.s32.totalorder (!%p222_p8), %s1834_s14, 0 }
  0x1d   : > { %s1917_s8 = scalar_lea.vmem (!%p222_p8), [#allocation3], %s1623_s30 }
  0x21   : > { %s2070_s29 = smov (!%p274_p9, %s1437_s29), 319  ;;  %305 = sbr.rel (%p1439_p10) target bundleno = 40 (0x28), region = 59 }
  0x22   : > { %s1624_s4 = smul.u32 12, %s2070_s29  ;;  %v1844_v6 = vmov (!%p1439_p10), 0.0  }
  0x23   : > { %306 = vst [vmem:[#allocation2] sm:$0xff] (!%p1439_p10), %v1844_v6  ;;  %307 = vst [vmem:[#allocation2 + $0x8] sm:$0xff] (!%p1439_p10), %v1844_v6 }
  0x24   : > { %s1915_s7 = scalar_lea.vmem %s2060_s1, %s1624_s4  ;;  %308 = vst [vmem:[#allocation2 + $0x10] sm:$0xff] (!%p1439_p10), %v1844_v6  ;;  %309 = vst [vmem:[#allocation2 + $0x18] sm:$0xff] (!%p1439_p10), %v1844_v6 }
  0x25   : > { %310 = vst [vmem:[#allocation2 + $0x20] sm:$0xff] (!%p1439_p10), %v1844_v6  ;;  %311 = vst [vmem:[#allocation2 + $0x28] sm:$0xff] (!%p1439_p10), %v1844_v6 }
  0x26   : > { %312 = vst [vmem:[#allocation2 + $0x30] sm:$0xff] (!%p1439_p10), %v1844_v6  ;;  %313 = vst [vmem:[#allocation2 + $0x38] sm:$0xff] (!%p1439_p10), %v1844_v6 }
  0x27   : > { %314 = vst [vmem:[#allocation2 + $0x40] sm:$0xff] (!%p1439_p10), %v1844_v6 }
  0x28 PF: > { %v1666_v7 = vld [vmem:[%s1915_s7 + $0x4] ss:$12 sps:$4 sm:$0xff]   ;;  %v1668_v8 = vld [vmem:[%s1915_s7] ss:$12 sps:$4 sm:$0xff]   ;;  %v1669_v9 = vld [vmem:[%s1915_s7 + $0x1c] ss:$12 sps:$4 sm:$0xff]  }
  0x29   : > { %1004 = vmatprep.subr.bf16.mxu0 %v1666_v7  ;;  %v1671_v10 = vld [vmem:[%s1915_s7 + $0x18] ss:$12 sps:$4 sm:$0xff]   ;;  %v1672_v11 = vld [vmem:[%s1915_s7 + $0x34] ss:$12 sps:$4 sm:$0xff]   ;;  %v1674_v12 = vld [vmem:[%s1915_s7 + $0x30] ss:$12 sps:$4 sm:$0xff]  }
  0x2a   : > { %1005 = vmatpush1.bf16.msra.mxu0 %v1668_v8  ;;  %v1675_v13 = vld [vmem:[%s1915_s7 + $0x4c] ss:$12 sps:$4 sm:$0xff]   ;;  %v1677_v14 = vld [vmem:[%s1915_s7 + $0x48] ss:$12 sps:$4 sm:$0xff]   ;;  %v1678_v15 = vld [vmem:[%s1915_s7 + $0x64] ss:$12 sps:$4 sm:$0xff]  }
  0x2b   : > { %1006 = vmatprep.subr.bf16.mxu0 %v1669_v9  ;;  %v1689_v16 = vld [vmem:[%s1915_s7 + $0xc8] ss:$12 sps:$4 sm:$0xff]   ;;  %v1680_v18 = vld [vmem:[%s1915_s7 + $0x60] ss:$12 sps:$4 sm:$0xff]   ;;  %v1699_v22 = vld [vmem:[%s1915_s7 + $0xf8] ss:$12 sps:$4 sm:$0xff]  }
  0x2c   : > { %v1691_v17 = vld [vmem:[%s1915_s7 + $0x8] ss:$12 sps:$4 sm:$0xff]   ;;  %1562 = vmatprep.subr.bf16.mxu1 %v1689_v16  ;;  %v1694_v19 = vld [vmem:[%s1915_s7 + $0xe0] ss:$12 sps:$4 sm:$0xff]   ;;  %v1683_v23 = vld [vmem:[%s1915_s7 + $0x78] ss:$12 sps:$4 sm:$0xff]  }
  0x2d   : > { %1563 = vmatpush3.bf16.msra.mxu1 %v1691_v17  ;;  %v1696_v20 = vld [vmem:[%s1915_s7 + $0x20] ss:$12 sps:$4 sm:$0xff]   ;;  %v1681_v21 = vld [vmem:[%s1915_s7 + $0x7c] ss:$12 sps:$4 sm:$0xff]   ;;  %v1701_v24 = vld [vmem:[%s1915_s7 + $0x38] ss:$12 sps:$4 sm:$0xff]  }
  0x2e   : > { %1007 = vmatpush1.bf16.msra.mxu0 %v1671_v10  ;;  %1564 = vmatprep.subr.bf16.mxu1 %v1694_v19  ;;  %v1684_v25 = vld [vmem:[%s1915_s7 + $0x94] ss:$12 sps:$4 sm:$0xff]   ;;  %v1704_v26 = vld [vmem:[%s1915_s7 + $0x110] ss:$12 sps:$4 sm:$0xff]   ;;  %v1687_v29 = vld [vmem:[%s1915_s7 + $0xac] ss:$12 sps:$4 sm:$0xff]  }
  0x2f   : > { %1008 = vmatprep.subr.bf16.mxu0 %v1672_v11  ;;  %v1706_v27 = vld [vmem:[%s1915_s7 + $0x50] ss:$12 sps:$4 sm:$0xff]   ;;  %v1709_v30 = vld [vmem:[%s1915_s7 + $0x128] ss:$12 sps:$4 sm:$0xff]   ;;  %v1714_v33 = vld [vmem:[%s1915_s7 + $0x140] ss:$12 sps:$4 sm:$0xff]  }
  0x30   : > { %v1686_v28 = vld [vmem:[%s1915_s7 + $0x90] ss:$12 sps:$4 sm:$0xff]   ;;  %v1690_v31 = vld [vmem:[%s1915_s7 + $0xa8] ss:$12 sps:$4 sm:$0xff]   ;;  %v1716_v35 = vld [vmem:[%s1915_s7 + $0x80] ss:$12 sps:$4 sm:$0xff]  }
  0x31   : > { %1565 = vmatpush3.bf16.msra.mxu1 %v1696_v20  ;;  %v1711_v32 = vld [vmem:[%s1915_s7 + $0x68] ss:$12 sps:$4 sm:$0xff]   ;;  %v1692_v34 = vld [vmem:[%s1915_s7 + $0xc4] ss:$12 sps:$4 sm:$0xff]   ;;  %v1695_v36 = vld [vmem:[%s1915_s7 + $0xc0] ss:$12 sps:$4 sm:$0xff]  }
  0x32   : > { %1009 = vmatpush1.bf16.msra.mxu0 %v1674_v12  ;;  %1566 = vmatprep.subr.bf16.mxu1 %v1699_v22  ;;  %v1719_v37 = vld [vmem:[%s1915_s7 + $0x158] ss:$12 sps:$4 sm:$0xff]   ;;  %v1697_v38 = vld [vmem:[%s1915_s7 + $0xdc] ss:$12 sps:$4 sm:$0xff]   ;;  %v1702_v42 = vld [vmem:[%s1915_s7 + $0xf4] ss:$12 sps:$4 sm:$0xff]  }
  0x33   : > { %1010 = vmatprep.subr.bf16.mxu0 %v1675_v13  ;;  %v1700_v39 = vld [vmem:[%s1915_s7 + $0xd8] ss:$12 sps:$4 sm:$0xff]   ;;  %v1724_v41 = vld [vmem:[%s1915_s7 + $0x170] ss:$12 sps:$4 sm:$0xff]   ;;  %v1732_v46 = vld [vmem:[%s1915_s7 + $0x248] ss:$12 sps:$4 sm:$0xff]  }
  0x34   : > { %v1721_v40 = vld [vmem:[%s1915_s7 + $0x98] ss:$12 sps:$4 sm:$0xff]   ;;  %v1726_v43 = vld [vmem:[%s1915_s7 + $0xb0] ss:$12 sps:$4 sm:$0xff]   ;;  %v1710_v48 = vld [vmem:[%s1915_s7 + $0x108] ss:$12 sps:$4 sm:$0xff]  }
  0x35   : > { %1567 = vmatpush3.bf16.msra.mxu1 %v1701_v24  ;;  %v1731_v44 = vld [vmem:[%s1917_s8 + $0x4] ss:$16 sps:$4 sm:$0xff]   ;;  %v1729_v49 = vld [vmem:[%s1917_s8] ss:$16 sps:$4 sm:$0xff]   ;;  %v1712_v52 = vld [vmem:[%s1915_s7 + $0x124] ss:$12 sps:$4 sm:$0xff]  }
  0x36   : > { %1011 = vmatpush1.bf16.msra.mxu0 %v1677_v14  ;;  %1568 = vmatprep.subr.bf16.mxu1 %v1704_v26  ;;  %v1705_v45 = vld [vmem:[%s1915_s7 + $0xf0] ss:$12 sps:$4 sm:$0xff]   ;;  %v1707_v47 = vld [vmem:[%s1915_s7 + $0x10c] ss:$12 sps:$4 sm:$0xff]   ;;  %v1734_v50 = vld [vmem:[%s1915_s7 + $0x188] ss:$12 sps:$4 sm:$0xff]  }
  0x37   : > { %1012 = vmatprep.subr.bf16.mxu0 %v1678_v15  ;;  %1138 = vmatprep.mubr.bf16.mxu1 %v1731_v44  ;;  %v1738_v51 = vld [vmem:[%s1915_s7 + $0x260] ss:$12 sps:$4 sm:$0xff]   ;;  %v1743_v55 = vld [vmem:[%s1915_s7 + $0x278] ss:$12 sps:$4 sm:$0xff]   ;;  %v1717_v56 = vld [vmem:[%s1915_s7 + $0x13c] ss:$12 sps:$4 sm:$0xff]  }
  0x38   : > { %1036 = vmatprep.mubr.bf16.mxu0 %v1731_v44  ;;  %v1715_v53 = vld [vmem:[%s1915_s7 + $0x120] ss:$12 sps:$4 sm:$0xff]   ;;  %v1744_v57 = vld [vmem:[%s1915_s7 + $0x1b8] ss:$12 sps:$4 sm:$0xff]   ;;  %v1748_v59 = vld [vmem:[%s1915_s7 + $0x290] ss:$12 sps:$4 sm:$0xff]  }
  0x39   : > { %1569 = vmatpush3.bf16.msra.mxu1 %v1706_v27  ;;  %v1739_v54 = vld [vmem:[%s1915_s7 + $0x1a0] ss:$12 sps:$4 sm:$0xff]   ;;  %v1720_v58 = vld [vmem:[%s1915_s7 + $0x138] ss:$12 sps:$4 sm:$0xff]   ;;  %v1725_v61 = vld [vmem:[%s1915_s7 + $0x150] ss:$12 sps:$4 sm:$0xff]  }
  0x3a   : > { %1013 = vmatpush1.bf16.msra.mxu0 %v1680_v18  ;;  %1570 = vmatprep.subr.bf16.mxu1 %v1709_v30  ;;  %v1722_v60 = vld [vmem:[%s1915_s7 + $0x154] ss:$12 sps:$4 sm:$0xff]   ;;  %v1749_v62 = vld [vmem:[%s1915_s7 + $0x1d0] ss:$12 sps:$4 sm:$0xff]   ;;  %v1727_v0 = vld [vmem:[%s1915_s7 + $0x16c] ss:$12 sps:$4 sm:$0xff]  }
  0x3b   : > { %1014 = vmatprep.subr.bf16.mxu0 %v1681_v21  ;;  %v1753_v63 = vld [vmem:[%s1915_s7 + $0x2a8] ss:$12 sps:$4 sm:$0xff]   ;;  %v1758_v6 = vld [vmem:[%s1915_s7 + $0x2c0] ss:$12 sps:$4 sm:$0xff]   ;;  %v1737_v7 = vld [vmem:[%s1915_s7 + $0x184] ss:$12 sps:$4 sm:$0xff]  }
  0x3c   : > { %v328_v1 = vld [vmem:[%s1917_s8 + $0x20] sm:$0xff]  ;;  %v1774_v12 = vld [vmem:[%s1917_s8 + $0xc] ss:$16 sps:$4 sm:$0xff]   ;;  %v1772_v20 = vld [vmem:[%s1917_s8 + $0x8] ss:$16 sps:$4 sm:$0xff]   ;;  %p1544_p11 = scmp.ne.s32.totalorder %s1834_s14, 4 }
  0x3d   : > { %1571 = vmatpush3.bf16.msra.mxu1 %v1711_v32  ;;  %v1733_v2 = vld [vmem:[%s1915_s7 + $0x168] ss:$12 sps:$4 sm:$0xff]   ;;  %v1445_v4 = vcombine.high %v328_v1, %v328_v1  ;;  %v1444_v5 = vcombine.low %v328_v1, %v328_v1  ;;  %v1735_v8 = vld [vmem:[%s1915_s7 + $0x180] ss:$12 sps:$4 sm:$0xff]   ;;  %v1765_v10 = vld [vmem:[%s1915_s7 + $0x2d8] ss:$12 sps:$4 sm:$0xff]  }
  0x3e   : > { %1015 = vmatpush1.bf16.msra.mxu0 %v1683_v23  ;;  %1572 = vmatprep.subr.bf16.mxu1 %v1714_v33  ;;  %v1754_v3 = vld [vmem:[%s1915_s7 + $0x1e8] ss:$12 sps:$4 sm:$0xff]   ;;  %v1759_v9 = vld [vmem:[%s1915_s7 + $0x200] ss:$12 sps:$4 sm:$0xff]   ;;  %v1740_v13 = vld [vmem:[%s1915_s7 + $0x198] ss:$12 sps:$4 sm:$0xff]  }
  0x3f   : > { %1016 = vmatprep.subr.bf16.mxu0 %v1684_v25  ;;  %v1742_v11 = vld [vmem:[%s1915_s7 + $0x19c] ss:$12 sps:$4 sm:$0xff]   ;;  %v1766_v14 = vld [vmem:[%s1915_s7 + $0x218] ss:$12 sps:$4 sm:$0xff]   ;;  %v1747_v16 = vld [vmem:[%s1915_s7 + $0x1b4] ss:$12 sps:$4 sm:$0xff]  }
  0x40   : > { %v1770_v15 = vld [vmem:[%s1915_s7 + $0x2f0] ss:$12 sps:$4 sm:$0xff]   ;;  %v1752_v19 = vld [vmem:[%s1915_s7 + $0x1cc] ss:$12 sps:$4 sm:$0xff]   ;;  %v1750_v21 = vld [vmem:[%s1915_s7 + $0x1c8] ss:$12 sps:$4 sm:$0xff]  }
  0x41   : > { %1573 = vmatpush3.bf16.msra.mxu1 %v1716_v35  ;;  %v1771_v17 = vld [vmem:[%s1915_s7 + $0x230] ss:$12 sps:$4 sm:$0xff]   ;;  %v1755_v25 = vld [vmem:[%s1915_s7 + $0x1e0] ss:$12 sps:$4 sm:$0xff]   ;;  %v1775_v32 = vld [vmem:[%s1915_s7 + $0x228] ss:$12 sps:$4 sm:$0xff]  }
  0x42   : > { %1017 = vmatpush1.bf16.msra.mxu0 %v1686_v28  ;;  %1574 = vmatprep.subr.bf16.mxu1 %v1719_v37  ;;  %v1745_v18 = vld [vmem:[%s1915_s7 + $0x1b0] ss:$12 sps:$4 sm:$0xff]   ;;  %v1761_v28 = vld [vmem:[%s1915_s7 + $0x1f8] ss:$12 sps:$4 sm:$0xff]   ;;  %v1786_v37 = vld [vmem:[%s1915_s7 + $0x274] ss:$12 sps:$4 sm:$0xff]  }
  0x43   : > { %1018 = vmatprep.subr.bf16.mxu0 %v1687_v29  ;;  %v329_v22 = vld [vmem:[%s1917_s8 + $0x28] sm:$0xff]  ;;  %v1763_v26 = vld [vmem:[%s1915_s7 + $0x1fc] ss:$12 sps:$4 sm:$0xff]  }
  0x44   : > { %v1757_v23 = vld [vmem:[%s1915_s7 + $0x1e4] ss:$12 sps:$4 sm:$0xff]   ;;  %v1447_v24 = vcombine.high %v329_v22, %v329_v22  ;;  %v1446_v27 = vcombine.low %v329_v22, %v329_v22  ;;  %v1769_v29 = vld [vmem:[%s1915_s7 + $0x214] ss:$12 sps:$4 sm:$0xff]   ;;  %v1783_v35 = vld [vmem:[%s1915_s7 + $0x25c] ss:$12 sps:$4 sm:$0xff]  }
  0x45   : > { %1575 = vmatpush3.bf16.msra.mxu1 %v1721_v40  ;;  %v1767_v30 = vld [vmem:[%s1915_s7 + $0x210] ss:$12 sps:$4 sm:$0xff]   ;;  %v1787_v40 = vld [vmem:[%s1915_s7 + $0x288] ss:$12 sps:$4 sm:$0xff]   ;;  %v1793_v44 = vld [vmem:[%s1915_s7 + $0x2b8] ss:$12 sps:$4 sm:$0xff]  }
  0x46   : > { %1019 = vmatpush1.bf16.msra.mxu0 %v1690_v31  ;;  %1576 = vmatprep.subr.bf16.mxu1 %v1724_v41  ;;  %v1777_v31 = vld [vmem:[%s1915_s7 + $0x22c] ss:$12 sps:$4 sm:$0xff]   ;;  %v1780_v33 = vld [vmem:[%s1915_s7 + $0x244] ss:$12 sps:$4 sm:$0xff]  }
  0x47   : > { %1020 = vmatprep.subr.bf16.mxu0 %v1692_v34  ;;  %v1778_v34 = vld [vmem:[%s1915_s7 + $0x240] ss:$12 sps:$4 sm:$0xff]   ;;  %v1792_v41 = vld [vmem:[%s1915_s7 + $0x2a4] ss:$12 sps:$4 sm:$0xff]  }
  0x49   : > { %1577 = vmatpush3.bf16.msra.mxu1 %v1726_v43  ;;  %v1795_v43 = vld [vmem:[%s1915_s7 + $0x2bc] ss:$12 sps:$4 sm:$0xff]  }
  0x4a   : > { %1021 = vmatpush1.bf16.msra.mxu0 %v1695_v36  ;;  %1590 = vmatprep.subr.bf16.mxu1 %v1732_v46  ;;  %v1781_v36 = vld [vmem:[%s1915_s7 + $0x258] ss:$12 sps:$4 sm:$0xff]   ;;  %v1798_v46 = vld [vmem:[%s1915_s7 + $0x2d0] ss:$12 sps:$4 sm:$0xff]  }
  0x4b   : > { %1022 = vmatprep.subr.bf16.mxu0 %v1697_v38  ;;  %v1784_v38 = vld [vmem:[%s1915_s7 + $0x270] ss:$12 sps:$4 sm:$0xff]  }
  0x4c   : > { %1139 = vmatmul.mubr.bf16.vlgmr.msra.gmra.mrb[0].mxu1 %v1729_v49 }
  0x4d   : > { %1591 = vmatpush3.bf16.msra.mxu1 %v1734_v50  ;;  %1146 = vmatprep.mubr.bf16.mxu1 %v1445_v4 }
  0x4e   : > { %1023 = vmatpush1.bf16.msra.mxu0 %v1700_v39  ;;  %1592 = vmatprep.subr.bf16.mxu1 %v1738_v51  ;;  %v1789_v39 = vld [vmem:[%s1915_s7 + $0x28c] ss:$12 sps:$4 sm:$0xff]  }
  0x4f   : > { %1024 = vmatprep.subr.bf16.mxu0 %v1702_v42  ;;  %v1790_v42 = vld [vmem:[%s1915_s7 + $0x2a0] ss:$12 sps:$4 sm:$0xff]  }
  0x51   : > { %1593 = vmatpush3.bf16.msra.mxu1 %v1739_v54 }
  0x52   : > { %1025 = vmatpush1.bf16.msra.mxu0 %v1705_v45  ;;  %1594 = vmatprep.subr.bf16.mxu1 %v1743_v55  ;;  %v1800_v45 = vld [vmem:[%s1915_s7 + $0x2d4] ss:$12 sps:$4 sm:$0xff]  }
  0x53   : > { %1026 = vmatprep.subr.bf16.mxu0 %v1707_v47  ;;  %v1803_v47 = vld [vmem:[%s1915_s7 + $0x2ec] ss:$12 sps:$4 sm:$0xff]  }
  0x54   : > { %1147 = vmatmul.mubr.bf16.gmra.mrb[4].mxu1 %v1444_v5 }
  0x55   : > { %1595 = vmatpush3.bf16.msra.mxu1 %v1744_v57  ;;  %1186 = vmatprep.mubr.bf16.mxu1 %v1774_v12 }
  0x56   : > { %1027 = vmatpush1.bf16.msra.mxu0 %v1710_v48  ;;  %1596 = vmatprep.subr.bf16.mxu1 %v1748_v59  ;;  %v1801_v48 = vld [vmem:[%s1915_s7 + $0x2e8] ss:$12 sps:$4 sm:$0xff]  }
  0x57   : > { %1028 = vmatprep.subr.bf16.mxu0 %v1712_v52 }
  0x59   : > { %1597 = vmatpush3.bf16.msra.mxu1 %v1749_v62 }
  0x5a   : > { %1029 = vmatpush1.bf16.msra.mxu0 %v1715_v53  ;;  %1598 = vmatprep.subr.bf16.mxu1 %v1753_v63 }
  0x5b   : > { %1030 = vmatprep.subr.bf16.mxu0 %v1717_v56 }
  0x5d   : > { %1599 = vmatpush3.bf16.msra.mxu1 %v1754_v3 }
  0x5e   : > { %1031 = vmatpush1.bf16.msra.mxu0 %v1720_v58  ;;  %1600 = vmatprep.subr.bf16.mxu1 %v1758_v6 }
  0x5f   : > { %1032 = vmatprep.subr.bf16.mxu0 %v1722_v60 }
  0x61   : > { %1601 = vmatpush3.bf16.msra.mxu1 %v1759_v9 }
  0x62   : > { %1033 = vmatpush1.bf16.msra.mxu0 %v1725_v61  ;;  %1602 = vmatprep.subr.bf16.mxu1 %v1765_v10 }
  0x63   : > { %1034 = vmatprep.subr.bf16.mxu0 %v1727_v0 }
  0x65   : > { %1603 = vmatpush3.bf16.msra.mxu1 %v1766_v14 }
  0x66   : > { %1035 = vmatpush1.bf16.msra.mxu0 %v1733_v2  ;;  %1604 = vmatprep.subr.bf16.mxu1 %v1770_v15 }
  0x67   : > { %1055 = vmatprep.subr.bf16.mxu0 %v1737_v7 }
  0x69   : > { %1037 = vmatmul.mubr.bf16.vlgmr.msra.gmra.mrb[0].mxu0 %v1729_v49  ;;  %1605 = vmatpush3.bf16.msra.mxu1 %v1771_v17 }
  0x6a   : > { %1056 = vmatpush1.bf16.msra.mxu0 %v1735_v8  ;;  %1046 = vmatprep.mubr.bf16.mxu0 %v1445_v4  ;;  %v317_v4 = vld [vmem:[#allocation2 + $0x10] sm:$0xff]  ;;  %v320_v8 = vld [vmem:[#allocation2 + $0x28] sm:$0xff] }
  0x6b   : > { %1057 = vmatprep.subr.bf16.mxu0 %v1742_v11 }
  0x6c   : > { %1187 = vmatmul.mubr.bf16.vlgmr.msra.gmra.mrb[8].mxu1 %v1772_v20 }
  0x6d   : > { %1194 = vmatprep.mubr.bf16.mxu1 %v1447_v24 }
  0x6e   : > { %1058 = vmatpush1.bf16.msra.mxu0 %v1740_v13 }
  0x6f   : > { %1059 = vmatprep.subr.bf16.mxu0 %v1747_v16  ;;  %v323_v16 = vld [vmem:[#allocation2 + $0x40] sm:$0xff] }
  0x71   : > { %1047 = vmatmul.mubr.bf16.gmra.mrb[4].mxu0 %v1444_v5 }
  0x72   : > { %1060 = vmatpush1.bf16.msra.mxu0 %v1745_v18  ;;  %1087 = vmatprep.mubr.bf16.mxu0 %v1774_v12 }
  0x73   : > { %1061 = vmatprep.subr.bf16.mxu0 %v1752_v19 }
  0x74   : > { %1195 = vmatmul.mubr.bf16.gmra.mrb[12].mxu1 %v1446_v27 }
  0x76   : > { %1062 = vmatpush1.bf16.msra.mxu0 %v1750_v21  ;;  %v316_v21 = vld [vmem:[#allocation2 + $0x8] sm:$0xff] }
  0x77   : > { %1063 = vmatprep.subr.bf16.mxu0 %v1757_v23  ;;  %v318_v23 = vld [vmem:[#allocation2 + $0x18] sm:$0xff] }
  0x7a   : > { %1064 = vmatpush1.bf16.msra.mxu0 %v1755_v25 }
  0x7b   : > { %1065 = vmatprep.subr.bf16.mxu0 %v1763_v26  ;;  %v319_v26 = vld [vmem:[#allocation2 + $0x20] sm:$0xff] }
  0x7e   : > { %1066 = vmatpush1.bf16.msra.mxu0 %v1761_v28 }
  0x7f   : > { %1067 = vmatprep.subr.bf16.mxu0 %v1769_v29 }
  0x82   : > { %1068 = vmatpush1.bf16.msra.mxu0 %v1767_v30 }
  0x83   : > { %1069 = vmatprep.subr.bf16.mxu0 %v1777_v31 }
  0x86   : > { %1070 = vmatpush1.bf16.msra.mxu0 %v1775_v32  ;;  %v321_v32 = vld [vmem:[#allocation2 + $0x30] sm:$0xff] }
  0x87   : > { %1071 = vmatprep.subr.bf16.mxu0 %v1780_v33 }
  0x8a   : > { %1072 = vmatpush1.bf16.msra.mxu0 %v1778_v34 }
  0x8b   : > { %1073 = vmatprep.subr.bf16.mxu0 %v1783_v35  ;;  %v322_v35 = vld [vmem:[#allocation2 + $0x38] sm:$0xff] }
  0x8e   : > { %1074 = vmatpush1.bf16.msra.mxu0 %v1781_v36 }
  0x8f   : > { %1075 = vmatprep.subr.bf16.mxu0 %v1786_v37 }
  0x92   : > { %1076 = vmatpush1.bf16.msra.mxu0 %v1784_v38 }
  0x93   : > { %1077 = vmatprep.subr.bf16.mxu0 %v1789_v39 }
  0x96   : > { %1078 = vmatpush1.bf16.msra.mxu0 %v1787_v40 }
  0x97   : > { %1079 = vmatprep.subr.bf16.mxu0 %v1792_v41 }
  0x9a   : > { %1080 = vmatpush1.bf16.msra.mxu0 %v1790_v42  ;;  %v1235_v42 = vlaneseq (!%p1544_p11) }
  0x9b   : > { %1081 = vmatprep.subr.bf16.mxu0 %v1795_v43 }
  0x9c   : > { %v1236_v43 = vshrl.u32 (!%p1544_p11), %v1235_v42, 7 }
  0x9e   : > { %1082 = vmatpush1.bf16.msra.mxu0 %v1793_v44  ;;  %v1233_v44 = vld [vmem:[%s2061_s2] sm:$0x7] (!%p1544_p11) }
  0x9f   : > { %1083 = vmatprep.subr.bf16.mxu0 %v1800_v45 }
  0xa2   : > { %1084 = vmatpush1.bf16.msra.mxu0 %v1798_v46 }
  0xa3   : > { %1085 = vmatprep.subr.bf16.mxu0 %v1803_v47  ;;  %v1237_v47 = vsub.s32 (!%p1544_p11), 0, %v1236_v43 }
  0xa6   : > { %1086 = vmatpush1.bf16.msra.mxu0 %v1801_v48  ;;  %v1241_v48 = vsub.s32 (!%p1544_p11), 1, %v1236_v43 }
  0xa9   : > { %1088 = vmatmul.mubr.bf16.vlgmr.msra.gmra.mrb[0].mxu0 %v1772_v20  ;;  %v315_v20 = vld [vmem:[#allocation2] sm:$0xff] }
  0xaa   : > { %1097 = vmatprep.mubr.bf16.mxu0 %v1447_v24 }
  0xb1   : > { %1098 = vmatmul.mubr.bf16.gmra.mrb[8].mxu0 %v1446_v27 }
 0x11f   : > { %v1578_v49 = vpop.f32.mrb[0].mxu1 }
 0x120   : > { %v1579_v50 = vpop.f32.mrb[1].mxu1 }
 0x121   : > { %v1580_v51 = vadd.f32 %v1579_v50, %v1578_v49  ;;  %v1581_v52 = vpop.f32.mrb[2].mxu1  ;;  %v1245_v49 = vsub.s32 (!%p1544_p11), 2, %v1236_v43 }
 0x122   : > { %v1582_v53 = vpop.f32.mrb[3].mxu1 }
 0x123   : > { %v1583_v54 = vadd.f32 %v1582_v53, %v1581_v52  ;;  %v1238_v53 = vrot.slane (!%p1544_p11), %v1233_v44, %v1237_v47 }
 0x127   : > { %v1584_v55 = vpop.f32.mrb[4].mxu1 }
 0x128   : > { %v1585_v56 = vpop.f32.mrb[5].mxu1 }
 0x129   : > { %v1586_v57 = vadd.f32 %v1585_v56, %v1584_v55  ;;  %v1587_v58 = vpop.f32.mrb[6].mxu1  ;;  %v1246_v55 = vrot.slane (!%p1544_p11), %v1233_v44, %v1245_v49 }
 0x12a   : > { %v1588_v59 = vpop.f32.mrb[7].mxu1 }
 0x13f   : > { %v1606_v63 = vpop.f32.mrb[8].mxu1 }
 0x140   : > { %v1607_v1 = vpop.f32.mrb[9].mxu1 }
 0x141   : > { %v1608_v2 = vadd.f32 %v1607_v1, %v1606_v63  ;;  %v1609_v3 = vpop.f32.mrb[10].mxu1 }
 0x142   : > { %v1610_v5 = vpop.f32.mrb[11].mxu1 }
 0x143   : > { %v1189_v6 = vadd.f32 %v1608_v2, %v1580_v51  ;;  %v1611_v7 = vadd.f32 %v1610_v5, %v1609_v3 }
 0x144   : > { %v1048_v60 = vpop.f32.mrb[4].mxu0 }
 0x145   : > { %v1050_v61 = vpop.f32.mrb[5].mxu0  ;;  %v1204_v9 = vadd.f32 %v1189_v6, %v317_v4  ;;  %v1192_v10 = vadd.f32 %v1611_v7, %v1583_v54  ;;  %v1242_v54 = vrot.slane (!%p1544_p11), %v1233_v44, %v1241_v48 }
 0x146   : > { %v1052_v62 = vpop.f32.mrb[6].mxu0 }
 0x147   : > { %v1053_v0 = vpop.f32.mrb[7].mxu0  ;;  %1213 = vst [vmem:[#allocation2 + $0x10] sm:$0xff] %v1204_v9  ;;  %v1207_v11 = vadd.f32 %v1192_v10, %v320_v8  ;;  %v1612_v12 = vpop.f32.mrb[12].mxu1 }
 0x148   : > { %v1613_v13 = vpop.f32.mrb[13].mxu1 }
 0x149   : > { %1216 = vst [vmem:[#allocation2 + $0x28] sm:$0xff] %v1207_v11  ;;  %v1614_v14 = vadd.f32 %v1613_v13, %v1612_v12  ;;  %v1615_v15 = vpop.f32.mrb[14].mxu1 }
 0x14a   : > { %v1616_v17 = vpop.f32.mrb[15].mxu1 }
 0x14b   : > { %v1197_v18 = vadd.f32 %v1614_v14, %v1586_v57 }
 0x14d   : > { %v1210_v19 = vadd.f32 %v1197_v18, %v323_v16 }
 0x14e   : > { %v1226_v50 = vld [vmem:[#allocation2 + $0x10] sm:$0xff] (!%p1544_p11) }
 0x14f   : > { %1219 = vst [vmem:[#allocation2 + $0x40] sm:$0xff] %v1210_v19 }
 0x150   : > { %v1229_v56 = vld [vmem:[#allocation2 + $0x28] sm:$0xff] (!%p1544_p11) }
 0x151   : > { %v1255_v0 = vadd.f32 (!%p1544_p11), %v1246_v55, %v1229_v56 }
 0x153   : > { %v1264_v9 = vmax.f32 (!%p1544_p11), %v1255_v0, 0.0 }
 0x155   : > { %v1559_v16 = vpack.c.bf16 (!%p1544_p11), %v1264_v9, %v1264_v9 }
 0x156   : > { %v1232_v3 = vld [vmem:[#allocation2 + $0x40] sm:$0xff] (!%p1544_p11) }
 0x157   : > { %v1258_v14 = vadd.f32 (!%p1544_p11), %v1246_v55, %v1232_v3  ;;  %1304 = vst [vmem:[%s2062_s3 + $0x14] sm:$0xf] (!%p1544_p11), %v1559_v16 }
 0x159   : > { %v1267_v18 = vmax.f32 (!%p1544_p11), %v1258_v14, 0.0 }
 0x15b   : > { %v1561_v19 = vpack.c.bf16 (!%p1544_p11), %v1267_v18, %v1267_v18 }
 0x15d   : > { %1306 = vst [vmem:[%s2062_s3 + $0x20] sm:$0xf] (!%p1544_p11), %v1561_v19 }
 0x17c   : > { %v1089_v22 = vpop.f32.mrb[0].mxu0 }
 0x17d   : > { %v1202_v24 = vadd.f32 %v1089_v22, %v315_v20  ;;  %v1091_v25 = vpop.f32.mrb[1].mxu0 }
 0x17e   : > { %v1203_v27 = vadd.f32 %v1091_v25, %v316_v21  ;;  %v1093_v28 = vpop.f32.mrb[2].mxu0 }
 0x17f   : > { %1211 = vst [vmem:[#allocation2] sm:$0xff] %v1202_v24  ;;  %v1205_v29 = vadd.f32 %v1093_v28, %v318_v23  ;;  %v1095_v30 = vpop.f32.mrb[3].mxu0 }
 0x180   : > { %1212 = vst [vmem:[#allocation2 + $0x8] sm:$0xff] %v1203_v27  ;;  %v1206_v31 = vadd.f32 %v1095_v30, %v319_v26 }
 0x181   : > { %1214 = vst [vmem:[#allocation2 + $0x18] sm:$0xff] %v1205_v29 }
 0x182   : > { %1215 = vst [vmem:[#allocation2 + $0x20] sm:$0xff] %v1206_v31 }
 0x184   : > { %v1099_v33 = vpop.f32.mrb[8].mxu0  ;;  %1223 = sbr.rel (%p1544_p11) target bundleno = 409 (0x199), region = 63 }
 0x185   : > { %v1100_v34 = vadd.f32 %v1099_v33, %v1048_v60  ;;  %v1101_v36 = vpop.f32.mrb[9].mxu0 }
 0x186   : > { %v1102_v37 = vadd.f32 %v1101_v36, %v1050_v61  ;;  %v1103_v38 = vpop.f32.mrb[10].mxu0  ;;  %v1224_v45 = vld [vmem:[#allocation2] sm:$0xff] (!%p1544_p11)  ;;  %v1252_v61 = vadd.f32 (!%p1544_p11), %v1246_v55, %v1226_v50 }
 0x187   : > { %v1208_v39 = vadd.f32 %v1100_v34, %v321_v32  ;;  %v1104_v40 = vpop.f32.mrb[11].mxu0  ;;  %v1225_v46 = vld [vmem:[#allocation2 + $0x8] sm:$0xff] (!%p1544_p11)  ;;  %v1250_v59 = vadd.f32 (!%p1544_p11), %v1238_v53, %v1224_v45 }
 0x188   : > { %v1209_v41 = vadd.f32 %v1102_v37, %v322_v35  ;;  %v1227_v51 = vld [vmem:[#allocation2 + $0x18] sm:$0xff] (!%p1544_p11)  ;;  %v1251_v60 = vadd.f32 (!%p1544_p11), %v1242_v54, %v1225_v46  ;;  %v1261_v6 = vmax.f32 (!%p1544_p11), %v1252_v61, 0.0 }
 0x189   : > { %1217 = vst [vmem:[#allocation2 + $0x30] sm:$0xff] %v1208_v39  ;;  %v1228_v52 = vld [vmem:[#allocation2 + $0x20] sm:$0xff] (!%p1544_p11)  ;;  %v1253_v62 = vadd.f32 (!%p1544_p11), %v1238_v53, %v1227_v51  ;;  %v1259_v4 = vmax.f32 (!%p1544_p11), %v1250_v59, 0.0 }
 0x18a   : > { %1218 = vst [vmem:[#allocation2 + $0x38] sm:$0xff] %v1209_v41  ;;  %v1254_v63 = vadd.f32 (!%p1544_p11), %v1242_v54, %v1228_v52  ;;  %v1260_v5 = vmax.f32 (!%p1544_p11), %v1251_v60, 0.0  ;;  %v1557_v13 = vpack.c.bf16 (!%p1544_p11), %v1261_v6, %v1261_v6 }
 0x18b   : > { %v1262_v7 = vmax.f32 %v1253_v62, 0.0 }
 0x18c   : > { %v1263_v8 = vmax.f32 %v1254_v63, 0.0  ;;  %v1556_v12 = vpack.c.bf16 %v1260_v5, %v1259_v4  ;;  %1302 = vst [vmem:[%s2062_s3 + $0x8] sm:$0xf] %v1557_v13 }
 0x18e   : > { %v1558_v15 = vpack.c.bf16 %v1263_v8, %v1262_v7  ;;  %1301 = vst [vmem:[%s2062_s3] sm:$0xff] %v1556_v12 }
 0x190   : > { %v1230_v57 = vld [vmem:[#allocation2 + $0x30] sm:$0xff]  ;;  %1303 = vst [vmem:[%s2062_s3 + $0xc] sm:$0xff] %v1558_v15 }
 0x191   : > { %v1231_v58 = vld [vmem:[#allocation2 + $0x38] sm:$0xff]  ;;  %v1256_v1 = vadd.f32 %v1238_v53, %v1230_v57 }
 0x192   : > { %v1257_v2 = vadd.f32 %v1242_v54, %v1231_v58 }
 0x193   : > { %v1265_v10 = vmax.f32 %v1256_v1, 0.0 }
 0x194   : > { %v1266_v11 = vmax.f32 %v1257_v2, 0.0 }
 0x196   : > { %v1560_v17 = vpack.c.bf16 %v1266_v11, %v1265_v10 }
 0x198   : > { %1305 = vst [vmem:[%s2062_s3 + $0x18] sm:$0xff] %v1560_v17 }
 0x199 PF: > { %s13_s16 = sadd.s32 1, %s1842_s16   ;;  %s2063_s12 = smov %s1830_s13 }
 0x19a   : > { %p10_p12 = scmp.ge.s32.totalorder %s13_s16, 7   ;;  %s2064_s13 = smov %s1900_s20 }
 0x19b   : > { %s2065_s14 = smov %s1838_s15  ;;  %s2066_s15 = smov %s2068_s17 }
 0x19c   :  { %12 = sbr.rel (!%p10_p12) target bundleno = 3 (0x3), region = 104 }

// kernel: caffenet_pool5_forward.8
= control target key start
LH: loop header
LB: loop body
LE: loop exit
PB: predicated region body
PF: predicated region fallthrough
CT: control target
= control target key end

     0   :  { %s1865_s12 = smov 0   ;;  %s1867_s13 = smov 0   ;;  %s2059_s0 = inlined_call_operand.vmem [shape: bf16[24,3584], index: 0, kind: input, shape index: {}]   ;;  %s2060_s1 = inlined_call_operand.vmem [shape: bf16[3584,384], index: 1, kind: input, shape index: {}]   ;;  %s2061_s2 = inlined_call_operand.vmem [shape: f32[1,384], index: 2, kind: input, shape index: {}]   ;;  %s2062_s3 = inlined_call_operand.vmem [shape: bf16[24,384], index: 3, kind: output, shape index: {}]  }
   0x1   :  { %s1869_s14 = smov 0   ;;  %s1871_s15 = smov 0  }
   0x2   :  { %s1873_s16 = smov 0  }
   0x3 LB: > { %s25_s17 = sadd.s32 1, %s1838_s15  ;;  %p48_p1 = scmp.ne.s32.totalorder %s1830_s13, %s1826_s12  ;;  %s1842_s16 = sphi %s1873_s16, %s13_s16   ;;  %s1838_s15 = sphi %s1871_s15, %s2066_s15   ;;  %s1834_s14 = sphi %s1869_s14, %s2065_s14   ;;  %s1830_s13 = sphi %s1867_s13, %s2064_s13   ;;  %s1826_s12 = sphi %s1865_s12, %s2063_s12  }
   0x4   : > { %p26_p0 = scmp.ge.s32.totalorder %s25_s17, 7  ;;  %p49_p2 = scmp.eq.s32.totalorder %s1842_s16, 0 }
   0x5   : > { %s41_s19 = sadd.s32 1, %s1830_s13  ;;  %p1433_p5 = scmp.ge.s32.totalorder %s1842_s16, 7 }
   0x6   : > { %s2068_s17 = smov (%p26_p0, %s25_s17), 0  ;;  %p50_p3 = por %p49_p2, %p48_p1 }
   0x7   : > { %s37_s18 = ssub.s32 %s1838_s15, %s2068_s17  ;;  %164 = sbr.rel (%p1433_p5) target bundleno = 22 (0x16), region = 20 }
   0x8   : > { %p39_p4 = scmp.eq.s32.totalorder %s37_s18, 0 }
   0xa   : > { %s1900_s20 = scalar_select %p39_p4, %s1830_s13, %s41_s19  }
   0xe   : > { %167 = sbr.rel (!%p50_p3) target bundleno = 22 (0x16), region = 24  ;;  %s169_s21 = sand.u32 (%p50_p3), 1, %s1830_s13  }
   0xf   : > { %s1555_s22 = sshll.u32 (%p50_p3), %s1838_s15, 4  ;;  %s1622_s23 = smul.u32 (%p50_p3), 48, %s169_s21 }
  0x10   : > { %s177_s26 = scalar_lea.vmem (%p50_p3), %s2059_s0, %s1555_s22 }
  0x11   : > { %v190_v0 = vld [vmem:[%s177_s26] sm:$0xff] (%p50_p3)  ;;  %v192_v1 = vld [vmem:[%s177_s26 + $0x8] sm:$0xff] (%p50_p3)  ;;  %v194_v2 = vld [vmem:[%s177_s26 + $0x70] sm:$0xff] (%p50_p3)  ;;  %s171_s27 = scalar_lea.vmem (%p50_p3), [#allocation3], %s1622_s23 }
  0x12   : > { %v196_v3 = vld [vmem:[%s177_s26 + $0x78] sm:$0xff] (%p50_p3)  ;;  %v198_v4 = vld [vmem:[%s177_s26 + $0xe0] sm:$0xff] (%p50_p3)  ;;  %v200_v5 = vld [vmem:[%s177_s26 + $0xe8] sm:$0xff] (%p50_p3)  ;;  %191 = vst [vmem:[%s171_s27] sm:$0xff] (%p50_p3), %v190_v0 }
  0x13   : > { %193 = vst [vmem:[%s171_s27 + $0x8] sm:$0xff] (%p50_p3), %v192_v1  ;;  %195 = vst [vmem:[%s171_s27 + $0x10] sm:$0xff] (%p50_p3), %v194_v2 }
  0x14   : > { %197 = vst [vmem:[%s171_s27 + $0x18] sm:$0xff] (%p50_p3), %v196_v3  ;;  %199 = vst [vmem:[%s171_s27 + $0x20] sm:$0xff] (%p50_p3), %v198_v4 }
  0x15   : > { %201 = vst [vmem:[%s171_s27 + $0x28] sm:$0xff] %v200_v5 }
  0x16 PF: > { %p1436_p6 = scmp.ge.s32.totalorder %s1842_s16, 1  ;;  %p221_p7 = scmp.lt.s32.totalorder %s1842_s16, 8 }
  0x18   : > { %p222_p8 = pnand %p1436_p6, %p221_p7 }
  0x19   : > { %s228_s28 = sand.u32 (!%p222_p8), 1, %s1826_s12   ;;  %s1437_s29 = sshll.u32 (!%p222_p8), %s1834_s14, 6 }
  0x1a   : > { %225 = sbr.rel (%p222_p8) target bundleno = 409 (0x199), region = 51  ;;  %p274_p9 = scmp.lt.s32.totalorder (!%p222_p8), %s1437_s29, 447 }
  0x1b   : > { %s1623_s30 = smul.u32 (!%p222_p8), 48, %s228_s28  ;;  %p1439_p10 = scmp.ne.s32.totalorder (!%p222_p8), %s1834_s14, 0 }
  0x1d   : > { %s1917_s8 = scalar_lea.vmem (!%p222_p8), [#allocation3], %s1623_s30 }
  0x21   : > { %s2070_s29 = smov (!%p274_p9, %s1437_s29), 447  ;;  %305 = sbr.rel (%p1439_p10) target bundleno = 40 (0x28), region = 59 }
  0x22   : > { %s1624_s4 = smul.u32 12, %s2070_s29  ;;  %v1844_v6 = vmov (!%p1439_p10), 0.0  }
  0x23   : > { %306 = vst [vmem:[#allocation2] sm:$0xff] (!%p1439_p10), %v1844_v6  ;;  %307 = vst [vmem:[#allocation2 + $0x8] sm:$0xff] (!%p1439_p10), %v1844_v6 }
  0x24   : > { %s1915_s7 = scalar_lea.vmem %s2060_s1, %s1624_s4  ;;  %308 = vst [vmem:[#allocation2 + $0x10] sm:$0xff] (!%p1439_p10), %v1844_v6  ;;  %309 = vst [vmem:[#allocation2 + $0x18] sm:$0xff] (!%p1439_p10), %v1844_v6 }
  0x25   : > { %310 = vst [vmem:[#allocation2 + $0x20] sm:$0xff] (!%p1439_p10), %v1844_v6  ;;  %311 = vst [vmem:[#allocation2 + $0x28] sm:$0xff] (!%p1439_p10), %v1844_v6 }
  0x26   : > { %312 = vst [vmem:[#allocation2 + $0x30] sm:$0xff] (!%p1439_p10), %v1844_v6  ;;  %313 = vst [vmem:[#allocation2 + $0x38] sm:$0xff] (!%p1439_p10), %v1844_v6 }
  0x27   : > { %314 = vst [vmem:[#allocation2 + $0x40] sm:$0xff] (!%p1439_p10), %v1844_v6 }
  0x28 PF: > { %v1666_v7 = vld [vmem:[%s1915_s7 + $0x4] ss:$12 sps:$4 sm:$0xff]   ;;  %v1668_v8 = vld [vmem:[%s1915_s7] ss:$12 sps:$4 sm:$0xff]   ;;  %v1669_v9 = vld [vmem:[%s1915_s7 + $0x1c] ss:$12 sps:$4 sm:$0xff]  }
  0x29   : > { %1004 = vmatprep.subr.bf16.mxu0 %v1666_v7  ;;  %v1671_v10 = vld [vmem:[%s1915_s7 + $0x18] ss:$12 sps:$4 sm:$0xff]   ;;  %v1672_v11 = vld [vmem:[%s1915_s7 + $0x34] ss:$12 sps:$4 sm:$0xff]   ;;  %v1674_v12 = vld [vmem:[%s1915_s7 + $0x30] ss:$12 sps:$4 sm:$0xff]  }
  0x2a   : > { %1005 = vmatpush1.bf16.msra.mxu0 %v1668_v8  ;;  %v1675_v13 = vld [vmem:[%s1915_s7 + $0x4c] ss:$12 sps:$4 sm:$0xff]   ;;  %v1677_v14 = vld [vmem:[%s1915_s7 + $0x48] ss:$12 sps:$4 sm:$0xff]   ;;  %v1678_v15 = vld [vmem:[%s1915_s7 + $0x64] ss:$12 sps:$4 sm:$0xff]  }
  0x2b   : > { %1006 = vmatprep.subr.bf16.mxu0 %v1669_v9  ;;  %v1689_v16 = vld [vmem:[%s1915_s7 + $0xc8] ss:$12 sps:$4 sm:$0xff]   ;;  %v1680_v18 = vld [vmem:[%s1915_s7 + $0x60] ss:$12 sps:$4 sm:$0xff]   ;;  %v1699_v22 = vld [vmem:[%s1915_s7 + $0xf8] ss:$12 sps:$4 sm:$0xff]  }
  0x2c   : > { %v1691_v17 = vld [vmem:[%s1915_s7 + $0x8] ss:$12 sps:$4 sm:$0xff]   ;;  %1562 = vmatprep.subr.bf16.mxu1 %v1689_v16  ;;  %v1694_v19 = vld [vmem:[%s1915_s7 + $0xe0] ss:$12 sps:$4 sm:$0xff]   ;;  %v1683_v23 = vld [vmem:[%s1915_s7 + $0x78] ss:$12 sps:$4 sm:$0xff]  }
  0x2d   : > { %1563 = vmatpush3.bf16.msra.mxu1 %v1691_v17  ;;  %v1696_v20 = vld [vmem:[%s1915_s7 + $0x20] ss:$12 sps:$4 sm:$0xff]   ;;  %v1681_v21 = vld [vmem:[%s1915_s7 + $0x7c] ss:$12 sps:$4 sm:$0xff]   ;;  %v1701_v24 = vld [vmem:[%s1915_s7 + $0x38] ss:$12 sps:$4 sm:$0xff]  }
  0x2e   : > { %1007 = vmatpush1.bf16.msra.mxu0 %v1671_v10  ;;  %1564 = vmatprep.subr.bf16.mxu1 %v1694_v19  ;;  %v1684_v25 = vld [vmem:[%s1915_s7 + $0x94] ss:$12 sps:$4 sm:$0xff]   ;;  %v1704_v26 = vld [vmem:[%s1915_s7 + $0x110] ss:$12 sps:$4 sm:$0xff]   ;;  %v1687_v29 = vld [vmem:[%s1915_s7 + $0xac] ss:$12 sps:$4 sm:$0xff]  }
  0x2f   : > { %1008 = vmatprep.subr.bf16.mxu0 %v1672_v11  ;;  %v1706_v27 = vld [vmem:[%s1915_s7 + $0x50] ss:$12 sps:$4 sm:$0xff]   ;;  %v1709_v30 = vld [vmem:[%s1915_s7 + $0x128] ss:$12 sps:$4 sm:$0xff]   ;;  %v1714_v33 = vld [vmem:[%s1915_s7 + $0x140] ss:$12 sps:$4 sm:$0xff]  }
  0x30   : > { %v1686_v28 = vld [vmem:[%s1915_s7 + $0x90] ss:$12 sps:$4 sm:$0xff]   ;;  %v1690_v31 = vld [vmem:[%s1915_s7 + $0xa8] ss:$12 sps:$4 sm:$0xff]   ;;  %v1716_v35 = vld [vmem:[%s1915_s7 + $0x80] ss:$12 sps:$4 sm:$0xff]  }
  0x31   : > { %1565 = vmatpush3.bf16.msra.mxu1 %v1696_v20  ;;  %v1711_v32 = vld [vmem:[%s1915_s7 + $0x68] ss:$12 sps:$4 sm:$0xff]   ;;  %v1692_v34 = vld [vmem:[%s1915_s7 + $0xc4] ss:$12 sps:$4 sm:$0xff]   ;;  %v1695_v36 = vld [vmem:[%s1915_s7 + $0xc0] ss:$12 sps:$4 sm:$0xff]  }
  0x32   : > { %1009 = vmatpush1.bf16.msra.mxu0 %v1674_v12  ;;  %1566 = vmatprep.subr.bf16.mxu1 %v1699_v22  ;;  %v1719_v37 = vld [vmem:[%s1915_s7 + $0x158] ss:$12 sps:$4 sm:$0xff]   ;;  %v1697_v38 = vld [vmem:[%s1915_s7 + $0xdc] ss:$12 sps:$4 sm:$0xff]   ;;  %v1702_v42 = vld [vmem:[%s1915_s7 + $0xf4] ss:$12 sps:$4 sm:$0xff]  }
  0x33   : > { %1010 = vmatprep.subr.bf16.mxu0 %v1675_v13  ;;  %v1700_v39 = vld [vmem:[%s1915_s7 + $0xd8] ss:$12 sps:$4 sm:$0xff]   ;;  %v1724_v41 = vld [vmem:[%s1915_s7 + $0x170] ss:$12 sps:$4 sm:$0xff]   ;;  %v1732_v46 = vld [vmem:[%s1915_s7 + $0x248] ss:$12 sps:$4 sm:$0xff]  }
  0x34   : > { %v1721_v40 = vld [vmem:[%s1915_s7 + $0x98] ss:$12 sps:$4 sm:$0xff]   ;;  %v1726_v43 = vld [vmem:[%s1915_s7 + $0xb0] ss:$12 sps:$4 sm:$0xff]   ;;  %v1710_v48 = vld [vmem:[%s1915_s7 + $0x108] ss:$12 sps:$4 sm:$0xff]  }
  0x35   : > { %1567 = vmatpush3.bf16.msra.mxu1 %v1701_v24  ;;  %v1731_v44 = vld [vmem:[%s1917_s8 + $0x4] ss:$16 sps:$4 sm:$0xff]   ;;  %v1729_v49 = vld [vmem:[%s1917_s8] ss:$16 sps:$4 sm:$0xff]   ;;  %v1712_v52 = vld [vmem:[%s1915_s7 + $0x124] ss:$12 sps:$4 sm:$0xff]  }
  0x36   : > { %1011 = vmatpush1.bf16.msra.mxu0 %v1677_v14  ;;  %1568 = vmatprep.subr.bf16.mxu1 %v1704_v26  ;;  %v1705_v45 = vld [vmem:[%s1915_s7 + $0xf0] ss:$12 sps:$4 sm:$0xff]   ;;  %v1707_v47 = vld [vmem:[%s1915_s7 + $0x10c] ss:$12 sps:$4 sm:$0xff]   ;;  %v1734_v50 = vld [vmem:[%s1915_s7 + $0x188] ss:$12 sps:$4 sm:$0xff]  }
  0x37   : > { %1012 = vmatprep.subr.bf16.mxu0 %v1678_v15  ;;  %1138 = vmatprep.mubr.bf16.mxu1 %v1731_v44  ;;  %v1738_v51 = vld [vmem:[%s1915_s7 + $0x260] ss:$12 sps:$4 sm:$0xff]   ;;  %v1743_v55 = vld [vmem:[%s1915_s7 + $0x278] ss:$12 sps:$4 sm:$0xff]   ;;  %v1717_v56 = vld [vmem:[%s1915_s7 + $0x13c] ss:$12 sps:$4 sm:$0xff]  }
  0x38   : > { %1036 = vmatprep.mubr.bf16.mxu0 %v1731_v44  ;;  %v1715_v53 = vld [vmem:[%s1915_s7 + $0x120] ss:$12 sps:$4 sm:$0xff]   ;;  %v1744_v57 = vld [vmem:[%s1915_s7 + $0x1b8] ss:$12 sps:$4 sm:$0xff]   ;;  %v1748_v59 = vld [vmem:[%s1915_s7 + $0x290] ss:$12 sps:$4 sm:$0xff]  }
  0x39   : > { %1569 = vmatpush3.bf16.msra.mxu1 %v1706_v27  ;;  %v1739_v54 = vld [vmem:[%s1915_s7 + $0x1a0] ss:$12 sps:$4 sm:$0xff]   ;;  %v1720_v58 = vld [vmem:[%s1915_s7 + $0x138] ss:$12 sps:$4 sm:$0xff]   ;;  %v1725_v61 = vld [vmem:[%s1915_s7 + $0x150] ss:$12 sps:$4 sm:$0xff]  }
  0x3a   : > { %1013 = vmatpush1.bf16.msra.mxu0 %v1680_v18  ;;  %1570 = vmatprep.subr.bf16.mxu1 %v1709_v30  ;;  %v1722_v60 = vld [vmem:[%s1915_s7 + $0x154] ss:$12 sps:$4 sm:$0xff]   ;;  %v1749_v62 = vld [vmem:[%s1915_s7 + $0x1d0] ss:$12 sps:$4 sm:$0xff]   ;;  %v1727_v0 = vld [vmem:[%s1915_s7 + $0x16c] ss:$12 sps:$4 sm:$0xff]  }
  0x3b   : > { %1014 = vmatprep.subr.bf16.mxu0 %v1681_v21  ;;  %v1753_v63 = vld [vmem:[%s1915_s7 + $0x2a8] ss:$12 sps:$4 sm:$0xff]   ;;  %v1758_v6 = vld [vmem:[%s1915_s7 + $0x2c0] ss:$12 sps:$4 sm:$0xff]   ;;  %v1737_v7 = vld [vmem:[%s1915_s7 + $0x184] ss:$12 sps:$4 sm:$0xff]  }
  0x3c   : > { %v328_v1 = vld [vmem:[%s1917_s8 + $0x20] sm:$0xff]  ;;  %v1774_v12 = vld [vmem:[%s1917_s8 + $0xc] ss:$16 sps:$4 sm:$0xff]   ;;  %v1772_v20 = vld [vmem:[%s1917_s8 + $0x8] ss:$16 sps:$4 sm:$0xff]   ;;  %p1544_p11 = scmp.ne.s32.totalorder %s1834_s14, 6 }
  0x3d   : > { %1571 = vmatpush3.bf16.msra.mxu1 %v1711_v32  ;;  %v1733_v2 = vld [vmem:[%s1915_s7 + $0x168] ss:$12 sps:$4 sm:$0xff]   ;;  %v1445_v4 = vcombine.high %v328_v1, %v328_v1  ;;  %v1444_v5 = vcombine.low %v328_v1, %v328_v1  ;;  %v1735_v8 = vld [vmem:[%s1915_s7 + $0x180] ss:$12 sps:$4 sm:$0xff]   ;;  %v1765_v10 = vld [vmem:[%s1915_s7 + $0x2d8] ss:$12 sps:$4 sm:$0xff]  }
  0x3e   : > { %1015 = vmatpush1.bf16.msra.mxu0 %v1683_v23  ;;  %1572 = vmatprep.subr.bf16.mxu1 %v1714_v33  ;;  %v1754_v3 = vld [vmem:[%s1915_s7 + $0x1e8] ss:$12 sps:$4 sm:$0xff]   ;;  %v1759_v9 = vld [vmem:[%s1915_s7 + $0x200] ss:$12 sps:$4 sm:$0xff]   ;;  %v1740_v13 = vld [vmem:[%s1915_s7 + $0x198] ss:$12 sps:$4 sm:$0xff]  }
  0x3f   : > { %1016 = vmatprep.subr.bf16.mxu0 %v1684_v25  ;;  %v1742_v11 = vld [vmem:[%s1915_s7 + $0x19c] ss:$12 sps:$4 sm:$0xff]   ;;  %v1766_v14 = vld [vmem:[%s1915_s7 + $0x218] ss:$12 sps:$4 sm:$0xff]   ;;  %v1747_v16 = vld [vmem:[%s1915_s7 + $0x1b4] ss:$12 sps:$4 sm:$0xff]  }
  0x40   : > { %v1770_v15 = vld [vmem:[%s1915_s7 + $0x2f0] ss:$12 sps:$4 sm:$0xff]   ;;  %v1752_v19 = vld [vmem:[%s1915_s7 + $0x1cc] ss:$12 sps:$4 sm:$0xff]   ;;  %v1750_v21 = vld [vmem:[%s1915_s7 + $0x1c8] ss:$12 sps:$4 sm:$0xff]  }
  0x41   : > { %1573 = vmatpush3.bf16.msra.mxu1 %v1716_v35  ;;  %v1771_v17 = vld [vmem:[%s1915_s7 + $0x230] ss:$12 sps:$4 sm:$0xff]   ;;  %v1755_v25 = vld [vmem:[%s1915_s7 + $0x1e0] ss:$12 sps:$4 sm:$0xff]   ;;  %v1775_v32 = vld [vmem:[%s1915_s7 + $0x228] ss:$12 sps:$4 sm:$0xff]  }
  0x42   : > { %1017 = vmatpush1.bf16.msra.mxu0 %v1686_v28  ;;  %1574 = vmatprep.subr.bf16.mxu1 %v1719_v37  ;;  %v1745_v18 = vld [vmem:[%s1915_s7 + $0x1b0] ss:$12 sps:$4 sm:$0xff]   ;;  %v1761_v28 = vld [vmem:[%s1915_s7 + $0x1f8] ss:$12 sps:$4 sm:$0xff]   ;;  %v1786_v37 = vld [vmem:[%s1915_s7 + $0x274] ss:$12 sps:$4 sm:$0xff]  }
  0x43   : > { %1018 = vmatprep.subr.bf16.mxu0 %v1687_v29  ;;  %v329_v22 = vld [vmem:[%s1917_s8 + $0x28] sm:$0xff]  ;;  %v1763_v26 = vld [vmem:[%s1915_s7 + $0x1fc] ss:$12 sps:$4 sm:$0xff]  }
  0x44   : > { %v1757_v23 = vld [vmem:[%s1915_s7 + $0x1e4] ss:$12 sps:$4 sm:$0xff]   ;;  %v1447_v24 = vcombine.high %v329_v22, %v329_v22  ;;  %v1446_v27 = vcombine.low %v329_v22, %v329_v22  ;;  %v1769_v29 = vld [vmem:[%s1915_s7 + $0x214] ss:$12 sps:$4 sm:$0xff]   ;;  %v1783_v35 = vld [vmem:[%s1915_s7 + $0x25c] ss:$12 sps:$4 sm:$0xff]  }
  0x45   : > { %1575 = vmatpush3.bf16.msra.mxu1 %v1721_v40  ;;  %v1767_v30 = vld [vmem:[%s1915_s7 + $0x210] ss:$12 sps:$4 sm:$0xff]   ;;  %v1787_v40 = vld [vmem:[%s1915_s7 + $0x288] ss:$12 sps:$4 sm:$0xff]   ;;  %v1793_v44 = vld [vmem:[%s1915_s7 + $0x2b8] ss:$12 sps:$4 sm:$0xff]  }
  0x46   : > { %1019 = vmatpush1.bf16.msra.mxu0 %v1690_v31  ;;  %1576 = vmatprep.subr.bf16.mxu1 %v1724_v41  ;;  %v1777_v31 = vld [vmem:[%s1915_s7 + $0x22c] ss:$12 sps:$4 sm:$0xff]   ;;  %v1780_v33 = vld [vmem:[%s1915_s7 + $0x244] ss:$12 sps:$4 sm:$0xff]  }
  0x47   : > { %1020 = vmatprep.subr.bf16.mxu0 %v1692_v34  ;;  %v1778_v34 = vld [vmem:[%s1915_s7 + $0x240] ss:$12 sps:$4 sm:$0xff]   ;;  %v1792_v41 = vld [vmem:[%s1915_s7 + $0x2a4] ss:$12 sps:$4 sm:$0xff]  }
  0x49   : > { %1577 = vmatpush3.bf16.msra.mxu1 %v1726_v43  ;;  %v1795_v43 = vld [vmem:[%s1915_s7 + $0x2bc] ss:$12 sps:$4 sm:$0xff]  }
  0x4a   : > { %1021 = vmatpush1.bf16.msra.mxu0 %v1695_v36  ;;  %1590 = vmatprep.subr.bf16.mxu1 %v1732_v46  ;;  %v1781_v36 = vld [vmem:[%s1915_s7 + $0x258] ss:$12 sps:$4 sm:$0xff]   ;;  %v1798_v46 = vld [vmem:[%s1915_s7 + $0x2d0] ss:$12 sps:$4 sm:$0xff]  }
  0x4b   : > { %1022 = vmatprep.subr.bf16.mxu0 %v1697_v38  ;;  %v1784_v38 = vld [vmem:[%s1915_s7 + $0x270] ss:$12 sps:$4 sm:$0xff]  }
  0x4c   : > { %1139 = vmatmul.mubr.bf16.vlgmr.msra.gmra.mrb[0].mxu1 %v1729_v49 }
  0x4d   : > { %1591 = vmatpush3.bf16.msra.mxu1 %v1734_v50  ;;  %1146 = vmatprep.mubr.bf16.mxu1 %v1445_v4 }
  0x4e   : > { %1023 = vmatpush1.bf16.msra.mxu0 %v1700_v39  ;;  %1592 = vmatprep.subr.bf16.mxu1 %v1738_v51  ;;  %v1789_v39 = vld [vmem:[%s1915_s7 + $0x28c] ss:$12 sps:$4 sm:$0xff]  }
  0x4f   : > { %1024 = vmatprep.subr.bf16.mxu0 %v1702_v42  ;;  %v1790_v42 = vld [vmem:[%s1915_s7 + $0x2a0] ss:$12 sps:$4 sm:$0xff]  }
  0x51   : > { %1593 = vmatpush3.bf16.msra.mxu1 %v1739_v54 }
  0x52   : > { %1025 = vmatpush1.bf16.msra.mxu0 %v1705_v45  ;;  %1594 = vmatprep.subr.bf16.mxu1 %v1743_v55  ;;  %v1800_v45 = vld [vmem:[%s1915_s7 + $0x2d4] ss:$12 sps:$4 sm:$0xff]  }
  0x53   : > { %1026 = vmatprep.subr.bf16.mxu0 %v1707_v47  ;;  %v1803_v47 = vld [vmem:[%s1915_s7 + $0x2ec] ss:$12 sps:$4 sm:$0xff]  }
  0x54   : > { %1147 = vmatmul.mubr.bf16.gmra.mrb[4].mxu1 %v1444_v5 }
  0x55   : > { %1595 = vmatpush3.bf16.msra.mxu1 %v1744_v57  ;;  %1186 = vmatprep.mubr.bf16.mxu1 %v1774_v12 }
  0x56   : > { %1027 = vmatpush1.bf16.msra.mxu0 %v1710_v48  ;;  %1596 = vmatprep.subr.bf16.mxu1 %v1748_v59  ;;  %v1801_v48 = vld [vmem:[%s1915_s7 + $0x2e8] ss:$12 sps:$4 sm:$0xff]  }
  0x57   : > { %1028 = vmatprep.subr.bf16.mxu0 %v1712_v52 }
  0x59   : > { %1597 = vmatpush3.bf16.msra.mxu1 %v1749_v62 }
  0x5a   : > { %1029 = vmatpush1.bf16.msra.mxu0 %v1715_v53  ;;  %1598 = vmatprep.subr.bf16.mxu1 %v1753_v63 }
  0x5b   : > { %1030 = vmatprep.subr.bf16.mxu0 %v1717_v56 }
  0x5d   : > { %1599 = vmatpush3.bf16.msra.mxu1 %v1754_v3 }
  0x5e   : > { %1031 = vmatpush1.bf16.msra.mxu0 %v1720_v58  ;;  %1600 = vmatprep.subr.bf16.mxu1 %v1758_v6 }
  0x5f   : > { %1032 = vmatprep.subr.bf16.mxu0 %v1722_v60 }
  0x61   : > { %1601 = vmatpush3.bf16.msra.mxu1 %v1759_v9 }
  0x62   : > { %1033 = vmatpush1.bf16.msra.mxu0 %v1725_v61  ;;  %1602 = vmatprep.subr.bf16.mxu1 %v1765_v10 }
  0x63   : > { %1034 = vmatprep.subr.bf16.mxu0 %v1727_v0 }
  0x65   : > { %1603 = vmatpush3.bf16.msra.mxu1 %v1766_v14 }
  0x66   : > { %1035 = vmatpush1.bf16.msra.mxu0 %v1733_v2  ;;  %1604 = vmatprep.subr.bf16.mxu1 %v1770_v15 }
  0x67   : > { %1055 = vmatprep.subr.bf16.mxu0 %v1737_v7 }
  0x69   : > { %1037 = vmatmul.mubr.bf16.vlgmr.msra.gmra.mrb[0].mxu0 %v1729_v49  ;;  %1605 = vmatpush3.bf16.msra.mxu1 %v1771_v17 }
  0x6a   : > { %1056 = vmatpush1.bf16.msra.mxu0 %v1735_v8  ;;  %1046 = vmatprep.mubr.bf16.mxu0 %v1445_v4  ;;  %v317_v4 = vld [vmem:[#allocation2 + $0x10] sm:$0xff]  ;;  %v320_v8 = vld [vmem:[#allocation2 + $0x28] sm:$0xff] }
  0x6b   : > { %1057 = vmatprep.subr.bf16.mxu0 %v1742_v11 }
  0x6c   : > { %1187 = vmatmul.mubr.bf16.vlgmr.msra.gmra.mrb[8].mxu1 %v1772_v20 }
  0x6d   : > { %1194 = vmatprep.mubr.bf16.mxu1 %v1447_v24 }
  0x6e   : > { %1058 = vmatpush1.bf16.msra.mxu0 %v1740_v13 }
  0x6f   : > { %1059 = vmatprep.subr.bf16.mxu0 %v1747_v16  ;;  %v323_v16 = vld [vmem:[#allocation2 + $0x40] sm:$0xff] }
  0x71   : > { %1047 = vmatmul.mubr.bf16.gmra.mrb[4].mxu0 %v1444_v5 }
  0x72   : > { %1060 = vmatpush1.bf16.msra.mxu0 %v1745_v18  ;;  %1087 = vmatprep.mubr.bf16.mxu0 %v1774_v12 }
  0x73   : > { %1061 = vmatprep.subr.bf16.mxu0 %v1752_v19 }
  0x74   : > { %1195 = vmatmul.mubr.bf16.gmra.mrb[12].mxu1 %v1446_v27 }
  0x76   : > { %1062 = vmatpush1.bf16.msra.mxu0 %v1750_v21  ;;  %v316_v21 = vld [vmem:[#allocation2 + $0x8] sm:$0xff] }
  0x77   : > { %1063 = vmatprep.subr.bf16.mxu0 %v1757_v23  ;;  %v318_v23 = vld [vmem:[#allocation2 + $0x18] sm:$0xff] }
  0x7a   : > { %1064 = vmatpush1.bf16.msra.mxu0 %v1755_v25 }
  0x7b   : > { %1065 = vmatprep.subr.bf16.mxu0 %v1763_v26  ;;  %v319_v26 = vld [vmem:[#allocation2 + $0x20] sm:$0xff] }
  0x7e   : > { %1066 = vmatpush1.bf16.msra.mxu0 %v1761_v28 }
  0x7f   : > { %1067 = vmatprep.subr.bf16.mxu0 %v1769_v29 }
  0x82   : > { %1068 = vmatpush1.bf16.msra.mxu0 %v1767_v30 }
  0x83   : > { %1069 = vmatprep.subr.bf16.mxu0 %v1777_v31 }
  0x86   : > { %1070 = vmatpush1.bf16.msra.mxu0 %v1775_v32  ;;  %v321_v32 = vld [vmem:[#allocation2 + $0x30] sm:$0xff] }
  0x87   : > { %1071 = vmatprep.subr.bf16.mxu0 %v1780_v33 }
  0x8a   : > { %1072 = vmatpush1.bf16.msra.mxu0 %v1778_v34 }
  0x8b   : > { %1073 = vmatprep.subr.bf16.mxu0 %v1783_v35  ;;  %v322_v35 = vld [vmem:[#allocation2 + $0x38] sm:$0xff] }
  0x8e   : > { %1074 = vmatpush1.bf16.msra.mxu0 %v1781_v36 }
  0x8f   : > { %1075 = vmatprep.subr.bf16.mxu0 %v1786_v37 }
  0x92   : > { %1076 = vmatpush1.bf16.msra.mxu0 %v1784_v38 }
  0x93   : > { %1077 = vmatprep.subr.bf16.mxu0 %v1789_v39 }
  0x96   : > { %1078 = vmatpush1.bf16.msra.mxu0 %v1787_v40 }
  0x97   : > { %1079 = vmatprep.subr.bf16.mxu0 %v1792_v41 }
  0x9a   : > { %1080 = vmatpush1.bf16.msra.mxu0 %v1790_v42  ;;  %v1235_v42 = vlaneseq (!%p1544_p11) }
  0x9b   : > { %1081 = vmatprep.subr.bf16.mxu0 %v1795_v43 }
  0x9c   : > { %v1236_v43 = vshrl.u32 (!%p1544_p11), %v1235_v42, 7 }
  0x9e   : > { %1082 = vmatpush1.bf16.msra.mxu0 %v1793_v44  ;;  %v1233_v44 = vld [vmem:[%s2061_s2] sm:$0x7] (!%p1544_p11) }
  0x9f   : > { %1083 = vmatprep.subr.bf16.mxu0 %v1800_v45 }
  0xa2   : > { %1084 = vmatpush1.bf16.msra.mxu0 %v1798_v46 }
  0xa3   : > { %1085 = vmatprep.subr.bf16.mxu0 %v1803_v47  ;;  %v1237_v47 = vsub.s32 (!%p1544_p11), 0, %v1236_v43 }
  0xa6   : > { %1086 = vmatpush1.bf16.msra.mxu0 %v1801_v48  ;;  %v1241_v48 = vsub.s32 (!%p1544_p11), 1, %v1236_v43 }
  0xa9   : > { %1088 = vmatmul.mubr.bf16.vlgmr.msra.gmra.mrb[0].mxu0 %v1772_v20  ;;  %v315_v20 = vld [vmem:[#allocation2] sm:$0xff] }
  0xaa   : > { %1097 = vmatprep.mubr.bf16.mxu0 %v1447_v24 }
  0xb1   : > { %1098 = vmatmul.mubr.bf16.gmra.mrb[8].mxu0 %v1446_v27 }
 0x11f   : > { %v1578_v49 = vpop.f32.mrb[0].mxu1 }
 0x120   : > { %v1579_v50 = vpop.f32.mrb[1].mxu1 }
 0x121   : > { %v1580_v51 = vadd.f32 %v1579_v50, %v1578_v49  ;;  %v1581_v52 = vpop.f32.mrb[2].mxu1  ;;  %v1245_v49 = vsub.s32 (!%p1544_p11), 2, %v1236_v43 }
 0x122   : > { %v1582_v53 = vpop.f32.mrb[3].mxu1 }
 0x123   : > { %v1583_v54 = vadd.f32 %v1582_v53, %v1581_v52  ;;  %v1238_v53 = vrot.slane (!%p1544_p11), %v1233_v44, %v1237_v47 }
 0x127   : > { %v1584_v55 = vpop.f32.mrb[4].mxu1 }
 0x128   : > { %v1585_v56 = vpop.f32.mrb[5].mxu1 }
 0x129   : > { %v1586_v57 = vadd.f32 %v1585_v56, %v1584_v55  ;;  %v1587_v58 = vpop.f32.mrb[6].mxu1  ;;  %v1246_v55 = vrot.slane (!%p1544_p11), %v1233_v44, %v1245_v49 }
 0x12a   : > { %v1588_v59 = vpop.f32.mrb[7].mxu1 }
 0x13f   : > { %v1606_v63 = vpop.f32.mrb[8].mxu1 }
 0x140   : > { %v1607_v1 = vpop.f32.mrb[9].mxu1 }
 0x141   : > { %v1608_v2 = vadd.f32 %v1607_v1, %v1606_v63  ;;  %v1609_v3 = vpop.f32.mrb[10].mxu1 }
 0x142   : > { %v1610_v5 = vpop.f32.mrb[11].mxu1 }
 0x143   : > { %v1189_v6 = vadd.f32 %v1608_v2, %v1580_v51  ;;  %v1611_v7 = vadd.f32 %v1610_v5, %v1609_v3 }
 0x144   : > { %v1048_v60 = vpop.f32.mrb[4].mxu0 }
 0x145   : > { %v1050_v61 = vpop.f32.mrb[5].mxu0  ;;  %v1204_v9 = vadd.f32 %v1189_v6, %v317_v4  ;;  %v1192_v10 = vadd.f32 %v1611_v7, %v1583_v54  ;;  %v1242_v54 = vrot.slane (!%p1544_p11), %v1233_v44, %v1241_v48 }
 0x146   : > { %v1052_v62 = vpop.f32.mrb[6].mxu0 }
 0x147   : > { %v1053_v0 = vpop.f32.mrb[7].mxu0  ;;  %1213 = vst [vmem:[#allocation2 + $0x10] sm:$0xff] %v1204_v9  ;;  %v1207_v11 = vadd.f32 %v1192_v10, %v320_v8  ;;  %v1612_v12 = vpop.f32.mrb[12].mxu1 }
 0x148   : > { %v1613_v13 = vpop.f32.mrb[13].mxu1 }
 0x149   : > { %1216 = vst [vmem:[#allocation2 + $0x28] sm:$0xff] %v1207_v11  ;;  %v1614_v14 = vadd.f32 %v1613_v13, %v1612_v12  ;;  %v1615_v15 = vpop.f32.mrb[14].mxu1 }
 0x14a   : > { %v1616_v17 = vpop.f32.mrb[15].mxu1 }
 0x14b   : > { %v1197_v18 = vadd.f32 %v1614_v14, %v1586_v57 }
 0x14d   : > { %v1210_v19 = vadd.f32 %v1197_v18, %v323_v16 }
 0x14e   : > { %v1226_v50 = vld [vmem:[#allocation2 + $0x10] sm:$0xff] (!%p1544_p11) }
 0x14f   : > { %1219 = vst [vmem:[#allocation2 + $0x40] sm:$0xff] %v1210_v19 }
 0x150   : > { %v1229_v56 = vld [vmem:[#allocation2 + $0x28] sm:$0xff] (!%p1544_p11) }
 0x151   : > { %v1255_v0 = vadd.f32 (!%p1544_p11), %v1246_v55, %v1229_v56 }
 0x153   : > { %v1264_v9 = vmax.f32 (!%p1544_p11), %v1255_v0, 0.0 }
 0x155   : > { %v1559_v16 = vpack.c.bf16 (!%p1544_p11), %v1264_v9, %v1264_v9 }
 0x156   : > { %v1232_v3 = vld [vmem:[#allocation2 + $0x40] sm:$0xff] (!%p1544_p11) }
 0x157   : > { %v1258_v14 = vadd.f32 (!%p1544_p11), %v1246_v55, %v1232_v3  ;;  %1304 = vst [vmem:[%s2062_s3 + $0x14] sm:$0xf] (!%p1544_p11), %v1559_v16 }
 0x159   : > { %v1267_v18 = vmax.f32 (!%p1544_p11), %v1258_v14, 0.0 }
 0x15b   : > { %v1561_v19 = vpack.c.bf16 (!%p1544_p11), %v1267_v18, %v1267_v18 }
 0x15d   : > { %1306 = vst [vmem:[%s2062_s3 + $0x20] sm:$0xf] (!%p1544_p11), %v1561_v19 }
 0x17c   : > { %v1089_v22 = vpop.f32.mrb[0].mxu0 }
 0x17d   : > { %v1202_v24 = vadd.f32 %v1089_v22, %v315_v20  ;;  %v1091_v25 = vpop.f32.mrb[1].mxu0 }
 0x17e   : > { %v1203_v27 = vadd.f32 %v1091_v25, %v316_v21  ;;  %v1093_v28 = vpop.f32.mrb[2].mxu0 }
 0x17f   : > { %1211 = vst [vmem:[#allocation2] sm:$0xff] %v1202_v24  ;;  %v1205_v29 = vadd.f32 %v1093_v28, %v318_v23  ;;  %v1095_v30 = vpop.f32.mrb[3].mxu0 }
 0x180   : > { %1212 = vst [vmem:[#allocation2 + $0x8] sm:$0xff] %v1203_v27  ;;  %v1206_v31 = vadd.f32 %v1095_v30, %v319_v26 }
 0x181   : > { %1214 = vst [vmem:[#allocation2 + $0x18] sm:$0xff] %v1205_v29 }
 0x182   : > { %1215 = vst [vmem:[#allocation2 + $0x20] sm:$0xff] %v1206_v31 }
 0x184   : > { %v1099_v33 = vpop.f32.mrb[8].mxu0  ;;  %1223 = sbr.rel (%p1544_p11) target bundleno = 409 (0x199), region = 63 }
 0x185   : > { %v1100_v34 = vadd.f32 %v1099_v33, %v1048_v60  ;;  %v1101_v36 = vpop.f32.mrb[9].mxu0 }
 0x186   : > { %v1102_v37 = vadd.f32 %v1101_v36, %v1050_v61  ;;  %v1103_v38 = vpop.f32.mrb[10].mxu0  ;;  %v1224_v45 = vld [vmem:[#allocation2] sm:$0xff] (!%p1544_p11)  ;;  %v1252_v61 = vadd.f32 (!%p1544_p11), %v1246_v55, %v1226_v50 }
 0x187   : > { %v1208_v39 = vadd.f32 %v1100_v34, %v321_v32  ;;  %v1104_v40 = vpop.f32.mrb[11].mxu0  ;;  %v1225_v46 = vld [vmem:[#allocation2 + $0x8] sm:$0xff] (!%p1544_p11)  ;;  %v1250_v59 = vadd.f32 (!%p1544_p11), %v1238_v53, %v1224_v45 }
 0x188   : > { %v1209_v41 = vadd.f32 %v1102_v37, %v322_v35  ;;  %v1227_v51 = vld [vmem:[#allocation2 + $0x18] sm:$0xff] (!%p1544_p11)  ;;  %v1251_v60 = vadd.f32 (!%p1544_p11), %v1242_v54, %v1225_v46  ;;  %v1261_v6 = vmax.f32 (!%p1544_p11), %v1252_v61, 0.0 }
 0x189   : > { %1217 = vst [vmem:[#allocation2 + $0x30] sm:$0xff] %v1208_v39  ;;  %v1228_v52 = vld [vmem:[#allocation2 + $0x20] sm:$0xff] (!%p1544_p11)  ;;  %v1253_v62 = vadd.f32 (!%p1544_p11), %v1238_v53, %v1227_v51  ;;  %v1259_v4 = vmax.f32 (!%p1544_p11), %v1250_v59, 0.0 }
 0x18a   : > { %1218 = vst [vmem:[#allocation2 + $0x38] sm:$0xff] %v1209_v41  ;;  %v1254_v63 = vadd.f32 (!%p1544_p11), %v1242_v54, %v1228_v52  ;;  %v1260_v5 = vmax.f32 (!%p1544_p11), %v1251_v60, 0.0  ;;  %v1557_v13 = vpack.c.bf16 (!%p1544_p11), %v1261_v6, %v1261_v6 }
 0x18b   : > { %v1262_v7 = vmax.f32 %v1253_v62, 0.0 }
 0x18c   : > { %v1263_v8 = vmax.f32 %v1254_v63, 0.0  ;;  %v1556_v12 = vpack.c.bf16 %v1260_v5, %v1259_v4  ;;  %1302 = vst [vmem:[%s2062_s3 + $0x8] sm:$0xf] %v1557_v13 }
 0x18e   : > { %v1558_v15 = vpack.c.bf16 %v1263_v8, %v1262_v7  ;;  %1301 = vst [vmem:[%s2062_s3] sm:$0xff] %v1556_v12 }
 0x190   : > { %v1230_v57 = vld [vmem:[#allocation2 + $0x30] sm:$0xff]  ;;  %1303 = vst [vmem:[%s2062_s3 + $0xc] sm:$0xff] %v1558_v15 }
 0x191   : > { %v1231_v58 = vld [vmem:[#allocation2 + $0x38] sm:$0xff]  ;;  %v1256_v1 = vadd.f32 %v1238_v53, %v1230_v57 }
 0x192   : > { %v1257_v2 = vadd.f32 %v1242_v54, %v1231_v58 }
 0x193   : > { %v1265_v10 = vmax.f32 %v1256_v1, 0.0 }
 0x194   : > { %v1266_v11 = vmax.f32 %v1257_v2, 0.0 }
 0x196   : > { %v1560_v17 = vpack.c.bf16 %v1266_v11, %v1265_v10 }
 0x198   : > { %1305 = vst [vmem:[%s2062_s3 + $0x18] sm:$0xff] %v1560_v17 }
 0x199 PF: > { %s13_s16 = sadd.s32 1, %s1842_s16   ;;  %s2063_s12 = smov %s1830_s13 }
 0x19a   : > { %p10_p12 = scmp.ge.s32.totalorder %s13_s16, 9   ;;  %s2064_s13 = smov %s1900_s20 }
 0x19b   : > { %s2065_s14 = smov %s1838_s15  ;;  %s2066_s15 = smov %s2068_s17 }
 0x19c   :  { %12 = sbr.rel (!%p10_p12) target bundleno = 3 (0x3), region = 104 }

// kernel: caffenet_pool5_forward.9
= control target key start
LH: loop header
LB: loop body
LE: loop exit
PB: predicated region body
PF: predicated region fallthrough
CT: control target
= control target key end

     0   :  { %s1322_s12 = smov 0   ;;  %s1324_s13 = smov 0   ;;  %s1484_s0 = inlined_call_operand.vmem [shape: bf16[24,3584], index: 0, kind: input, shape index: {}]   ;;  %s1485_s1 = inlined_call_operand.vmem [shape: bf16[3584,256], index: 1, kind: input, shape index: {}]   ;;  %s1486_s2 = inlined_call_operand.vmem [shape: f32[1,256], index: 2, kind: input, shape index: {}]   ;;  %s1487_s3 = inlined_call_operand.vmem [shape: f32[24,256], index: 3, kind: output, shape index: {}]  }
   0x1   :  { %s1326_s14 = smov 0   ;;  %s1328_s15 = smov 0  }
   0x2   :  { %s1330_s16 = smov 0  }
   0x3 LB: > { %s25_s17 = sadd.s32 1, %s1295_s15  ;;  %p48_p1 = scmp.ne.s32.totalorder %s1287_s13, %s1283_s12  ;;  %s1299_s16 = sphi %s1330_s16, %s13_s16   ;;  %s1295_s15 = sphi %s1328_s15, %s1491_s15   ;;  %s1291_s14 = sphi %s1326_s14, %s1490_s14   ;;  %s1287_s13 = sphi %s1324_s13, %s1489_s13   ;;  %s1283_s12 = sphi %s1322_s12, %s1488_s12  }
   0x4   : > { %p26_p0 = scmp.ge.s32.totalorder %s25_s17, 7  ;;  %p49_p2 = scmp.eq.s32.totalorder %s1299_s16, 0 }
   0x5   : > { %s41_s19 = sadd.s32 1, %s1287_s13  ;;  %p1021_p5 = scmp.ge.s32.totalorder %s1299_s16, 7 }
   0x6   : > { %s1493_s17 = smov (%p26_p0, %s25_s17), 0  ;;  %p50_p3 = por %p49_p2, %p48_p1 }
   0x7   : > { %s37_s18 = ssub.s32 %s1295_s15, %s1493_s17  ;;  %164 = sbr.rel (%p1021_p5) target bundleno = 22 (0x16), region = 20 }
   0x8   : > { %p39_p4 = scmp.eq.s32.totalorder %s37_s18, 0 }
   0xa   : > { %s1357_s20 = scalar_select %p39_p4, %s1287_s13, %s41_s19  }
   0xe   : > { %167 = sbr.rel (!%p50_p3) target bundleno = 22 (0x16), region = 24  ;;  %s169_s21 = sand.u32 (%p50_p3), 1, %s1287_s13  }
   0xf   : > { %s1106_s22 = sshll.u32 (%p50_p3), %s1295_s15, 4  ;;  %s1112_s23 = smul.u32 (%p50_p3), 48, %s169_s21 }
  0x10   : > { %s177_s26 = scalar_lea.vmem (%p50_p3), %s1484_s0, %s1106_s22 }
  0x11   : > { %v190_v0 = vld [vmem:[%s177_s26] sm:$0xff] (%p50_p3)  ;;  %v192_v1 = vld [vmem:[%s177_s26 + $0x8] sm:$0xff] (%p50_p3)  ;;  %v194_v2 = vld [vmem:[%s177_s26 + $0x70] sm:$0xff] (%p50_p3)  ;;  %s171_s27 = scalar_lea.vmem (%p50_p3), [#allocation3], %s1112_s23 }
  0x12   : > { %v196_v3 = vld [vmem:[%s177_s26 + $0x78] sm:$0xff] (%p50_p3)  ;;  %v198_v4 = vld [vmem:[%s177_s26 + $0xe0] sm:$0xff] (%p50_p3)  ;;  %v200_v5 = vld [vmem:[%s177_s26 + $0xe8] sm:$0xff] (%p50_p3)  ;;  %191 = vst [vmem:[%s171_s27] sm:$0xff] (%p50_p3), %v190_v0 }
  0x13   : > { %193 = vst [vmem:[%s171_s27 + $0x8] sm:$0xff] (%p50_p3), %v192_v1  ;;  %195 = vst [vmem:[%s171_s27 + $0x10] sm:$0xff] (%p50_p3), %v194_v2 }
  0x14   : > { %197 = vst [vmem:[%s171_s27 + $0x18] sm:$0xff] (%p50_p3), %v196_v3  ;;  %199 = vst [vmem:[%s171_s27 + $0x20] sm:$0xff] (%p50_p3), %v198_v4 }
  0x15   : > { %201 = vst [vmem:[%s171_s27 + $0x28] sm:$0xff] %v200_v5 }
  0x16 PF: > { %p1024_p6 = scmp.ge.s32.totalorder %s1299_s16, 1  ;;  %p221_p7 = scmp.lt.s32.totalorder %s1299_s16, 8 }
  0x18   : > { %p222_p8 = pnand %p1024_p6, %p221_p7 }
  0x19   : > { %s228_s28 = sand.u32 (!%p222_p8), 1, %s1283_s12   ;;  %s1025_s29 = sshll.u32 (!%p222_p8), %s1291_s14, 6 }
  0x1a   : > { %225 = sbr.rel (%p222_p8) target bundleno = 344 (0x158), region = 51  ;;  %p274_p9 = scmp.lt.s32.totalorder (!%p222_p8), %s1025_s29, 447 }
  0x1b   : > { %s1113_s30 = smul.u32 (!%p222_p8), 48, %s228_s28  ;;  %p1028_p10 = scmp.ne.s32.totalorder (!%p222_p8), %s1291_s14, 0 }
  0x1d   : > { %s1374_s8 = scalar_lea.vmem (!%p222_p8), [#allocation3], %s1113_s30 }
  0x21   : > { %s1495_s29 = smov (!%p274_p9, %s1025_s29), 447  ;;  %304 = sbr.rel (%p1028_p10) target bundleno = 40 (0x28), region = 59 }
  0x22   : > { %s1107_s4 = sshll.u32 %s1495_s29, 3  ;;  %v1301_v6 = vmov (!%p1028_p10), 0.0  }
  0x23   : > { %s1372_s7 = scalar_lea.vmem %s1485_s1, %s1107_s4  ;;  %305 = vst [vmem:[#allocation2] sm:$0xff] (!%p1028_p10), %v1301_v6  ;;  %306 = vst [vmem:[#allocation2 + $0x8] sm:$0xff] (!%p1028_p10), %v1301_v6 }
  0x24   : > { %307 = vst [vmem:[#allocation2 + $0x10] sm:$0xff] (!%p1028_p10), %v1301_v6  ;;  %308 = vst [vmem:[#allocation2 + $0x18] sm:$0xff] (!%p1028_p10), %v1301_v6 }
  0x25   : > { %309 = vst [vmem:[#allocation2 + $0x20] sm:$0xff] (!%p1028_p10), %v1301_v6  ;;  %310 = vst [vmem:[#allocation2 + $0x28] sm:$0xff] (!%p1028_p10), %v1301_v6 }
  0x28 PF: > { %v1155_v7 = vld [vmem:[%s1372_s7 + $0x4] ss:$8 sps:$4 sm:$0xff]   ;;  %v1159_v9 = vld [vmem:[%s1372_s7] ss:$8 sps:$4 sm:$0xff]   ;;  %v1161_v11 = vld [vmem:[%s1372_s7 + $0x14] ss:$8 sps:$4 sm:$0xff]  }
  0x29   : > { %v1157_v8 = vld [vmem:[%s1372_s7 + $0x104] ss:$8 sps:$4 sm:$0xff]   ;;  %741 = vmatprep.subr.bf16.mxu1 %v1155_v7  ;;  %v1160_v10 = vld [vmem:[%s1372_s7 + $0x100] ss:$8 sps:$4 sm:$0xff]   ;;  %v1163_v12 = vld [vmem:[%s1372_s7 + $0x114] ss:$8 sps:$4 sm:$0xff]  }
  0x2a   : > { %792 = vmatprep.subr.bf16.mxu0 %v1157_v8  ;;  %742 = vmatpush1.bf16.msra.mxu1 %v1159_v9  ;;  %v1165_v13 = vld [vmem:[%s1372_s7 + $0x10] ss:$8 sps:$4 sm:$0xff]   ;;  %v1167_v15 = vld [vmem:[%s1372_s7 + $0x24] ss:$8 sps:$4 sm:$0xff]   ;;  %v1171_v17 = vld [vmem:[%s1372_s7 + $0x20] ss:$8 sps:$4 sm:$0xff]  }
  0x2b   : > { %793 = vmatpush1.bf16.msra.mxu0 %v1160_v10  ;;  %743 = vmatprep.subr.bf16.mxu1 %v1161_v11  ;;  %v1166_v14 = vld [vmem:[%s1372_s7 + $0x110] ss:$8 sps:$4 sm:$0xff]   ;;  %v1169_v16 = vld [vmem:[%s1372_s7 + $0x124] ss:$8 sps:$4 sm:$0xff]   ;;  %v1172_v18 = vld [vmem:[%s1372_s7 + $0x120] ss:$8 sps:$4 sm:$0xff]  }
  0x2c   : > { %794 = vmatprep.subr.bf16.mxu0 %v1163_v12  ;;  %v1173_v19 = vld [vmem:[%s1372_s7 + $0x34] ss:$8 sps:$4 sm:$0xff]   ;;  %v1177_v21 = vld [vmem:[%s1372_s7 + $0x30] ss:$8 sps:$4 sm:$0xff]   ;;  %v1179_v23 = vld [vmem:[%s1372_s7 + $0x44] ss:$8 sps:$4 sm:$0xff]  }
  0x2d   : > { %v1175_v20 = vld [vmem:[%s1372_s7 + $0x134] ss:$8 sps:$4 sm:$0xff]   ;;  %v1178_v22 = vld [vmem:[%s1372_s7 + $0x130] ss:$8 sps:$4 sm:$0xff]   ;;  %v1181_v24 = vld [vmem:[%s1372_s7 + $0x144] ss:$8 sps:$4 sm:$0xff]  }
  0x2e   : > { %744 = vmatpush1.bf16.msra.mxu1 %v1165_v13  ;;  %v1183_v25 = vld [vmem:[%s1372_s7 + $0x40] ss:$8 sps:$4 sm:$0xff]   ;;  %v1185_v27 = vld [vmem:[%s1372_s7 + $0x54] ss:$8 sps:$4 sm:$0xff]   ;;  %v1189_v29 = vld [vmem:[%s1372_s7 + $0x50] ss:$8 sps:$4 sm:$0xff]  }
  0x2f   : > { %795 = vmatpush1.bf16.msra.mxu0 %v1166_v14  ;;  %745 = vmatprep.subr.bf16.mxu1 %v1167_v15  ;;  %v1184_v26 = vld [vmem:[%s1372_s7 + $0x140] ss:$8 sps:$4 sm:$0xff]   ;;  %v1187_v28 = vld [vmem:[%s1372_s7 + $0x154] ss:$8 sps:$4 sm:$0xff]   ;;  %v1190_v30 = vld [vmem:[%s1372_s7 + $0x150] ss:$8 sps:$4 sm:$0xff]  }
  0x30   : > { %796 = vmatprep.subr.bf16.mxu0 %v1169_v16  ;;  %v1191_v31 = vld [vmem:[%s1372_s7 + $0x64] ss:$8 sps:$4 sm:$0xff]   ;;  %v1195_v33 = vld [vmem:[%s1372_s7 + $0x60] ss:$8 sps:$4 sm:$0xff]   ;;  %v1197_v35 = vld [vmem:[%s1372_s7 + $0x74] ss:$8 sps:$4 sm:$0xff]  }
  0x31   : > { %v1193_v32 = vld [vmem:[%s1372_s7 + $0x164] ss:$8 sps:$4 sm:$0xff]   ;;  %v1196_v34 = vld [vmem:[%s1372_s7 + $0x160] ss:$8 sps:$4 sm:$0xff]   ;;  %v1199_v36 = vld [vmem:[%s1372_s7 + $0x174] ss:$8 sps:$4 sm:$0xff]  }
  0x32   : > { %746 = vmatpush1.bf16.msra.mxu1 %v1171_v17  ;;  %v1201_v37 = vld [vmem:[%s1372_s7 + $0x70] ss:$8 sps:$4 sm:$0xff]   ;;  %v1203_v39 = vld [vmem:[%s1372_s7 + $0x84] ss:$8 sps:$4 sm:$0xff]   ;;  %v1207_v41 = vld [vmem:[%s1372_s7 + $0x80] ss:$8 sps:$4 sm:$0xff]  }
  0x33   : > { %797 = vmatpush1.bf16.msra.mxu0 %v1172_v18  ;;  %747 = vmatprep.subr.bf16.mxu1 %v1173_v19  ;;  %v1202_v38 = vld [vmem:[%s1372_s7 + $0x170] ss:$8 sps:$4 sm:$0xff]   ;;  %v1205_v40 = vld [vmem:[%s1372_s7 + $0x184] ss:$8 sps:$4 sm:$0xff]   ;;  %v1208_v42 = vld [vmem:[%s1372_s7 + $0x180] ss:$8 sps:$4 sm:$0xff]  }
  0x34   : > { %798 = vmatprep.subr.bf16.mxu0 %v1175_v20  ;;  %v1209_v43 = vld [vmem:[%s1372_s7 + $0x94] ss:$8 sps:$4 sm:$0xff]   ;;  %v1213_v45 = vld [vmem:[%s1372_s7 + $0x90] ss:$8 sps:$4 sm:$0xff]   ;;  %v1215_v47 = vld [vmem:[%s1372_s7 + $0xa4] ss:$8 sps:$4 sm:$0xff]  }
  0x35   : > { %v1211_v44 = vld [vmem:[%s1372_s7 + $0x194] ss:$8 sps:$4 sm:$0xff]   ;;  %v1214_v46 = vld [vmem:[%s1372_s7 + $0x190] ss:$8 sps:$4 sm:$0xff]   ;;  %v1217_v48 = vld [vmem:[%s1372_s7 + $0x1a4] ss:$8 sps:$4 sm:$0xff]  }
  0x36   : > { %748 = vmatpush1.bf16.msra.mxu1 %v1177_v21  ;;  %v1219_v49 = vld [vmem:[%s1372_s7 + $0xa0] ss:$8 sps:$4 sm:$0xff]   ;;  %v1221_v51 = vld [vmem:[%s1372_s7 + $0xb4] ss:$8 sps:$4 sm:$0xff]   ;;  %v1225_v53 = vld [vmem:[%s1372_s7 + $0xb0] ss:$8 sps:$4 sm:$0xff]  }
  0x37   : > { %799 = vmatpush1.bf16.msra.mxu0 %v1178_v22  ;;  %749 = vmatprep.subr.bf16.mxu1 %v1179_v23  ;;  %v1220_v50 = vld [vmem:[%s1372_s7 + $0x1a0] ss:$8 sps:$4 sm:$0xff]   ;;  %v1223_v52 = vld [vmem:[%s1372_s7 + $0x1b4] ss:$8 sps:$4 sm:$0xff]   ;;  %v1226_v55 = vld [vmem:[%s1372_s7 + $0x1b0] ss:$8 sps:$4 sm:$0xff]  }
  0x38   : > { %800 = vmatprep.subr.bf16.mxu0 %v1181_v24  ;;  %v1253_v54 = vld [vmem:[%s1374_s8 + $0x4] ss:$16 sps:$4 sm:$0xff]   ;;  %v1256_v58 = vld [vmem:[%s1374_s8 + $0xc] ss:$16 sps:$4 sm:$0xff]   ;;  %v1231_v59 = vld [vmem:[%s1372_s7 + $0xc0] ss:$8 sps:$4 sm:$0xff]  }
  0x39   : > { %v1227_v56 = vld [vmem:[%s1372_s7 + $0xc4] ss:$8 sps:$4 sm:$0xff]   ;;  %773 = vmatprep.mubr.bf16.mxu1 %v1253_v54  ;;  %824 = vmatprep.mubr.bf16.mxu0 %v1256_v58  ;;  %v1232_v60 = vld [vmem:[%s1372_s7 + $0x1c0] ss:$8 sps:$4 sm:$0xff]   ;;  %v1233_v61 = vld [vmem:[%s1372_s7 + $0xd4] ss:$8 sps:$4 sm:$0xff]  }
  0x3a   : > { %750 = vmatpush1.bf16.msra.mxu1 %v1183_v25  ;;  %v1229_v57 = vld [vmem:[%s1372_s7 + $0x1c4] ss:$8 sps:$4 sm:$0xff]   ;;  %v1235_v62 = vld [vmem:[%s1372_s7 + $0x1d4] ss:$8 sps:$4 sm:$0xff]   ;;  %v1237_v63 = vld [vmem:[%s1372_s7 + $0xd0] ss:$8 sps:$4 sm:$0xff]  }
  0x3b   : > { %801 = vmatpush1.bf16.msra.mxu0 %v1184_v26  ;;  %751 = vmatprep.subr.bf16.mxu1 %v1185_v27  ;;  %v1238_v0 = vld [vmem:[%s1372_s7 + $0x1d0] ss:$8 sps:$4 sm:$0xff]   ;;  %v1239_v1 = vld [vmem:[%s1372_s7 + $0xe4] ss:$8 sps:$4 sm:$0xff]   ;;  %v1243_v3 = vld [vmem:[%s1372_s7 + $0xe0] ss:$8 sps:$4 sm:$0xff]  }
  0x3c   : > { %802 = vmatprep.subr.bf16.mxu0 %v1187_v28  ;;  %v1241_v2 = vld [vmem:[%s1372_s7 + $0x1e4] ss:$8 sps:$4 sm:$0xff]   ;;  %v1244_v4 = vld [vmem:[%s1372_s7 + $0x1e0] ss:$8 sps:$4 sm:$0xff]   ;;  %v1245_v5 = vld [vmem:[%s1372_s7 + $0xf4] ss:$8 sps:$4 sm:$0xff]  }
  0x3d   : > { %v1247_v6 = vld [vmem:[%s1372_s7 + $0x1f4] ss:$8 sps:$4 sm:$0xff]   ;;  %v1249_v7 = vld [vmem:[%s1372_s7 + $0xf0] ss:$8 sps:$4 sm:$0xff]   ;;  %v311_v18 = vld [vmem:[#allocation2] sm:$0xff]  ;;  %p1101_p11 = scmp.ne.s32.totalorder %s1291_s14, 6 }
  0x3e   : > { %752 = vmatpush1.bf16.msra.mxu1 %v1189_v29  ;;  %v1250_v8 = vld [vmem:[%s1372_s7 + $0x1f0] ss:$8 sps:$4 sm:$0xff]   ;;  %v312_v22 = vld [vmem:[#allocation2 + $0x8] sm:$0xff] }
  0x3f   : > { %803 = vmatpush1.bf16.msra.mxu0 %v1190_v30  ;;  %753 = vmatprep.subr.bf16.mxu1 %v1191_v31  ;;  %v321_v9 = vld [vmem:[%s1374_s8 + $0x20] sm:$0xff]  ;;  %v322_v10 = vld [vmem:[%s1374_s8 + $0x28] sm:$0xff] }
  0x40   : > { %804 = vmatprep.subr.bf16.mxu0 %v1193_v32  ;;  %v1251_v11 = vld [vmem:[%s1374_s8] ss:$16 sps:$4 sm:$0xff]   ;;  %v1254_v12 = vld [vmem:[%s1374_s8 + $0x8] ss:$16 sps:$4 sm:$0xff]   ;;  %v1034_v13 = vcombine.high %v321_v9, %v321_v9  ;;  %v1036_v14 = vcombine.high %v322_v10, %v322_v10  ;;  %v1033_v15 = vcombine.low %v321_v9, %v321_v9  ;;  %v1035_v16 = vcombine.low %v322_v10, %v322_v10 }
  0x41   : > { %v313_v26 = vld [vmem:[#allocation2 + $0x10] sm:$0xff]  ;;  %v314_v31 = vld [vmem:[#allocation2 + $0x18] sm:$0xff] }
  0x42   : > { %754 = vmatpush1.bf16.msra.mxu1 %v1195_v33 }
  0x43   : > { %805 = vmatpush1.bf16.msra.mxu0 %v1196_v34  ;;  %755 = vmatprep.subr.bf16.mxu1 %v1197_v35 }
  0x44   : > { %806 = vmatprep.subr.bf16.mxu0 %v1199_v36 }
  0x46   : > { %756 = vmatpush1.bf16.msra.mxu1 %v1201_v37 }
  0x47   : > { %807 = vmatpush1.bf16.msra.mxu0 %v1202_v38  ;;  %757 = vmatprep.subr.bf16.mxu1 %v1203_v39  ;;  %v315_v38 = vld [vmem:[#allocation2 + $0x20] sm:$0xff] }
  0x48   : > { %808 = vmatprep.subr.bf16.mxu0 %v1205_v40 }
  0x4a   : > { %758 = vmatpush1.bf16.msra.mxu1 %v1207_v41 }
  0x4b   : > { %809 = vmatpush1.bf16.msra.mxu0 %v1208_v42  ;;  %759 = vmatprep.subr.bf16.mxu1 %v1209_v43  ;;  %v316_v42 = vld [vmem:[#allocation2 + $0x28] sm:$0xff] }
  0x4c   : > { %810 = vmatprep.subr.bf16.mxu0 %v1211_v44 }
  0x4e   : > { %760 = vmatpush1.bf16.msra.mxu1 %v1213_v45 }
  0x4f   : > { %811 = vmatpush1.bf16.msra.mxu0 %v1214_v46  ;;  %761 = vmatprep.subr.bf16.mxu1 %v1215_v47 }
  0x50   : > { %812 = vmatprep.subr.bf16.mxu0 %v1217_v48 }
  0x52   : > { %762 = vmatpush1.bf16.msra.mxu1 %v1219_v49 }
  0x53   : > { %813 = vmatpush1.bf16.msra.mxu0 %v1220_v50  ;;  %763 = vmatprep.subr.bf16.mxu1 %v1221_v51  ;;  %v867_v51 = vlaneseq (!%p1101_p11) }
  0x54   : > { %814 = vmatprep.subr.bf16.mxu0 %v1223_v52 }
  0x55   : > { %v868_v52 = vshrl.u32 (!%p1101_p11), %v867_v51, 7 }
  0x56   : > { %764 = vmatpush1.bf16.msra.mxu1 %v1225_v53  ;;  %v865_v53 = vld [vmem:[%s1486_s2] sm:$0x3] (!%p1101_p11) }
  0x57   : > { %815 = vmatpush1.bf16.msra.mxu0 %v1226_v55  ;;  %765 = vmatprep.subr.bf16.mxu1 %v1227_v56  ;;  %v869_v55 = vsub.s32 (!%p1101_p11), 0, %v868_v52  ;;  %v873_v56 = vsub.s32 (!%p1101_p11), 1, %v868_v52 }
  0x58   : > { %816 = vmatprep.subr.bf16.mxu0 %v1229_v57 }
  0x5a   : > { %766 = vmatpush1.bf16.msra.mxu1 %v1231_v59 }
  0x5b   : > { %817 = vmatpush1.bf16.msra.mxu0 %v1232_v60  ;;  %767 = vmatprep.subr.bf16.mxu1 %v1233_v61  ;;  %v870_v60 = vrot.slane (!%p1101_p11), %v865_v53, %v869_v55  ;;  %v874_v61 = vrot.slane (!%p1101_p11), %v865_v53, %v873_v56 }
  0x5c   : > { %818 = vmatprep.subr.bf16.mxu0 %v1235_v62 }
  0x5e   : > { %768 = vmatpush1.bf16.msra.mxu1 %v1237_v63 }
  0x5f   : > { %819 = vmatpush1.bf16.msra.mxu0 %v1238_v0  ;;  %769 = vmatprep.subr.bf16.mxu1 %v1239_v1 }
  0x60   : > { %820 = vmatprep.subr.bf16.mxu0 %v1241_v2 }
  0x62   : > { %770 = vmatpush1.bf16.msra.mxu1 %v1243_v3 }
  0x63   : > { %821 = vmatpush1.bf16.msra.mxu0 %v1244_v4  ;;  %771 = vmatprep.subr.bf16.mxu1 %v1245_v5 }
  0x64   : > { %822 = vmatprep.subr.bf16.mxu0 %v1247_v6 }
  0x66   : > { %772 = vmatpush1.bf16.msra.mxu1 %v1249_v7 }
  0x67   : > { %823 = vmatpush1.bf16.msra.mxu0 %v1250_v8 }
  0x69   : > { %774 = vmatmul.mubr.bf16.vlgmr.msra.gmra.mrb[0].mxu1 %v1251_v11 }
  0x6a   : > { %825 = vmatmul.mubr.bf16.vlgmr.msra.gmra.mrb[0].mxu0 %v1254_v12  ;;  %783 = vmatprep.mubr.bf16.mxu1 %v1034_v13 }
  0x6b   : > { %834 = vmatprep.mubr.bf16.mxu0 %v1036_v14 }
  0x71   : > { %784 = vmatmul.mubr.bf16.gmra.mrb[4].mxu1 %v1033_v15 }
  0x72   : > { %835 = vmatmul.mubr.bf16.gmra.mrb[4].mxu0 %v1035_v16 }
 0x13c   : > { %v775_v17 = vpop.f32.mrb[0].mxu1 }
 0x13d   : > { %v826_v19 = vpop.f32.mrb[0].mxu0  ;;  %v777_v21 = vpop.f32.mrb[1].mxu1 }
 0x13e   : > { %v827_v20 = vadd.f32 %v826_v19, %v775_v17  ;;  %v828_v23 = vpop.f32.mrb[1].mxu0  ;;  %v779_v25 = vpop.f32.mrb[2].mxu1 }
 0x13f   : > { %v829_v24 = vadd.f32 %v828_v23, %v777_v21  ;;  %v830_v27 = vpop.f32.mrb[2].mxu0  ;;  %v781_v30 = vpop.f32.mrb[3].mxu1 }
 0x140   : > { %v843_v28 = vadd.f32 %v827_v20, %v311_v18  ;;  %v831_v29 = vadd.f32 %v830_v27, %v779_v25  ;;  %v832_v32 = vpop.f32.mrb[3].mxu0 }
 0x141   : > { %v844_v33 = vadd.f32 %v829_v24, %v312_v22  ;;  %v833_v34 = vadd.f32 %v832_v32, %v781_v30 }
 0x142   : > { %849 = vst [vmem:[#allocation2] sm:$0xff] %v843_v28  ;;  %v845_v35 = vadd.f32 %v831_v29, %v313_v26 }
 0x143   : > { %850 = vst [vmem:[#allocation2 + $0x8] sm:$0xff] %v844_v33  ;;  %v846_v36 = vadd.f32 %v833_v34, %v314_v31 }
 0x144   : > { %851 = vst [vmem:[#allocation2 + $0x10] sm:$0xff] %v845_v35  ;;  %v785_v37 = vpop.f32.mrb[4].mxu1 }
 0x145   : > { %852 = vst [vmem:[#allocation2 + $0x18] sm:$0xff] %v846_v36  ;;  %v836_v39 = vpop.f32.mrb[4].mxu0  ;;  %v787_v41 = vpop.f32.mrb[5].mxu1  ;;  %858 = sbr.rel (%p1101_p11) target bundleno = 344 (0x158), region = 63 }
 0x146   : > { %v837_v40 = vadd.f32 %v836_v39, %v785_v37  ;;  %v838_v43 = vpop.f32.mrb[5].mxu0  ;;  %v789_v45 = vpop.f32.mrb[6].mxu1 }
 0x147   : > { %v839_v44 = vadd.f32 %v838_v43, %v787_v41  ;;  %v840_v46 = vpop.f32.mrb[6].mxu0  ;;  %v790_v48 = vpop.f32.mrb[7].mxu1 }
 0x148   : > { %v847_v47 = vadd.f32 %v837_v40, %v315_v38  ;;  %v841_v49 = vpop.f32.mrb[7].mxu0 }
 0x149   : > { %v848_v50 = vadd.f32 %v839_v44, %v316_v42  ;;  %v859_v54 = vld [vmem:[#allocation2] sm:$0xff] (!%p1101_p11) }
 0x14a   : > { %853 = vst [vmem:[#allocation2 + $0x20] sm:$0xff] %v847_v47  ;;  %v860_v57 = vld [vmem:[#allocation2 + $0x8] sm:$0xff] (!%p1101_p11)  ;;  %v877_v0 = vadd.f32 (!%p1101_p11), %v870_v60, %v859_v54 }
 0x14b   : > { %854 = vst [vmem:[#allocation2 + $0x28] sm:$0xff] %v848_v50  ;;  %v861_v58 = vld [vmem:[#allocation2 + $0x10] sm:$0xff] (!%p1101_p11)  ;;  %v878_v1 = vadd.f32 (!%p1101_p11), %v874_v61, %v860_v57 }
 0x14c   : > { %v862_v59 = vld [vmem:[#allocation2 + $0x18] sm:$0xff]  ;;  %v879_v2 = vadd.f32 %v870_v60, %v861_v58  ;;  %v883_v6 = vmax.f32 %v877_v0, 0.0 }
 0x14d   : > { %v880_v3 = vadd.f32 %v874_v61, %v862_v59  ;;  %v884_v7 = vmax.f32 %v878_v1, 0.0 }
 0x14e   : > { %v885_v8 = vmax.f32 %v879_v2, 0.0  ;;  %889 = vst [vmem:[%s1487_s3] sm:$0xff] %v883_v6 }
 0x14f   : > { %v886_v9 = vmax.f32 %v880_v3, 0.0  ;;  %890 = vst [vmem:[%s1487_s3 + $0x8] sm:$0xff] %v884_v7 }
 0x150   : > { %891 = vst [vmem:[%s1487_s3 + $0x10] sm:$0xff] %v885_v8 }
 0x151   : > { %v863_v62 = vld [vmem:[#allocation2 + $0x20] sm:$0xff]  ;;  %892 = vst [vmem:[%s1487_s3 + $0x18] sm:$0xff] %v886_v9 }
 0x152   : > { %v864_v63 = vld [vmem:[#allocation2 + $0x28] sm:$0xff]  ;;  %v881_v4 = vadd.f32 %v870_v60, %v863_v62 }
 0x153   : > { %v882_v5 = vadd.f32 %v874_v61, %v864_v63 }
 0x154   : > { %v887_v10 = vmax.f32 %v881_v4, 0.0 }
 0x155   : > { %v888_v11 = vmax.f32 %v882_v5, 0.0 }
 0x156   : > { %893 = vst [vmem:[%s1487_s3 + $0x20] sm:$0xff] %v887_v10 }
 0x157   : > { %894 = vst [vmem:[%s1487_s3 + $0x28] sm:$0xff] %v888_v11 }
 0x158 PF: > { %s13_s16 = sadd.s32 1, %s1299_s16   ;;  %s1488_s12 = smov %s1287_s13 }
 0x159   : > { %p10_p12 = scmp.ge.s32.totalorder %s13_s16, 9   ;;  %s1489_s13 = smov %s1357_s20 }
 0x15a   : > { %s1490_s14 = smov %s1295_s15  ;;  %s1491_s15 = smov %s1493_s17 }
 0x15b   :  { %12 = sbr.rel (!%p10_p12) target bundleno = 3 (0x3), region = 104 }

</bundles_post_ra>
